<compile_context>
chip_gen: v7x
topology: tpu7x:2x2x1
jax: 0.10.0
libtpu: 0.0.40
codegen_flags: <defaults>
</compile_context>

<pallas_src>
import functools
import math

import jax
import jax.numpy as jnp
from jax import lax
from jax.experimental import pallas as pl
from jax.experimental.pallas import tpu as pltpu


# ---------------------------------------------------------------------------
# small helpers
# ---------------------------------------------------------------------------
def _round_up(x, m):
    return ((x + m - 1) // m) * m


@functools.lru_cache(maxsize=None)
def _vmem_limit_bytes():
    """~75% of physical VMEM (96 MiB on v5e/v6e, 48 MiB on v7x); 64 MiB fallback."""
    try:
        info = pltpu.get_tpu_info()
        cap = getattr(info, "vmem_capacity_bytes", None)
        if cap:
            return int(int(cap) * 3 // 4)
    except Exception:
        pass
    return 64 * 1024 * 1024


def _default_row_tile():
    # Bigger row tiles on 128 MiB chips (v5e/v6e), smaller on v7x (64 MiB).
    return 512 if _vmem_limit_bytes() >= (80 << 20) else 256


def _mosaic_params(n_axes):
    return pltpu.CompilerParams(
        dimension_semantics=("parallel",) * n_axes,
        vmem_limit_bytes=_vmem_limit_bytes(),
    )


def _pick_row_tile(m, desired):
    tm = min(desired, _round_up(m, 8))
    return max(8, (tm // 8) * 8)


def _seq_tile(s, desired):
    if s % 8 != 0:
        return s                      # full-extent block (allowed for any S)
    return max(8, (min(desired, s) // 8) * 8)


def _vocab_tile(v):
    if v % 128 != 0:
        return v                      # full-extent block
    return min(2048, v)


def _const_spec(shape):
    """BlockSpec for a block whose index never changes: single-buffered if supported."""
    index_map = lambda *_: (0,) * len(shape)
    try:
        return pl.BlockSpec(shape, index_map, pipeline_mode=pl.Buffered(1))
    except (TypeError, AttributeError):
        return pl.BlockSpec(shape, index_map)


# ---------------------------------------------------------------------------
# in-kernel quaternion helpers (component-major flat layout on the lane axis)
# ---------------------------------------------------------------------------
def _split4(x, f):
    return x[:, 0:f], x[:, f:2 * f], x[:, 2 * f:3 * f], x[:, 3 * f:4 * f]


def _quat_mul(a1, b1, c1, d1, a2, b2, c2, d2):
    s = a1 * a2 - b1 * b2 - c1 * c2 - d1 * d2
    i = a1 * b2 + b1 * a2 + c1 * d2 - d1 * c2
    j = a1 * c2 - b1 * d2 + c1 * a2 + d1 * b2
    k = a1 * d2 + b1 * c2 - c1 * b2 + d1 * a2
    return s, i, j, k


def _quat_layer_norm_flat(y, gamma, beta, f, eps=1e-6):
    r, i, j, k = _split4(y, f)
    inv = lax.rsqrt(r * r + i * i + j * j + k * k + eps)
    gr, gi, gj, gk = _split4(gamma, f)
    br, bi, bj, bk = _split4(beta, f)
    return jnp.concatenate(
        [gr * (r * inv) + br, gi * (i * inv) + bi,
         gj * (j * inv) + bj, gk * (k * inv) + bk], axis=-1)


def _mod_relu_flat(h, mbias, f):
    r, i, j, k = _split4(h, f)
    norm = jnp.sqrt(r * r + i * i + j * j + k * k)
    # EUP approx reciprocal: division moves off the VALU slot.
    scale = jnp.maximum(norm + mbias, 0.0) * pl.reciprocal(norm + 1e-6, approx=True)
    return jnp.concatenate([r * scale, i * scale, j * scale, k * scale], axis=-1)


# ---------------------------------------------------------------------------
# Pallas kernels
# ---------------------------------------------------------------------------
def qkv_rot_kernel(x_ref, cos_ref, sin_ref, w_ref, b_ref,
                   xrot_ref, q_ref, k_ref, v_ref, *, E):
    """Rotational encoding + ONE fused Hamilton Q/K/V projection on a (ts, 4E) tile."""
    a, b, c, d = _split4(x_ref[0], E)
    ct = cos_ref[...]
    st = sin_ref[...]
    # rotated_ij = (cos, -sin, sin, cos) (x) x ;  rotated = (cos, sin, -sin, cos) (x) rotated_ij
    s1, i1, j1, k1 = _quat_mul(ct, -st, st, ct, a, b, c, d)
    s2, i2, j2, k2 = _quat_mul(ct, st, -st, ct, s1, i1, j1, k1)
    xr = jnp.concatenate([s2, i2, j2, k2], axis=-1)
    xrot_ref[0] = xr
    # Single (ts, 4E) @ (4E, 12E) bf16 matmul; attention scale pre-folded into the Q block.
    qkv = jnp.dot(xr.astype(jnp.bfloat16), w_ref[...],
                  preferred_element_type=jnp.float32) + b_ref[...]
    D = 4 * E
    q_ref[0] = qkv[:, 0:D].astype(q_ref.dtype)
    k_ref[0] = qkv[:, D:2 * D].astype(k_ref.dtype)
    v_ref[0] = qkv[:, 2 * D:3 * D].astype(v_ref.dtype)


def attention_ln_kernel(q_ref, k_ref, v_ref, xres_ref, g_ref, b_ref,
                        o_ref, w_ref, *, E):
    """Quaternion attention (q-tile vs full K/V) + residual + LayerNorm."""
    q = q_ref[0]                                # (tq, 4E) bf16, scale already folded in
    k = k_ref[0]                                # (S, 4E) bf16
    v = v_ref[0]                                # (S, 4E) bf16
    # einsum 'bqfd,bkfd->bqk' == contract the flattened (f, d) lane axis; NT dot_general.
    scores = lax.dot_general(q, k, (((1,), (1,)), ((), ())),
                             preferred_element_type=jnp.float32)
    # TODO(synk): optional attention mask (mask=None path only) not implemented.
    m = jnp.max(scores, axis=-1, keepdims=True)
    e = jnp.exp(scores - m)
    w = e * pl.reciprocal(jnp.sum(e, axis=-1, keepdims=True), approx=True)
    w_ref[0] = w
    attn = jnp.dot(w.astype(jnp.bfloat16), v, preferred_element_type=jnp.float32)
    o_ref[0] = _quat_layer_norm_flat(xres_ref[0] + attn, g_ref[...], b_ref[...], E)


def ff1_modrelu_kernel(x_ref, w_ref, b_ref, mb_ref, o_ref, *, H):
    h = jnp.dot(x_ref[...].astype(jnp.bfloat16), w_ref[...],
                preferred_element_type=jnp.float32) + b_ref[...]
    o_ref[...] = _mod_relu_flat(h, mb_ref[...], H).astype(o_ref.dtype)


def ff2_res_norm_kernel(h_ref, w_ref, b_ref, xres_ref, g_ref, beta_ref, o_ref, *, E):
    ff = jnp.dot(h_ref[...], w_ref[...], preferred_element_type=jnp.float32) + b_ref[...]
    o_ref[...] = _quat_layer_norm_flat(xres_ref[...] + ff, g_ref[...], beta_ref[...], E)


def quat_to_real_proj_kernel(x_ref, w_ref, b_ref, o_ref, *, E):
    r, i, j, k = _split4(x_ref[...], E)
    x_real = jnp.sqrt(r * r + i * i + j * j + k * k)
    o_ref[...] = jnp.dot(x_real.astype(jnp.bfloat16), w_ref[...],
                         preferred_element_type=jnp.float32) + b_ref[...]


# ---------------------------------------------------------------------------
# Pallas wrappers (cdiv grids with partial boundary blocks; no host-side padding)
# ---------------------------------------------------------------------------
# TODO(synk): for very wide models (4E >= ~2048 on v7x) add a K-axis grid dimension with
# a VMEM accumulator instead of keeping the full Hamilton weight resident.
def qkv_rot_projection(x, cos_tab, sin_tab, w_qkv, b_qkv, E, ts_desired=None):
    B, S, D = x.shape
    ts = _seq_tile(S, ts_desired or _default_row_tile())
    ns = pl.cdiv(S, ts)
    row_spec = pl.BlockSpec((1, ts, D), lambda b, s: (b, s, 0))
    ang_spec = pl.BlockSpec((ts, E), lambda b, s: (s, 0))
    out_f32 = jax.ShapeDtypeStruct((B, S, D), jnp.float32)
    out_bf16 = jax.ShapeDtypeStruct((B, S, D), jnp.bfloat16)
    xrot, q, k, v = pl.pallas_call(
        functools.partial(qkv_rot_kernel, E=E),
        out_shape=(out_f32, out_bf16, out_bf16, out_bf16),
        grid=(B, ns),
        in_specs=[row_spec, ang_spec, ang_spec,
                  _const_spec((D, 3 * D)), _const_spec((1, 3 * D))],
        out_specs=(row_spec,) * 4,
        compiler_params=_mosaic_params(2),
    )(x, cos_tab, sin_tab, w_qkv, b_qkv)
    return xrot, q, k, v


def quat_attention_ln(q, k, v, xres, gamma, beta, E, tq_desired=256):
    B, S, D = xres.shape
    # TODO(synk): for very long S, iterate K/V flash-style (online softmax) instead of
    # keeping the full (S, 4E) K/V blocks resident per batch element.
    tq = _seq_tile(S, tq_desired)
    nq = pl.cdiv(S, tq)
    q_spec = pl.BlockSpec((1, tq, D), lambda b, qi: (b, qi, 0))
    kv_spec = pl.BlockSpec((1, S, D), lambda b, qi: (b, 0, 0))
    out, w = pl.pallas_call(
        functools.partial(attention_ln_kernel, E=E),
        out_shape=(jax.ShapeDtypeStruct((B, S, D), jnp.float32),
                   jax.ShapeDtypeStruct((B, S, S), jnp.float32)),
        grid=(B, nq),
        in_specs=[q_spec, kv_spec, kv_spec, q_spec,
                  _const_spec((1, D)), _const_spec((1, D))],
        out_specs=(q_spec, pl.BlockSpec((1, tq, S), lambda b, qi: (b, qi, 0))),
        compiler_params=_mosaic_params(2),
    )(q, k, v, xres, gamma, beta)
    return out, w


def quat_ff1_modrelu(x_flat, w4, b, mb, tm_desired=None):
    M, D_in = x_flat.shape
    D_out = w4.shape[1]
    H = mb.shape[1]
    tm = _pick_row_tile(M, tm_desired or _default_row_tile())
    out = pl.pallas_call(
        functools.partial(ff1_modrelu_kernel, H=H),
        out_shape=jax.ShapeDtypeStruct((M, D_out), jnp.bfloat16),
        grid=(pl.cdiv(M, tm),),
        in_specs=[pl.BlockSpec((tm, D_in), lambda m: (m, 0)),
                  _const_spec((D_in, D_out)),
                  _const_spec((1, D_out)),
                  _const_spec((1, H))],
        out_specs=pl.BlockSpec((tm, D_out), lambda m: (m, 0)),
        compiler_params=_mosaic_params(1),
    )(x_flat, w4, b, mb)
    return out


def quat_ff2_res_norm(h_flat, w4, b, x_res, gamma, beta, E, tm_desired=None):
    M, D_in = h_flat.shape
    D_out = w4.shape[1]
    tm = _pick_row_tile(M, tm_desired or _default_row_tile())
    out = pl.pallas_call(
        functools.partial(ff2_res_norm_kernel, E=E),
        out_shape=jax.ShapeDtypeStruct((M, D_out), jnp.float32),
        grid=(pl.cdiv(M, tm),),
        in_specs=[pl.BlockSpec((tm, D_in), lambda m: (m, 0)),
                  _const_spec((D_in, D_out)),
                  _const_spec((1, D_out)),
                  pl.BlockSpec((tm, D_out), lambda m: (m, 0)),
                  _const_spec((1, D_out)),
                  _const_spec((1, D_out))],
        out_specs=pl.BlockSpec((tm, D_out), lambda m: (m, 0)),
        compiler_params=_mosaic_params(1),
    )(h_flat, w4, b, x_res, gamma, beta)
    return out


def quat_to_real_projection(x_flat, w_t, b_row, E, tm_desired=None):
    M, D = x_flat.shape
    V = w_t.shape[1]
    tm = _pick_row_tile(M, tm_desired or _default_row_tile())
    tv = _vocab_tile(V)
    out = pl.pallas_call(
        functools.partial(quat_to_real_proj_kernel, E=E),
        out_shape=jax.ShapeDtypeStruct((M, V), jnp.float32),
        grid=(pl.cdiv(M, tm), pl.cdiv(V, tv)),
        in_specs=[pl.BlockSpec((tm, D), lambda m, v: (m, 0)),
                  pl.BlockSpec((E, tv), lambda m, v: (0, v)),
                  pl.BlockSpec((1, tv), lambda m, v: (0, v))],
        out_specs=pl.BlockSpec((tm, tv), lambda m, v: (m, v)),
        compiler_params=_mosaic_params(2),
    )(x_flat, w_t, b_row)
    return out


# ---------------------------------------------------------------------------
# model forward (Pallas path, component-major flat layout end-to-end)
# ---------------------------------------------------------------------------
def quaternion_embedding_flat(token_ids, params):
    r = params["emb_r"][token_ids]
    i = params["emb_i"][token_ids] * params["emb_scale"]
    j = params["emb_j"][token_ids] * params["emb_scale"]
    k = params["emb_k"][token_ids] * params["emb_scale"]
    norm = jnp.sqrt(r ** 2 + i ** 2 + j ** 2 + k ** 2 + 1e-6)
    return jnp.concatenate([r / norm, i / norm, j / norm, k / norm], axis=-1)


def transformer_block(x_bsd, cos_tab, sin_tab, lp, E):
    B, S, D = x_bsd.shape
    xrot, q, k, v = qkv_rot_projection(x_bsd, cos_tab, sin_tab,
                                       lp["w_qkv"], lp["b_qkv"], E)
    out, attn_w = quat_attention_ln(q, k, v, xrot, lp["n1_g"], lp["n1_b"], E)
    x1 = out.reshape(B * S, D)
    h = quat_ff1_modrelu(x1, lp["ff1_w4"], lp["ff1_b"], lp["modrelu_b"])
    x2 = quat_ff2_res_norm(h, lp["ff2_w4"], lp["ff2_b"], x1, lp["n2_g"], lp["n2_b"], E)
    return x2.reshape(B, S, D), attn_w


def quaternion_transformer_forward(token_ids, params):
    B, S = token_ids.shape
    E = params["emb_scale"].shape[0]
    x = quaternion_embedding_flat(token_ids, params)          # (B, S, 4E)
    attn_weights_list = []
    for lp in params["layers"]:
        x, w = transformer_block(x, params["cos_tab"], params["sin_tab"], lp, E)
        attn_weights_list.append(w)
    logits = quat_to_real_projection(x.reshape(B * S, 4 * E),
                                     params["out_wT"], params["out_b"], E)
    V = params["out_b"].shape[1]
    return logits.reshape(B, S, V), attn_weights_list


# ---------------------------------------------------------------------------
# parameters: raw (PyTorch-shaped) init + one-time fusion / pre-transposition
# ---------------------------------------------------------------------------
def _xavier_uniform(key, shape):
    fan_out, fan_in = shape
    limit = math.sqrt(6.0 / (fan_in + fan_out))
    return jax.random.uniform(key, shape, jnp.float32, -limit, limit)


def _init_quat_linear_raw(key, in_f, out_f):
    ks = jax.random.split(key, 4)
    return dict(
        wr=_xavier_uniform(ks[0], (out_f, in_f)),
        wi=_xavier_uniform(ks[1], (out_f, in_f)),
        wj=_xavier_uniform(ks[2], (out_f, in_f)),
        wk=_xavier_uniform(ks[3], (out_f, in_f)),
        bias=jnp.zeros((out_f, 4), jnp.float32),
    )


def init_raw_params(key, vocab_size, E, H, S, num_layers):
    keys = jax.random.split(key, 5 + num_layers)
    emb_scale = 1.0 / 10000 ** (jnp.arange(E, dtype=jnp.float32) / E)
    positions = jnp.arange(S, dtype=jnp.float32)[:, None]
    theta = positions * (math.pi / S) * emb_scale          # (S, E)

    raw = {
        "emb_r": jax.random.normal(keys[0], (vocab_size, E), jnp.float32),
        "emb_i": jax.random.normal(keys[1], (vocab_size, E), jnp.float32),
        "emb_j": jax.random.normal(keys[2], (vocab_size, E), jnp.float32),
        "emb_k": jax.random.normal(keys[3], (vocab_size, E), jnp.float32),
        "emb_scale": emb_scale,
        "theta": theta,
    }
    layers = []
    for l in range(num_layers):
        lk = jax.random.split(keys[4 + l], 5)
        layers.append(dict(
            wq=_init_quat_linear_raw(lk[0], E, E),
            wk=_init_quat_linear_raw(lk[1], E, E),
            wv=_init_quat_linear_raw(lk[2], E, E),
            ff1=_init_quat_linear_raw(lk[3], E, H),
            ff2=_init_quat_linear_raw(lk[4], H, E),
            modrelu_b=jnp.zeros((H,), jnp.float32),
            n1_g=jnp.ones((E, 4), jnp.float32),
            n1_b=jnp.zeros((E, 4), jnp.float32),
            n2_g=jnp.ones((E, 4), jnp.float32),
            n2_b=jnp.zeros((E, 4), jnp.float32),
        ))
    raw["layers"] = layers
    lim = 1.0 / math.sqrt(E)
    raw["out_w"] = jax.random.uniform(keys[-1], (vocab_size, E), jnp.float32, -lim, lim)
    raw["out_b"] = jnp.zeros((vocab_size,), jnp.float32)
    return raw


def build_hamilton_weight(wr, wi, wj, wk):
    """Sign-baked Hamilton block weight: (O, E) x 4 PyTorch weights -> (4E, 4O) such
    that [r|i|j|k] @ W4 == [r_out|i_out|j_out|k_out] of the QuaternionLinear layer."""
    wrT, wiT, wjT, wkT = wr.T, wi.T, wj.T, wk.T
    return jnp.concatenate([
        jnp.concatenate([ wrT,  wiT,  wjT,  wkT], axis=1),
        jnp.concatenate([-wiT,  wrT, -wkT,  wjT], axis=1),
        jnp.concatenate([-wjT,  wkT,  wrT, -wiT], axis=1),
        jnp.concatenate([-wkT, -wjT,  wiT,  wrT], axis=1),
    ], axis=0)


def _fuse_quat_linear(ql):
    w4 = build_hamilton_weight(ql["wr"], ql["wi"], ql["wj"], ql["wk"])
    b = ql["bias"].T.reshape(1, -1)        # (1, 4O), component-major
    return w4, b


def prepare_params(raw):
    """One-time weight fusion / pre-transposition / bf16 cast (at init, not per call)."""
    # TODO(synk): for best MXU/lane utilization choose E so that 4E is a multiple of 128
    # (256 on v6e/v7x); the demo's E=16 is functionally correct but lane-underfilled.
    E = raw["emb_scale"].shape[0]
    attn_scale = 1.0 / math.sqrt(4 * E)     # softmax scale pre-folded into Wq / bq
    params = {
        "emb_r": raw["emb_r"], "emb_i": raw["emb_i"],
        "emb_j": raw["emb_j"], "emb_k": raw["emb_k"],
        "emb_scale": raw["emb_scale"],
        "cos_tab": jnp.cos(raw["theta"]),   # (S, E) f32, computed once
        "sin_tab": jnp.sin(raw["theta"]),
    }
    layers = []
    for rl in raw["layers"]:
        wq4, bq = _fuse_quat_linear(rl["wq"])
        wk4, bk = _fuse_quat_linear(rl["wk"])
        wv4, bv = _fuse_quat_linear(rl["wv"])
        w_qkv = jnp.concatenate([wq4 * attn_scale, wk4, wv4], axis=1).astype(jnp.bfloat16)
        b_qkv = jnp.concatenate([bq * attn_scale, bk, bv], axis=1)          # (1, 12E) f32
        f1, b1 = _fuse_quat_linear(rl["ff1"])
        f2, b2 = _fuse_quat_linear(rl["ff2"])
        layers.append(dict(
            w_qkv=w_qkv, b_qkv=b_qkv,
            ff1_w4=f1.astype(jnp.bfloat16), ff1_b=b1,
            ff2_w4=f2.astype(jnp.bfloat16), ff2_b=b2,
            modrelu_b=rl["modrelu_b"].reshape(1, -1),
            n1_g=rl["n1_g"].T.reshape(1, -1), n1_b=rl["n1_b"].T.reshape(1, -1),
            n2_g=rl["n2_g"].T.reshape(1, -1), n2_b=rl["n2_b"].T.reshape(1, -1),
        ))
    params["layers"] = layers
    params["out_wT"] = raw["out_w"].T.astype(jnp.bfloat16)   # (E, V)
    params["out_b"] = raw["out_b"].reshape(1, -1)            # (1, V)
    return params


# ---------------------------------------------------------------------------
# pure-JAX reference (mirrors the PyTorch module) — used only for validation
# ---------------------------------------------------------------------------
def _ref_quat_linear(x, ql):
    r, i, j, k = x[..., 0], x[..., 1], x[..., 2], x[..., 3]
    wr, wi, wj, wk = ql["wr"], ql["wi"], ql["wj"], ql["wk"]
    lin = lambda a, w: a @ w.T
    r_out = lin(r, wr) - lin(i, wi) - lin(j, wj) - lin(k, wk)
    i_out = lin(r, wi) + lin(i, wr) + lin(j, wk) - lin(k, wj)
    j_out = lin(r, wj) - lin(i, wk) + lin(j, wr) + lin(k, wi)
    k_out = lin(r, wk) + lin(i, wj) - lin(j, wi) + lin(k, wr)
    return jnp.stack([r_out, i_out, j_out, k_out], axis=-1) + ql["bias"][None, None]


def _ref_quat_mul(q1, q2):
    a1, b1, c1, d1 = q1[..., 0], q1[..., 1], q1[..., 2], q1[..., 3]
    a2, b2, c2, d2 = q2[..., 0], q2[..., 1], q2[..., 2], q2[..., 3]
    return jnp.stack([
        a1 * a2 - b1 * b2 - c1 * c2 - d1 * d2,
        a1 * b2 + b1 * a2 + c1 * d2 - d1 * c2,
        a1 * c2 - b1 * d2 + c1 * a2 + d1 * b2,
        a1 * d2 + b1 * c2 - c1 * b2 + d1 * a2], axis=-1)


def reference_forward(token_ids, raw):
    r = raw["emb_r"][token_ids]
    i = raw["emb_i"][token_ids] * raw["emb_scale"]
    j = raw["emb_j"][token_ids] * raw["emb_scale"]
    k = raw["emb_k"][token_ids] * raw["emb_scale"]
    norm = jnp.sqrt(r ** 2 + i ** 2 + j ** 2 + k ** 2 + 1e-6)
    x = jnp.stack([r / norm, i / norm, j / norm, k / norm], axis=-1)

    cos_t = jnp.cos(raw["theta"])[..., None]
    sin_t = jnp.sin(raw["theta"])[..., None]
    r_ij = jnp.concatenate([cos_t, -sin_t, sin_t, cos_t], axis=-1)
    r_k = jnp.concatenate([cos_t, sin_t, -sin_t, cos_t], axis=-1)

    def layer_norm(y, g, b, eps=1e-6):
        n = jnp.sqrt(jnp.sum(y * y, axis=-1, keepdims=True) + eps)
        return g[None, None] * (y / n) + b[None, None]

    E = raw["emb_scale"].shape[0]
    attn_list = []
    for rl in raw["layers"]:
        x = _ref_quat_mul(r_k, _ref_quat_mul(r_ij, x))
        Q = _ref_quat_linear(x, rl["wq"])
        K = _ref_quat_linear(x, rl["wk"])
        V = _ref_quat_linear(x, rl["wv"])
        scores = jnp.einsum('bqfd,bkfd->bqk', Q, K) / math.sqrt(E * 4)
        w = jax.nn.softmax(scores, axis=-1)
        attn = jnp.einsum('bqk,bkfd->bqfd', w, V)
        x = layer_norm(x + attn, rl["n1_g"], rl["n1_b"])
        h = _ref_quat_linear(x, rl["ff1"])
        hn = jnp.linalg.norm(h, axis=-1)
        scale = jnp.maximum(hn + rl["modrelu_b"][None, None], 0.0) / (hn + 1e-6)
        h = h * scale[..., None]
        ff = _ref_quat_linear(h, rl["ff2"])
        x = layer_norm(x + ff, rl["n2_g"], rl["n2_b"])
        attn_list.append(w)
    x_real = jnp.linalg.norm(x, axis=-1)
    logits = x_real @ raw["out_w"].T + raw["out_b"]
    return logits, attn_list


# ---------------------------------------------------------------------------
if __name__ == "__main__":
    vocab_size, embedding_dim, hidden_dim, seq_length, num_layers = 32, 16, 32, 8, 2
    batch = 2

    key = jax.random.PRNGKey(0)
    pkey, tkey = jax.random.split(key)
    raw = init_raw_params(pkey, vocab_size, embedding_dim, hidden_dim,
                          seq_length, num_layers)
    params = prepare_params(raw)
    tokens = jax.random.randint(tkey, (batch, seq_length), 0, vocab_size)

    fwd = jax.jit(quaternion_transformer_forward)
    logits, attn_weights_list = fwd(tokens, params)
    jax.block_until_ready(logits)
    for w in attn_weights_list:
        jax.block_until_ready(w)

    assert logits.shape == (batch, seq_length, vocab_size)
    assert len(attn_weights_list) == num_layers
    assert attn_weights_list[0].shape == (batch, seq_length, seq_length)
    assert bool(jnp.all(jnp.isfinite(logits)))

    # numerical check against a pure-JAX f32 implementation of the PyTorch module
    # (Pallas path uses bf16 matmul operands + EUP approx reciprocals, hence the
    #  slightly loose tolerances).
    ref_logits, ref_attn = jax.jit(reference_forward)(tokens, raw)
    assert jnp.allclose(logits, ref_logits, atol=5e-2, rtol=5e-2), (
        float(jnp.max(jnp.abs(logits - ref_logits))))
    for w, rw in zip(attn_weights_list, ref_attn):
        assert jnp.allclose(w, rw, atol=3e-2, rtol=3e-2), (
            float(jnp.max(jnp.abs(w - rw))))

    print("KERNEL_OK")
</pallas_src>

<mosaic_0001>
module attributes {stable_mosaic.version = 11 : i64} {
  func.func @qkv_rot_kernel(%arg0: i32, %arg1: i32, %arg2: memref<1x8x64xf32, #tpu.memory_space<vmem>>, %arg3: memref<8x16xf32, #tpu.memory_space<vmem>>, %arg4: memref<8x16xf32, #tpu.memory_space<vmem>>, %arg5: memref<64x192xbf16, #tpu.memory_space<vmem>>, %arg6: memref<1x192xf32, #tpu.memory_space<vmem>>, %arg7: memref<1x8x64xf32, #tpu.memory_space<vmem>>, %arg8: memref<1x8x64xbf16, #tpu.memory_space<vmem>>, %arg9: memref<1x8x64xbf16, #tpu.memory_space<vmem>>, %arg10: memref<1x8x64xbf16, #tpu.memory_space<vmem>>) attributes {dimension_semantics = [#tpu.dimension_semantics<parallel>, #tpu.dimension_semantics<parallel>], iteration_bounds = array<i64: 2, 1>, scalar_prefetch = 0 : i64, scratch_operands = 0 : i64, tpu.core_type = #tpu.core_type<tc>, window_params = [{transform_indices = @transform_0, window_bounds = array<i64: 1, 8, 64>}, {transform_indices = @transform_1, window_bounds = array<i64: 8, 16>}, {transform_indices = @transform_2, window_bounds = array<i64: 8, 16>}, {pipeline_mode = #tpu.pipeline_mode<synchronous>, transform_indices = @transform_3, window_bounds = array<i64: 64, 192>}, {pipeline_mode = #tpu.pipeline_mode<synchronous>, transform_indices = @transform_4, window_bounds = array<i64: 1, 192>}, {transform_indices = @transform_5, window_bounds = array<i64: 1, 8, 64>}, {transform_indices = @transform_6, window_bounds = array<i64: 1, 8, 64>}, {transform_indices = @transform_7, window_bounds = array<i64: 1, 8, 64>}, {transform_indices = @transform_8, window_bounds = array<i64: 1, 8, 64>}]} {
    %c0 = arith.constant 0 : index
    %c0_0 = arith.constant 0 : index
    %c0_1 = arith.constant 0 : index
    %0 = vector.load %arg2[%c0, %c0_0, %c0_1] : memref<1x8x64xf32, #tpu.memory_space<vmem>>, vector<1x8x64xf32>
    %1 = vector.shape_cast %0 : vector<1x8x64xf32> to vector<8x64xf32>
    %2 = vector.extract_strided_slice %1 {offsets = [0, 0], sizes = [8, 16], strides = [1, 1]} : vector<8x64xf32> to vector<8x16xf32>
    %3 = vector.extract_strided_slice %1 {offsets = [0, 16], sizes = [8, 16], strides = [1, 1]} : vector<8x64xf32> to vector<8x16xf32>
    %4 = vector.extract_strided_slice %1 {offsets = [0, 32], sizes = [8, 16], strides = [1, 1]} : vector<8x64xf32> to vector<8x16xf32>
    %5 = vector.extract_strided_slice %1 {offsets = [0, 48], sizes = [8, 16], strides = [1, 1]} : vector<8x64xf32> to vector<8x16xf32>
    %c0_2 = arith.constant 0 : index
    %c0_3 = arith.constant 0 : index
    %6 = vector.load %arg3[%c0_2, %c0_3] : memref<8x16xf32, #tpu.memory_space<vmem>>, vector<8x16xf32>
    %c0_4 = arith.constant 0 : index
    %c0_5 = arith.constant 0 : index
    %7 = vector.load %arg4[%c0_4, %c0_5] : memref<8x16xf32, #tpu.memory_space<vmem>>, vector<8x16xf32>
    %cst = arith.constant 0.000000e+00 : f32
    %8 = vector.broadcast %cst : f32 to vector<8x16xf32>
    %9 = arith.subf %8, %7 : vector<8x16xf32>
    %10 = arith.mulf %6, %2 : vector<8x16xf32>
    %11 = arith.mulf %9, %3 : vector<8x16xf32>
    %12 = arith.subf %10, %11 : vector<8x16xf32>
    %13 = arith.mulf %7, %4 : vector<8x16xf32>
    %14 = arith.subf %12, %13 : vector<8x16xf32>
    %15 = arith.mulf %6, %5 : vector<8x16xf32>
    %16 = arith.subf %14, %15 : vector<8x16xf32>
    %17 = arith.mulf %6, %3 : vector<8x16xf32>
    %18 = arith.mulf %9, %2 : vector<8x16xf32>
    %19 = arith.addf %17, %18 : vector<8x16xf32>
    %20 = arith.mulf %7, %5 : vector<8x16xf32>
    %21 = arith.addf %19, %20 : vector<8x16xf32>
    %22 = arith.mulf %6, %4 : vector<8x16xf32>
    %23 = arith.subf %21, %22 : vector<8x16xf32>
    %24 = arith.mulf %6, %4 : vector<8x16xf32>
    %25 = arith.mulf %9, %5 : vector<8x16xf32>
    %26 = arith.subf %24, %25 : vector<8x16xf32>
    %27 = arith.mulf %7, %2 : vector<8x16xf32>
    %28 = arith.addf %26, %27 : vector<8x16xf32>
    %29 = arith.mulf %6, %3 : vector<8x16xf32>
    %30 = arith.addf %28, %29 : vector<8x16xf32>
    %31 = arith.mulf %6, %5 : vector<8x16xf32>
    %32 = arith.mulf %9, %4 : vector<8x16xf32>
    %33 = arith.addf %31, %32 : vector<8x16xf32>
    %34 = arith.mulf %7, %3 : vector<8x16xf32>
    %35 = arith.subf %33, %34 : vector<8x16xf32>
    %36 = arith.mulf %6, %2 : vector<8x16xf32>
    %37 = arith.addf %35, %36 : vector<8x16xf32>
    %cst_6 = arith.constant 0.000000e+00 : f32
    %38 = vector.broadcast %cst_6 : f32 to vector<8x16xf32>
    %39 = arith.subf %38, %7 : vector<8x16xf32>
    %40 = arith.mulf %6, %16 : vector<8x16xf32>
    %41 = arith.mulf %7, %23 : vector<8x16xf32>
    %42 = arith.subf %40, %41 : vector<8x16xf32>
    %43 = arith.mulf %39, %30 : vector<8x16xf32>
    %44 = arith.subf %42, %43 : vector<8x16xf32>
    %45 = arith.mulf %6, %37 : vector<8x16xf32>
    %46 = arith.subf %44, %45 : vector<8x16xf32>
    %47 = arith.mulf %6, %23 : vector<8x16xf32>
    %48 = arith.mulf %7, %16 : vector<8x16xf32>
    %49 = arith.addf %47, %48 : vector<8x16xf32>
    %50 = arith.mulf %39, %37 : vector<8x16xf32>
    %51 = arith.addf %49, %50 : vector<8x16xf32>
    %52 = arith.mulf %6, %30 : vector<8x16xf32>
    %53 = arith.subf %51, %52 : vector<8x16xf32>
    %54 = arith.mulf %6, %30 : vector<8x16xf32>
    %55 = arith.mulf %7, %37 : vector<8x16xf32>
    %56 = arith.subf %54, %55 : vector<8x16xf32>
    %57 = arith.mulf %39, %16 : vector<8x16xf32>
    %58 = arith.addf %56, %57 : vector<8x16xf32>
    %59 = arith.mulf %6, %23 : vector<8x16xf32>
    %60 = arith.addf %58, %59 : vector<8x16xf32>
    %61 = arith.mulf %6, %37 : vector<8x16xf32>
    %62 = arith.mulf %7, %30 : vector<8x16xf32>
    %63 = arith.addf %61, %62 : vector<8x16xf32>
    %64 = arith.mulf %39, %23 : vector<8x16xf32>
    %65 = arith.subf %63, %64 : vector<8x16xf32>
    %66 = arith.mulf %6, %16 : vector<8x16xf32>
    %67 = arith.addf %65, %66 : vector<8x16xf32>
    %68 = tpu.concatenate %46, %53, %60, %67 in 1 : vector<8x16xf32>, vector<8x16xf32>, vector<8x16xf32>, vector<8x16xf32> -> vector<8x64xf32>
    %c0_7 = arith.constant 0 : index
    %c0_8 = arith.constant 0 : index
    %c0_9 = arith.constant 0 : index
    %69 = vector.load %arg7[%c0_7, %c0_8, %c0_9] : memref<1x8x64xf32, #tpu.memory_space<vmem>>, vector<1x8x64xf32>
    %70 = vector.shape_cast %69 : vector<1x8x64xf32> to vector<8x64xf32>
    %71 = vector.shape_cast %68 : vector<8x64xf32> to vector<1x8x64xf32>
    tpu.vector_store %arg7[%c0_7, %c0_8, %c0_9], %71 {strides = array<i32>} : memref<1x8x64xf32, #tpu.memory_space<vmem>>, vector<1x8x64xf32>,
    %72 = arith.truncf %68 : vector<8x64xf32> to vector<8x64xbf16>
    %c0_10 = arith.constant 0 : index
    %c0_11 = arith.constant 0 : index
    %73 = vector.load %arg5[%c0_10, %c0_11] : memref<64x192xbf16, #tpu.memory_space<vmem>>, vector<64x192xbf16>
    %cst_12 = arith.constant dense<0.000000e+00> : vector<8x192xf32>
    %74 = tpu.matmul %72, %73, %cst_12 {dimension_numbers = #tpu.dot_dimension_numbers<[1], [0], [0], [1], [0, 0, 1, 1], [], []>} : vector<8x64xbf16>, vector<64x192xbf16>, vector<8x192xf32> -> vector<8x192xf32>
    %c0_13 = arith.constant 0 : index
    %c0_14 = arith.constant 0 : index
    %75 = vector.load %arg6[%c0_13, %c0_14] : memref<1x192xf32, #tpu.memory_space<vmem>>, vector<1x192xf32>
    %76 = vector.broadcast %75 : vector<1x192xf32> to vector<8x192xf32>
    %77 = arith.addf %74, %76 : vector<8x192xf32>
    %78 = vector.extract_strided_slice %77 {offsets = [0, 0], sizes = [8, 64], strides = [1, 1]} : vector<8x192xf32> to vector<8x64xf32>
    %79 = arith.truncf %78 : vector<8x64xf32> to vector<8x64xbf16>
    %c0_15 = arith.constant 0 : index
    %c0_16 = arith.constant 0 : index
    %c0_17 = arith.constant 0 : index
    %80 = vector.load %arg8[%c0_15, %c0_16, %c0_17] : memref<1x8x64xbf16, #tpu.memory_space<vmem>>, vector<1x8x64xbf16>
    %81 = vector.shape_cast %80 : vector<1x8x64xbf16> to vector<8x64xbf16>
    %82 = vector.shape_cast %79 : vector<8x64xbf16> to vector<1x8x64xbf16>
    tpu.vector_store %arg8[%c0_15, %c0_16, %c0_17], %82 {strides = array<i32>} : memref<1x8x64xbf16, #tpu.memory_space<vmem>>, vector<1x8x64xbf16>,
    %83 = vector.extract_strided_slice %77 {offsets = [0, 64], sizes = [8, 64], strides = [1, 1]} : vector<8x192xf32> to vector<8x64xf32>
    %84 = arith.truncf %83 : vector<8x64xf32> to vector<8x64xbf16>
    %c0_18 = arith.constant 0 : index
    %c0_19 = arith.constant 0 : index
    %c0_20 = arith.constant 0 : index
    %85 = vector.load %arg9[%c0_18, %c0_19, %c0_20] : memref<1x8x64xbf16, #tpu.memory_space<vmem>>, vector<1x8x64xbf16>
    %86 = vector.shape_cast %85 : vector<1x8x64xbf16> to vector<8x64xbf16>
    %87 = vector.shape_cast %84 : vector<8x64xbf16> to vector<1x8x64xbf16>
    tpu.vector_store %arg9[%c0_18, %c0_19, %c0_20], %87 {strides = array<i32>} : memref<1x8x64xbf16, #tpu.memory_space<vmem>>, vector<1x8x64xbf16>,
    %88 = vector.extract_strided_slice %77 {offsets = [0, 128], sizes = [8, 64], strides = [1, 1]} : vector<8x192xf32> to vector<8x64xf32>
    %89 = arith.truncf %88 : vector<8x64xf32> to vector<8x64xbf16>
    %c0_21 = arith.constant 0 : index
    %c0_22 = arith.constant 0 : index
    %c0_23 = arith.constant 0 : index
    %90 = vector.load %arg10[%c0_21, %c0_22, %c0_23] : memref<1x8x64xbf16, #tpu.memory_space<vmem>>, vector<1x8x64xbf16>
    %91 = vector.shape_cast %90 : vector<1x8x64xbf16> to vector<8x64xbf16>
    %92 = vector.shape_cast %89 : vector<8x64xbf16> to vector<1x8x64xbf16>
    tpu.vector_store %arg10[%c0_21, %c0_22, %c0_23], %92 {strides = array<i32>} : memref<1x8x64xbf16, #tpu.memory_space<vmem>>, vector<1x8x64xbf16>,
    return
  }
  func.func @transform_0(%arg0: i32, %arg1: i32) -> (i32, i32, i32) {
    %c0_i32 = arith.constant 0 : i32
    %c0_i32_0 = arith.constant 0 : i32
    return %arg0, %arg1, %c0_i32 : i32, i32, i32
  }
  func.func @transform_1(%arg0: i32, %arg1: i32) -> (i32, i32) {
    %c0_i32 = arith.constant 0 : i32
    %c0_i32_0 = arith.constant 0 : i32
    return %arg1, %c0_i32 : i32, i32
  }
  func.func @transform_2(%arg0: i32, %arg1: i32) -> (i32, i32) {
    %c0_i32 = arith.constant 0 : i32
    %c0_i32_0 = arith.constant 0 : i32
    return %arg1, %c0_i32 : i32, i32
  }
  func.func @transform_3(%arg0: i32, %arg1: i32) -> (i32, i32) {
    %c0_i32 = arith.constant 0 : i32
    %c0_i32_0 = arith.constant 0 : i32
    %c0_i32_1 = arith.constant 0 : i32
    return %c0_i32, %c0_i32_0 : i32, i32
  }
  func.func @transform_4(%arg0: i32, %arg1: i32) -> (i32, i32) {
    %c0_i32 = arith.constant 0 : i32
    %c0_i32_0 = arith.constant 0 : i32
    %c0_i32_1 = arith.constant 0 : i32
    return %c0_i32, %c0_i32_0 : i32, i32
  }
  func.func @transform_5(%arg0: i32, %arg1: i32) -> (i32, i32, i32) {
    %c0_i32 = arith.constant 0 : i32
    %c0_i32_0 = arith.constant 0 : i32
    return %arg0, %arg1, %c0_i32 : i32, i32, i32
  }
  func.func @transform_6(%arg0: i32, %arg1: i32) -> (i32, i32, i32) {
    %c0_i32 = arith.constant 0 : i32
    %c0_i32_0 = arith.constant 0 : i32
    return %arg0, %arg1, %c0_i32 : i32, i32, i32
  }
  func.func @transform_7(%arg0: i32, %arg1: i32) -> (i32, i32, i32) {
    %c0_i32 = arith.constant 0 : i32
    %c0_i32_0 = arith.constant 0 : i32
    return %arg0, %arg1, %c0_i32 : i32, i32, i32
  }
  func.func @transform_8(%arg0: i32, %arg1: i32) -> (i32, i32, i32) {
    %c0_i32 = arith.constant 0 : i32
    %c0_i32_0 = arith.constant 0 : i32
    return %arg0, %arg1, %c0_i32 : i32, i32, i32
  }
}

module attributes {stable_mosaic.version = 11 : i64} {
  func.func @ff1_modrelu_kernel(%arg0: i32, %arg1: memref<16x64xf32, #tpu.memory_space<vmem>>, %arg2: memref<64x128xbf16, #tpu.memory_space<vmem>>, %arg3: memref<1x128xf32, #tpu.memory_space<vmem>>, %arg4: memref<1x32xf32, #tpu.memory_space<vmem>>, %arg5: memref<16x128xbf16, #tpu.memory_space<vmem>>) attributes {dimension_semantics = [#tpu.dimension_semantics<parallel>], iteration_bounds = array<i64: 1>, scalar_prefetch = 0 : i64, scratch_operands = 0 : i64, tpu.core_type = #tpu.core_type<tc>, window_params = [{transform_indices = @transform_0, window_bounds = array<i64: 16, 64>}, {pipeline_mode = #tpu.pipeline_mode<synchronous>, transform_indices = @transform_1, window_bounds = array<i64: 64, 128>}, {pipeline_mode = #tpu.pipeline_mode<synchronous>, transform_indices = @transform_2, window_bounds = array<i64: 1, 128>}, {pipeline_mode = #tpu.pipeline_mode<synchronous>, transform_indices = @transform_3, window_bounds = array<i64: 1, 32>}, {transform_indices = @transform_4, window_bounds = array<i64: 16, 128>}]} {
    %c0 = arith.constant 0 : index
    %c0_0 = arith.constant 0 : index
    %0 = vector.load %arg1[%c0, %c0_0] : memref<16x64xf32, #tpu.memory_space<vmem>>, vector<16x64xf32>
    %1 = arith.truncf %0 : vector<16x64xf32> to vector<16x64xbf16>
    %c0_1 = arith.constant 0 : index
    %c0_2 = arith.constant 0 : index
    %2 = vector.load %arg2[%c0_1, %c0_2] : memref<64x128xbf16, #tpu.memory_space<vmem>>, vector<64x128xbf16>
    %cst = arith.constant dense<0.000000e+00> : vector<16x128xf32>
    %3 = tpu.matmul %1, %2, %cst {dimension_numbers = #tpu.dot_dimension_numbers<[1], [0], [0], [1], [0, 0, 1, 1], [], []>} : vector<16x64xbf16>, vector<64x128xbf16>, vector<16x128xf32> -> vector<16x128xf32>
    %c0_3 = arith.constant 0 : index
    %c0_4 = arith.constant 0 : index
    %4 = vector.load %arg3[%c0_3, %c0_4] : memref<1x128xf32, #tpu.memory_space<vmem>>, vector<1x128xf32>
    %5 = vector.broadcast %4 : vector<1x128xf32> to vector<16x128xf32>
    %6 = arith.addf %3, %5 : vector<16x128xf32>
    %c0_5 = arith.constant 0 : index
    %c0_6 = arith.constant 0 : index
    %7 = vector.load %arg4[%c0_5, %c0_6] : memref<1x32xf32, #tpu.memory_space<vmem>>, vector<1x32xf32>
    %8 = vector.extract_strided_slice %6 {offsets = [0, 0], sizes = [16, 32], strides = [1, 1]} : vector<16x128xf32> to vector<16x32xf32>
    %9 = vector.extract_strided_slice %6 {offsets = [0, 32], sizes = [16, 32], strides = [1, 1]} : vector<16x128xf32> to vector<16x32xf32>
    %10 = vector.extract_strided_slice %6 {offsets = [0, 64], sizes = [16, 32], strides = [1, 1]} : vector<16x128xf32> to vector<16x32xf32>
    %11 = vector.extract_strided_slice %6 {offsets = [0, 96], sizes = [16, 32], strides = [1, 1]} : vector<16x128xf32> to vector<16x32xf32>
    %12 = arith.mulf %8, %8 : vector<16x32xf32>
    %13 = arith.mulf %9, %9 : vector<16x32xf32>
    %14 = arith.addf %12, %13 : vector<16x32xf32>
    %15 = arith.mulf %10, %10 : vector<16x32xf32>
    %16 = arith.addf %14, %15 : vector<16x32xf32>
    %17 = arith.mulf %11, %11 : vector<16x32xf32>
    %18 = arith.addf %16, %17 : vector<16x32xf32>
    %19 = math.sqrt %18 : vector<16x32xf32>
    %20 = vector.broadcast %7 : vector<1x32xf32> to vector<16x32xf32>
    %21 = arith.addf %19, %20 : vector<16x32xf32>
    %cst_7 = arith.constant 0.000000e+00 : f32
    %22 = vector.broadcast %cst_7 : f32 to vector<16x32xf32>
    %23 = arith.maximumf %21, %22 : vector<16x32xf32>
    %cst_8 = arith.constant 9.99999997E-7 : f32
    %24 = vector.broadcast %cst_8 : f32 to vector<16x32xf32>
    %25 = arith.addf %19, %24 : vector<16x32xf32>
    %26 = tpu.reciprocal %25 {approx = true} : vector<16x32xf32> -> vector<16x32xf32>
    %27 = arith.mulf %23, %26 : vector<16x32xf32>
    %28 = arith.mulf %8, %27 : vector<16x32xf32>
    %29 = arith.mulf %9, %27 : vector<16x32xf32>
    %30 = arith.mulf %10, %27 : vector<16x32xf32>
    %31 = arith.mulf %11, %27 : vector<16x32xf32>
    %32 = tpu.concatenate %28, %29, %30, %31 in 1 : vector<16x32xf32>, vector<16x32xf32>, vector<16x32xf32>, vector<16x32xf32> -> vector<16x128xf32>
    %33 = arith.truncf %32 : vector<16x128xf32> to vector<16x128xbf16>
    %c0_9 = arith.constant 0 : index
    %c0_10 = arith.constant 0 : index
    %34 = vector.load %arg5[%c0_9, %c0_10] : memref<16x128xbf16, #tpu.memory_space<vmem>>, vector<16x128xbf16>
    tpu.vector_store %arg5[%c0_9, %c0_10], %33 {strides = array<i32>} : memref<16x128xbf16, #tpu.memory_space<vmem>>, vector<16x128xbf16>,
    return
  }
  func.func @transform_0(%arg0: i32) -> (i32, i32) {
    %c0_i32 = arith.constant 0 : i32
    %c0_i32_0 = arith.constant 0 : i32
    return %arg0, %c0_i32 : i32, i32
  }
  func.func @transform_1(%arg0: i32) -> (i32, i32) {
    %c0_i32 = arith.constant 0 : i32
    %c0_i32_0 = arith.constant 0 : i32
    %c0_i32_1 = arith.constant 0 : i32
    return %c0_i32, %c0_i32_0 : i32, i32
  }
  func.func @transform_2(%arg0: i32) -> (i32, i32) {
    %c0_i32 = arith.constant 0 : i32
    %c0_i32_0 = arith.constant 0 : i32
    %c0_i32_1 = arith.constant 0 : i32
    return %c0_i32, %c0_i32_0 : i32, i32
  }
  func.func @transform_3(%arg0: i32) -> (i32, i32) {
    %c0_i32 = arith.constant 0 : i32
    %c0_i32_0 = arith.constant 0 : i32
    %c0_i32_1 = arith.constant 0 : i32
    return %c0_i32, %c0_i32_0 : i32, i32
  }
  func.func @transform_4(%arg0: i32) -> (i32, i32) {
    %c0_i32 = arith.constant 0 : i32
    %c0_i32_0 = arith.constant 0 : i32
    return %arg0, %c0_i32 : i32, i32
  }
}

module attributes {stable_mosaic.version = 11 : i64} {
  func.func @ff2_res_norm_kernel(%arg0: i32, %arg1: memref<16x128xbf16, #tpu.memory_space<vmem>>, %arg2: memref<128x64xbf16, #tpu.memory_space<vmem>>, %arg3: memref<1x64xf32, #tpu.memory_space<vmem>>, %arg4: memref<16x64xf32, #tpu.memory_space<vmem>>, %arg5: memref<1x64xf32, #tpu.memory_space<vmem>>, %arg6: memref<1x64xf32, #tpu.memory_space<vmem>>, %arg7: memref<16x64xf32, #tpu.memory_space<vmem>>) attributes {dimension_semantics = [#tpu.dimension_semantics<parallel>], iteration_bounds = array<i64: 1>, scalar_prefetch = 0 : i64, scratch_operands = 0 : i64, tpu.core_type = #tpu.core_type<tc>, window_params = [{transform_indices = @transform_0, window_bounds = array<i64: 16, 128>}, {pipeline_mode = #tpu.pipeline_mode<synchronous>, transform_indices = @transform_1, window_bounds = array<i64: 128, 64>}, {pipeline_mode = #tpu.pipeline_mode<synchronous>, transform_indices = @transform_2, window_bounds = array<i64: 1, 64>}, {transform_indices = @transform_3, window_bounds = array<i64: 16, 64>}, {pipeline_mode = #tpu.pipeline_mode<synchronous>, transform_indices = @transform_4, window_bounds = array<i64: 1, 64>}, {pipeline_mode = #tpu.pipeline_mode<synchronous>, transform_indices = @transform_5, window_bounds = array<i64: 1, 64>}, {transform_indices = @transform_6, window_bounds = array<i64: 16, 64>}]} {
    %c0 = arith.constant 0 : index
    %c0_0 = arith.constant 0 : index
    %0 = vector.load %arg1[%c0, %c0_0] : memref<16x128xbf16, #tpu.memory_space<vmem>>, vector<16x128xbf16>
    %c0_1 = arith.constant 0 : index
    %c0_2 = arith.constant 0 : index
    %1 = vector.load %arg2[%c0_1, %c0_2] : memref<128x64xbf16, #tpu.memory_space<vmem>>, vector<128x64xbf16>
    %cst = arith.constant dense<0.000000e+00> : vector<16x64xf32>
    %2 = tpu.matmul %0, %1, %cst {dimension_numbers = #tpu.dot_dimension_numbers<[1], [0], [0], [1], [0, 0, 1, 1], [], []>} : vector<16x128xbf16>, vector<128x64xbf16>, vector<16x64xf32> -> vector<16x64xf32>
    %c0_3 = arith.constant 0 : index
    %c0_4 = arith.constant 0 : index
    %3 = vector.load %arg3[%c0_3, %c0_4] : memref<1x64xf32, #tpu.memory_space<vmem>>, vector<1x64xf32>
    %4 = vector.broadcast %3 : vector<1x64xf32> to vector<16x64xf32>
    %5 = arith.addf %2, %4 : vector<16x64xf32>
    %c0_5 = arith.constant 0 : index
    %c0_6 = arith.constant 0 : index
    %6 = vector.load %arg4[%c0_5, %c0_6] : memref<16x64xf32, #tpu.memory_space<vmem>>, vector<16x64xf32>
    %7 = arith.addf %6, %5 : vector<16x64xf32>
    %c0_7 = arith.constant 0 : index
    %c0_8 = arith.constant 0 : index
    %8 = vector.load %arg5[%c0_7, %c0_8] : memref<1x64xf32, #tpu.memory_space<vmem>>, vector<1x64xf32>
    %c0_9 = arith.constant 0 : index
    %c0_10 = arith.constant 0 : index
    %9 = vector.load %arg6[%c0_9, %c0_10] : memref<1x64xf32, #tpu.memory_space<vmem>>, vector<1x64xf32>
    %10 = vector.extract_strided_slice %7 {offsets = [0, 0], sizes = [16, 16], strides = [1, 1]} : vector<16x64xf32> to vector<16x16xf32>
    %11 = vector.extract_strided_slice %7 {offsets = [0, 16], sizes = [16, 16], strides = [1, 1]} : vector<16x64xf32> to vector<16x16xf32>
    %12 = vector.extract_strided_slice %7 {offsets = [0, 32], sizes = [16, 16], strides = [1, 1]} : vector<16x64xf32> to vector<16x16xf32>
    %13 = vector.extract_strided_slice %7 {offsets = [0, 48], sizes = [16, 16], strides = [1, 1]} : vector<16x64xf32> to vector<16x16xf32>
    %14 = arith.mulf %10, %10 : vector<16x16xf32>
    %15 = arith.mulf %11, %11 : vector<16x16xf32>
    %16 = arith.addf %14, %15 : vector<16x16xf32>
    %17 = arith.mulf %12, %12 : vector<16x16xf32>
    %18 = arith.addf %16, %17 : vector<16x16xf32>
    %19 = arith.mulf %13, %13 : vector<16x16xf32>
    %20 = arith.addf %18, %19 : vector<16x16xf32>
    %cst_11 = arith.constant 9.99999997E-7 : f32
    %21 = vector.broadcast %cst_11 : f32 to vector<16x16xf32>
    %22 = arith.addf %20, %21 : vector<16x16xf32>
    %23 = math.rsqrt %22 : vector<16x16xf32>
    %24 = vector.extract_strided_slice %8 {offsets = [0, 0], sizes = [1, 16], strides = [1, 1]} : vector<1x64xf32> to vector<1x16xf32>
    %25 = vector.extract_strided_slice %8 {offsets = [0, 16], sizes = [1, 16], strides = [1, 1]} : vector<1x64xf32> to vector<1x16xf32>
    %26 = vector.extract_strided_slice %8 {offsets = [0, 32], sizes = [1, 16], strides = [1, 1]} : vector<1x64xf32> to vector<1x16xf32>
    %27 = vector.extract_strided_slice %8 {offsets = [0, 48], sizes = [1, 16], strides = [1, 1]} : vector<1x64xf32> to vector<1x16xf32>
    %28 = vector.extract_strided_slice %9 {offsets = [0, 0], sizes = [1, 16], strides = [1, 1]} : vector<1x64xf32> to vector<1x16xf32>
    %29 = vector.extract_strided_slice %9 {offsets = [0, 16], sizes = [1, 16], strides = [1, 1]} : vector<1x64xf32> to vector<1x16xf32>
    %30 = vector.extract_strided_slice %9 {offsets = [0, 32], sizes = [1, 16], strides = [1, 1]} : vector<1x64xf32> to vector<1x16xf32>
    %31 = vector.extract_strided_slice %9 {offsets = [0, 48], sizes = [1, 16], strides = [1, 1]} : vector<1x64xf32> to vector<1x16xf32>
    %32 = arith.mulf %10, %23 : vector<16x16xf32>
    %33 = vector.broadcast %24 : vector<1x16xf32> to vector<16x16xf32>
    %34 = arith.mulf %33, %32 : vector<16x16xf32>
    %35 = vector.broadcast %28 : vector<1x16xf32> to vector<16x16xf32>
    %36 = arith.addf %34, %35 : vector<16x16xf32>
    %37 = arith.mulf %11, %23 : vector<16x16xf32>
    %38 = vector.broadcast %25 : vector<1x16xf32> to vector<16x16xf32>
    %39 = arith.mulf %38, %37 : vector<16x16xf32>
    %40 = vector.broadcast %29 : vector<1x16xf32> to vector<16x16xf32>
    %41 = arith.addf %39, %40 : vector<16x16xf32>
    %42 = arith.mulf %12, %23 : vector<16x16xf32>
    %43 = vector.broadcast %26 : vector<1x16xf32> to vector<16x16xf32>
    %44 = arith.mulf %43, %42 : vector<16x16xf32>
    %45 = vector.broadcast %30 : vector<1x16xf32> to vector<16x16xf32>
    %46 = arith.addf %44, %45 : vector<16x16xf32>
    %47 = arith.mulf %13, %23 : vector<16x16xf32>
    %48 = vector.broadcast %27 : vector<1x16xf32> to vector<16x16xf32>
    %49 = arith.mulf %48, %47 : vector<16x16xf32>
    %50 = vector.broadcast %31 : vector<1x16xf32> to vector<16x16xf32>
    %51 = arith.addf %49, %50 : vector<16x16xf32>
    %52 = tpu.concatenate %36, %41, %46, %51 in 1 : vector<16x16xf32>, vector<16x16xf32>, vector<16x16xf32>, vector<16x16xf32> -> vector<16x64xf32>
    %c0_12 = arith.constant 0 : index
    %c0_13 = arith.constant 0 : index
    %53 = vector.load %arg7[%c0_12, %c0_13] : memref<16x64xf32, #tpu.memory_space<vmem>>, vector<16x64xf32>
    tpu.vector_store %arg7[%c0_12, %c0_13], %52 {strides = array<i32>} : memref<16x64xf32, #tpu.memory_space<vmem>>, vector<16x64xf32>,
    return
  }
  func.func @transform_0(%arg0: i32) -> (i32, i32) {
    %c0_i32 = arith.constant 0 : i32
    %c0_i32_0 = arith.constant 0 : i32
    return %arg0, %c0_i32 : i32, i32
  }
  func.func @transform_1(%arg0: i32) -> (i32, i32) {
    %c0_i32 = arith.constant 0 : i32
    %c0_i32_0 = arith.constant 0 : i32
    %c0_i32_1 = arith.constant 0 : i32
    return %c0_i32, %c0_i32_0 : i32, i32
  }
  func.func @transform_2(%arg0: i32) -> (i32, i32) {
    %c0_i32 = arith.constant 0 : i32
    %c0_i32_0 = arith.constant 0 : i32
    %c0_i32_1 = arith.constant 0 : i32
    return %c0_i32, %c0_i32_0 : i32, i32
  }
  func.func @transform_3(%arg0: i32) -> (i32, i32) {
    %c0_i32 = arith.constant 0 : i32
    %c0_i32_0 = arith.constant 0 : i32
    return %arg0, %c0_i32 : i32, i32
  }
  func.func @transform_4(%arg0: i32) -> (i32, i32) {
    %c0_i32 = arith.constant 0 : i32
    %c0_i32_0 = arith.constant 0 : i32
    %c0_i32_1 = arith.constant 0 : i32
    return %c0_i32, %c0_i32_0 : i32, i32
  }
  func.func @transform_5(%arg0: i32) -> (i32, i32) {
    %c0_i32 = arith.constant 0 : i32
    %c0_i32_0 = arith.constant 0 : i32
    %c0_i32_1 = arith.constant 0 : i32
    return %c0_i32, %c0_i32_0 : i32, i32
  }
  func.func @transform_6(%arg0: i32) -> (i32, i32) {
    %c0_i32 = arith.constant 0 : i32
    %c0_i32_0 = arith.constant 0 : i32
    return %arg0, %c0_i32 : i32, i32
  }
}

module attributes {stable_mosaic.version = 11 : i64} {
  func.func @attention_ln_kernel(%arg0: i32, %arg1: i32, %arg2: memref<1x8x64xbf16, #tpu.memory_space<vmem>>, %arg3: memref<1x8x64xbf16, #tpu.memory_space<vmem>>, %arg4: memref<1x8x64xbf16, #tpu.memory_space<vmem>>, %arg5: memref<1x8x64xf32, #tpu.memory_space<vmem>>, %arg6: memref<1x64xf32, #tpu.memory_space<vmem>>, %arg7: memref<1x64xf32, #tpu.memory_space<vmem>>, %arg8: memref<1x8x64xf32, #tpu.memory_space<vmem>>, %arg9: memref<1x8x8xf32, #tpu.memory_space<vmem>>) attributes {dimension_semantics = [#tpu.dimension_semantics<parallel>, #tpu.dimension_semantics<parallel>], iteration_bounds = array<i64: 2, 1>, scalar_prefetch = 0 : i64, scratch_operands = 0 : i64, tpu.core_type = #tpu.core_type<tc>, window_params = [{transform_indices = @transform_0, window_bounds = array<i64: 1, 8, 64>}, {transform_indices = @transform_1, window_bounds = array<i64: 1, 8, 64>}, {transform_indices = @transform_2, window_bounds = array<i64: 1, 8, 64>}, {transform_indices = @transform_3, window_bounds = array<i64: 1, 8, 64>}, {pipeline_mode = #tpu.pipeline_mode<synchronous>, transform_indices = @transform_4, window_bounds = array<i64: 1, 64>}, {pipeline_mode = #tpu.pipeline_mode<synchronous>, transform_indices = @transform_5, window_bounds = array<i64: 1, 64>}, {transform_indices = @transform_6, window_bounds = array<i64: 1, 8, 64>}, {transform_indices = @transform_7, window_bounds = array<i64: 1, 8, 8>}]} {
    %c0 = arith.constant 0 : index
    %c0_0 = arith.constant 0 : index
    %c0_1 = arith.constant 0 : index
    %0 = vector.load %arg2[%c0, %c0_0, %c0_1] : memref<1x8x64xbf16, #tpu.memory_space<vmem>>, vector<1x8x64xbf16>
    %1 = vector.shape_cast %0 : vector<1x8x64xbf16> to vector<8x64xbf16>
    %c0_2 = arith.constant 0 : index
    %c0_3 = arith.constant 0 : index
    %c0_4 = arith.constant 0 : index
    %2 = vector.load %arg3[%c0_2, %c0_3, %c0_4] : memref<1x8x64xbf16, #tpu.memory_space<vmem>>, vector<1x8x64xbf16>
    %3 = vector.shape_cast %2 : vector<1x8x64xbf16> to vector<8x64xbf16>
    %c0_5 = arith.constant 0 : index
    %c0_6 = arith.constant 0 : index
    %c0_7 = arith.constant 0 : index
    %4 = vector.load %arg4[%c0_5, %c0_6, %c0_7] : memref<1x8x64xbf16, #tpu.memory_space<vmem>>, vector<1x8x64xbf16>
    %5 = vector.shape_cast %4 : vector<1x8x64xbf16> to vector<8x64xbf16>
    %cst = arith.constant dense<0.000000e+00> : vector<8x8xf32>
    %6 = tpu.matmul %1, %3, %cst {dimension_numbers = #tpu.dot_dimension_numbers<[1], [1], [0], [0], [0, 0, 1, 0], [], []>} : vector<8x64xbf16>, vector<8x64xbf16>, vector<8x8xf32> -> vector<8x8xf32>
    %cst_8 = arith.constant dense<0xFF800000> : vector<8xf32>
    %7 = vector.multi_reduction <maximumf>, %6, %cst_8 [1] : vector<8x8xf32> to vector<8xf32>
    %8 = vector.shape_cast %7 : vector<8xf32> to vector<8x1xf32>
    %9 = vector.broadcast %8 : vector<8x1xf32> to vector<8x8xf32>
    %10 = arith.subf %6, %9 : vector<8x8xf32>
    %11 = math.exp %10 : vector<8x8xf32>
    %cst_9 = arith.constant dense<0.000000e+00> : vector<8xf32>
    %12 = vector.multi_reduction <add>, %11, %cst_9 [1] : vector<8x8xf32> to vector<8xf32>
    %13 = vector.shape_cast %12 : vector<8xf32> to vector<8x1xf32>
    %14 = tpu.reciprocal %13 {approx = true} : vector<8x1xf32> -> vector<8x1xf32>
    %15 = vector.broadcast %14 : vector<8x1xf32> to vector<8x8xf32>
    %16 = arith.mulf %11, %15 : vector<8x8xf32>
    %c0_10 = arith.constant 0 : index
    %c0_11 = arith.constant 0 : index
    %c0_12 = arith.constant 0 : index
    %17 = vector.load %arg9[%c0_10, %c0_11, %c0_12] : memref<1x8x8xf32, #tpu.memory_space<vmem>>, vector<1x8x8xf32>
    %18 = vector.shape_cast %17 : vector<1x8x8xf32> to vector<8x8xf32>
    %19 = vector.shape_cast %16 : vector<8x8xf32> to vector<1x8x8xf32>
    tpu.vector_store %arg9[%c0_10, %c0_11, %c0_12], %19 {strides = array<i32>} : memref<1x8x8xf32, #tpu.memory_space<vmem>>, vector<1x8x8xf32>,
    %20 = arith.truncf %16 : vector<8x8xf32> to vector<8x8xbf16>
    %cst_13 = arith.constant dense<0.000000e+00> : vector<8x64xf32>
    %21 = tpu.matmul %20, %5, %cst_13 {dimension_numbers = #tpu.dot_dimension_numbers<[1], [0], [0], [1], [0, 0, 1, 1], [], []>} : vector<8x8xbf16>, vector<8x64xbf16>, vector<8x64xf32> -> vector<8x64xf32>
    %c0_14 = arith.constant 0 : index
    %c0_15 = arith.constant 0 : index
    %c0_16 = arith.constant 0 : index
    %22 = vector.load %arg5[%c0_14, %c0_15, %c0_16] : memref<1x8x64xf32, #tpu.memory_space<vmem>>, vector<1x8x64xf32>
    %23 = vector.shape_cast %22 : vector<1x8x64xf32> to vector<8x64xf32>
    %24 = arith.addf %23, %21 : vector<8x64xf32>
    %c0_17 = arith.constant 0 : index
    %c0_18 = arith.constant 0 : index
    %25 = vector.load %arg6[%c0_17, %c0_18] : memref<1x64xf32, #tpu.memory_space<vmem>>, vector<1x64xf32>
    %c0_19 = arith.constant 0 : index
    %c0_20 = arith.constant 0 : index
    %26 = vector.load %arg7[%c0_19, %c0_20] : memref<1x64xf32, #tpu.memory_space<vmem>>, vector<1x64xf32>
    %27 = vector.extract_strided_slice %24 {offsets = [0, 0], sizes = [8, 16], strides = [1, 1]} : vector<8x64xf32> to vector<8x16xf32>
    %28 = vector.extract_strided_slice %24 {offsets = [0, 16], sizes = [8, 16], strides = [1, 1]} : vector<8x64xf32> to vector<8x16xf32>
    %29 = vector.extract_strided_slice %24 {offsets = [0, 32], sizes = [8, 16], strides = [1, 1]} : vector<8x64xf32> to vector<8x16xf32>
    %30 = vector.extract_strided_slice %24 {offsets = [0, 48], sizes = [8, 16], strides = [1, 1]} : vector<8x64xf32> to vector<8x16xf32>
    %31 = arith.mulf %27, %27 : vector<8x16xf32>
    %32 = arith.mulf %28, %28 : vector<8x16xf32>
    %33 = arith.addf %31, %32 : vector<8x16xf32>
    %34 = arith.mulf %29, %29 : vector<8x16xf32>
    %35 = arith.addf %33, %34 : vector<8x16xf32>
    %36 = arith.mulf %30, %30 : vector<8x16xf32>
    %37 = arith.addf %35, %36 : vector<8x16xf32>
    %cst_21 = arith.constant 9.99999997E-7 : f32
    %38 = vector.broadcast %cst_21 : f32 to vector<8x16xf32>
    %39 = arith.addf %37, %38 : vector<8x16xf32>
    %40 = math.rsqrt %39 : vector<8x16xf32>
    %41 = vector.extract_strided_slice %25 {offsets = [0, 0], sizes = [1, 16], strides = [1, 1]} : vector<1x64xf32> to vector<1x16xf32>
    %42 = vector.extract_strided_slice %25 {offsets = [0, 16], sizes = [1, 16], strides = [1, 1]} : vector<1x64xf32> to vector<1x16xf32>
    %43 = vector.extract_strided_slice %25 {offsets = [0, 32], sizes = [1, 16], strides = [1, 1]} : vector<1x64xf32> to vector<1x16xf32>
    %44 = vector.extract_strided_slice %25 {offsets = [0, 48], sizes = [1, 16], strides = [1, 1]} : vector<1x64xf32> to vector<1x16xf32>
    %45 = vector.extract_strided_slice %26 {offsets = [0, 0], sizes = [1, 16], strides = [1, 1]} : vector<1x64xf32> to vector<1x16xf32>
    %46 = vector.extract_strided_slice %26 {offsets = [0, 16], sizes = [1, 16], strides = [1, 1]} : vector<1x64xf32> to vector<1x16xf32>
    %47 = vector.extract_strided_slice %26 {offsets = [0, 32], sizes = [1, 16], strides = [1, 1]} : vector<1x64xf32> to vector<1x16xf32>
    %48 = vector.extract_strided_slice %26 {offsets = [0, 48], sizes = [1, 16], strides = [1, 1]} : vector<1x64xf32> to vector<1x16xf32>
    %49 = arith.mulf %27, %40 : vector<8x16xf32>
    %50 = vector.broadcast %41 : vector<1x16xf32> to vector<8x16xf32>
    %51 = arith.mulf %50, %49 : vector<8x16xf32>
    %52 = vector.broadcast %45 : vector<1x16xf32> to vector<8x16xf32>
    %53 = arith.addf %51, %52 : vector<8x16xf32>
    %54 = arith.mulf %28, %40 : vector<8x16xf32>
    %55 = vector.broadcast %42 : vector<1x16xf32> to vector<8x16xf32>
    %56 = arith.mulf %55, %54 : vector<8x16xf32>
    %57 = vector.broadcast %46 : vector<1x16xf32> to vector<8x16xf32>
    %58 = arith.addf %56, %57 : vector<8x16xf32>
    %59 = arith.mulf %29, %40 : vector<8x16xf32>
    %60 = vector.broadcast %43 : vector<1x16xf32> to vector<8x16xf32>
    %61 = arith.mulf %60, %59 : vector<8x16xf32>
    %62 = vector.broadcast %47 : vector<1x16xf32> to vector<8x16xf32>
    %63 = arith.addf %61, %62 : vector<8x16xf32>
    %64 = arith.mulf %30, %40 : vector<8x16xf32>
    %65 = vector.broadcast %44 : vector<1x16xf32> to vector<8x16xf32>
    %66 = arith.mulf %65, %64 : vector<8x16xf32>
    %67 = vector.broadcast %48 : vector<1x16xf32> to vector<8x16xf32>
    %68 = arith.addf %66, %67 : vector<8x16xf32>
    %69 = tpu.concatenate %53, %58, %63, %68 in 1 : vector<8x16xf32>, vector<8x16xf32>, vector<8x16xf32>, vector<8x16xf32> -> vector<8x64xf32>
    %c0_22 = arith.constant 0 : index
    %c0_23 = arith.constant 0 : index
    %c0_24 = arith.constant 0 : index
    %70 = vector.load %arg8[%c0_22, %c0_23, %c0_24] : memref<1x8x64xf32, #tpu.memory_space<vmem>>, vector<1x8x64xf32>
    %71 = vector.shape_cast %70 : vector<1x8x64xf32> to vector<8x64xf32>
    %72 = vector.shape_cast %69 : vector<8x64xf32> to vector<1x8x64xf32>
    tpu.vector_store %arg8[%c0_22, %c0_23, %c0_24], %72 {strides = array<i32>} : memref<1x8x64xf32, #tpu.memory_space<vmem>>, vector<1x8x64xf32>,
    return
  }
  func.func @transform_0(%arg0: i32, %arg1: i32) -> (i32, i32, i32) {
    %c0_i32 = arith.constant 0 : i32
    %c0_i32_0 = arith.constant 0 : i32
    return %arg0, %arg1, %c0_i32 : i32, i32, i32
  }
  func.func @transform_1(%arg0: i32, %arg1: i32) -> (i32, i32, i32) {
    %c0_i32 = arith.constant 0 : i32
    %c0_i32_0 = arith.constant 0 : i32
    %c0_i32_1 = arith.constant 0 : i32
    return %arg0, %c0_i32, %c0_i32_0 : i32, i32, i32
  }
  func.func @transform_2(%arg0: i32, %arg1: i32) -> (i32, i32, i32) {
    %c0_i32 = arith.constant 0 : i32
    %c0_i32_0 = arith.constant 0 : i32
    %c0_i32_1 = arith.constant 0 : i32
    return %arg0, %c0_i32, %c0_i32_0 : i32, i32, i32
  }
  func.func @transform_3(%arg0: i32, %arg1: i32) -> (i32, i32, i32) {
    %c0_i32 = arith.constant 0 : i32
    %c0_i32_0 = arith.constant 0 : i32
    return %arg0, %arg1, %c0_i32 : i32, i32, i32
  }
  func.func @transform_4(%arg0: i32, %arg1: i32) -> (i32, i32) {
    %c0_i32 = arith.constant 0 : i32
    %c0_i32_0 = arith.constant 0 : i32
    %c0_i32_1 = arith.constant 0 : i32
    return %c0_i32, %c0_i32_0 : i32, i32
  }
  func.func @transform_5(%arg0: i32, %arg1: i32) -> (i32, i32) {
    %c0_i32 = arith.constant 0 : i32
    %c0_i32_0 = arith.constant 0 : i32
    %c0_i32_1 = arith.constant 0 : i32
    return %c0_i32, %c0_i32_0 : i32, i32
  }
  func.func @transform_6(%arg0: i32, %arg1: i32) -> (i32, i32, i32) {
    %c0_i32 = arith.constant 0 : i32
    %c0_i32_0 = arith.constant 0 : i32
    return %arg0, %arg1, %c0_i32 : i32, i32, i32
  }
  func.func @transform_7(%arg0: i32, %arg1: i32) -> (i32, i32, i32) {
    %c0_i32 = arith.constant 0 : i32
    %c0_i32_0 = arith.constant 0 : i32
    return %arg0, %arg1, %c0_i32 : i32, i32, i32
  }
}

module attributes {stable_mosaic.version = 11 : i64} {
  func.func @quat_to_real_proj_kernel(%arg0: i32, %arg1: i32, %arg2: memref<16x64xf32, #tpu.memory_space<vmem>>, %arg3: memref<16x32xbf16, #tpu.memory_space<vmem>>, %arg4: memref<1x32xf32, #tpu.memory_space<vmem>>, %arg5: memref<16x32xf32, #tpu.memory_space<vmem>>) attributes {dimension_semantics = [#tpu.dimension_semantics<parallel>, #tpu.dimension_semantics<parallel>], iteration_bounds = array<i64: 1, 1>, scalar_prefetch = 0 : i64, scratch_operands = 0 : i64, tpu.core_type = #tpu.core_type<tc>, window_params = [{transform_indices = @transform_0, window_bounds = array<i64: 16, 64>}, {transform_indices = @transform_1, window_bounds = array<i64: 16, 32>}, {transform_indices = @transform_2, window_bounds = array<i64: 1, 32>}, {transform_indices = @transform_3, window_bounds = array<i64: 16, 32>}]} {
    %c0 = arith.constant 0 : index
    %c0_0 = arith.constant 0 : index
    %0 = vector.load %arg2[%c0, %c0_0] : memref<16x64xf32, #tpu.memory_space<vmem>>, vector<16x64xf32>
    %1 = vector.extract_strided_slice %0 {offsets = [0, 0], sizes = [16, 16], strides = [1, 1]} : vector<16x64xf32> to vector<16x16xf32>
    %2 = vector.extract_strided_slice %0 {offsets = [0, 16], sizes = [16, 16], strides = [1, 1]} : vector<16x64xf32> to vector<16x16xf32>
    %3 = vector.extract_strided_slice %0 {offsets = [0, 32], sizes = [16, 16], strides = [1, 1]} : vector<16x64xf32> to vector<16x16xf32>
    %4 = vector.extract_strided_slice %0 {offsets = [0, 48], sizes = [16, 16], strides = [1, 1]} : vector<16x64xf32> to vector<16x16xf32>
    %5 = arith.mulf %1, %1 : vector<16x16xf32>
    %6 = arith.mulf %2, %2 : vector<16x16xf32>
    %7 = arith.addf %5, %6 : vector<16x16xf32>
    %8 = arith.mulf %3, %3 : vector<16x16xf32>
    %9 = arith.addf %7, %8 : vector<16x16xf32>
    %10 = arith.mulf %4, %4 : vector<16x16xf32>
    %11 = arith.addf %9, %10 : vector<16x16xf32>
    %12 = math.sqrt %11 : vector<16x16xf32>
    %13 = arith.truncf %12 : vector<16x16xf32> to vector<16x16xbf16>
    %c0_1 = arith.constant 0 : index
    %c0_2 = arith.constant 0 : index
    %14 = vector.load %arg3[%c0_1, %c0_2] : memref<16x32xbf16, #tpu.memory_space<vmem>>, vector<16x32xbf16>
    %cst = arith.constant dense<0.000000e+00> : vector<16x32xf32>
    %15 = tpu.matmul %13, %14, %cst {dimension_numbers = #tpu.dot_dimension_numbers<[1], [0], [0], [1], [0, 0, 1, 1], [], []>} : vector<16x16xbf16>, vector<16x32xbf16>, vector<16x32xf32> -> vector<16x32xf32>
    %c0_3 = arith.constant 0 : index
    %c0_4 = arith.constant 0 : index
    %16 = vector.load %arg4[%c0_3, %c0_4] : memref<1x32xf32, #tpu.memory_space<vmem>>, vector<1x32xf32>
    %17 = vector.broadcast %16 : vector<1x32xf32> to vector<16x32xf32>
    %18 = arith.addf %15, %17 : vector<16x32xf32>
    %c0_5 = arith.constant 0 : index
    %c0_6 = arith.constant 0 : index
    %19 = vector.load %arg5[%c0_5, %c0_6] : memref<16x32xf32, #tpu.memory_space<vmem>>, vector<16x32xf32>
    tpu.vector_store %arg5[%c0_5, %c0_6], %18 {strides = array<i32>} : memref<16x32xf32, #tpu.memory_space<vmem>>, vector<16x32xf32>,
    return
  }
  func.func @transform_0(%arg0: i32, %arg1: i32) -> (i32, i32) {
    %c0_i32 = arith.constant 0 : i32
    %c0_i32_0 = arith.constant 0 : i32
    return %arg0, %c0_i32 : i32, i32
  }
  func.func @transform_1(%arg0: i32, %arg1: i32) -> (i32, i32) {
    %c0_i32 = arith.constant 0 : i32
    %c0_i32_0 = arith.constant 0 : i32
    return %c0_i32, %arg1 : i32, i32
  }
  func.func @transform_2(%arg0: i32, %arg1: i32) -> (i32, i32) {
    %c0_i32 = arith.constant 0 : i32
    %c0_i32_0 = arith.constant 0 : i32
    return %c0_i32, %arg1 : i32, i32
  }
  func.func @transform_3(%arg0: i32, %arg1: i32) -> (i32, i32) {
    %c0_i32 = arith.constant 0 : i32
    return %arg0, %arg1 : i32, i32
  }
}

</mosaic_0001>

<bundles_post_ra>
// kernel: quaternion_transformer_forward.11
= control target key start
LH: loop header
LB: loop body
LE: loop exit
PB: predicated region body
PF: predicated region fallthrough
CT: control target
= control target key end

     0   :  { %9 = vsyncpa [#allocation3], 0  ;;  %s592_s0 = inlined_call_operand.hbm [shape: f32[16,64], index: 0, kind: input, shape index: {}]   ;;  %s593_s1 = inlined_call_operand.hbm [shape: bf16[64,128], index: 1, kind: input, shape index: {}]   ;;  %s594_s2 = inlined_call_operand.hbm [shape: f32[1,128], index: 2, kind: input, shape index: {}]   ;;  %s595_s3 = inlined_call_operand.hbm [shape: f32[1,32], index: 3, kind: input, shape index: {}]   ;;  %s596_s4 = inlined_call_operand.hbm [shape: bf16[16,128], index: 4, kind: output, shape index: {}]  }
   0x1   :  { %10 = vsyncpa [#allocation6], 0 }
   0x2   :  { %11 = vsyncpa [#allocation9], 0 }
   0x3   :  { %12 = vsyncpa [#allocation4], 0  ;;  %s457_s15 = smov [#allocation5]   ;;  %s339_s19 = scalar_lea.hbm %s593_s1, 512 }
   0x4   :  { %s30_s16 = sshll.u32 %s457_s15, 4  ;;  %p340_p0 = scmp.ne.s32.totalorder %s593_s1, %s339_s19  ;;  %s31_s16 = int_to_ptr.vmem [resolvable:$true] %s30_s16 }
   0x5   :  { %p343_p1 = scmp.lt.u32.totalorder %s339_s19, %s593_s1 }
   0x7   :  { %p345_p2 = pnand %p343_p1, %p340_p0 }
   0x9   :  { %348 = shalt.err (!%p345_p2)
}
   0xa   :  { %s349_s24 = scalar_lea.vmem %s31_s16, 512  ;;  %p354_p4 = scmp.lt.s32.totalorder %s31_s16, %s31_s16 }
   0xb   :  { %p350_p3 = scmp.ne.s32.totalorder %s31_s16, %s349_s24  ;;  %p355_p5 = scmp.lt.s32.totalorder %s349_s24, %s349_s24 }
   0xd   :  { %p356_p6 = por %p355_p5, %p354_p4 }
   0xf   :  { %p357_p7 = pnand %p356_p6, %p350_p3 }
  0x11   :  { %360 = shalt.err (!%p357_p7)
}
  0x12   :  { %s458_s25 = smov 64   ;;  %s459_s26 = smov 4  }
  0x13   :  { %36 = dma.hbm_to_vmem [thread:$0]  %s593_s1, 512, %s31_s16, [#allocation6], %s458_s25, %s458_s25, %s459_s26  }
  0x14   :  { %s460_s29 = smov [#allocation2]   ;;  %s361_s7 = scalar_lea.hbm %s592_s0, 256 }
  0x15   :  { %s18_s30 = sshll.u32 %s460_s29, 4  ;;  %p362_p8 = scmp.ne.s32.totalorder %s592_s0, %s361_s7  ;;  %s19_s30 = int_to_ptr.vmem [resolvable:$true] %s18_s30 }
  0x16   :  { %p365_p9 = scmp.lt.u32.totalorder %s361_s7, %s592_s0 }
  0x18   :  { %p367_p10 = pnand %p365_p9, %p362_p8 }
  0x1a   :  { %370 = shalt.err (!%p367_p10)
}
  0x1b   :  { %s371_s12 = scalar_lea.vmem %s19_s30, 256  ;;  %p376_p12 = scmp.lt.s32.totalorder %s19_s30, %s19_s30 }
  0x1c   :  { %p372_p11 = scmp.ne.s32.totalorder %s19_s30, %s371_s12  ;;  %p377_p13 = scmp.lt.s32.totalorder %s371_s12, %s371_s12 }
  0x1e   :  { %p378_p0 = por %p377_p13, %p376_p12 }
  0x20   :  { %p379_p1 = pnand %p378_p0, %p372_p11 }
  0x22   :  { %382 = shalt.err (!%p379_p1)
}
  0x23   :  { %s461_s1 = smov 128   ;;  %s462_s13 = smov 8  }
  0x24   :  { %24 = dma.hbm_to_vmem [thread:$0]  %s592_s0, 256, %s19_s30, [#allocation3], %s461_s1, %s461_s1, %s462_s13  }
  0x25   :  { %s463_s16 = smov [#allocation7]   ;;  %s464_s18 = smov [#allocation8]  }
  0x26   :  { %s43_s17 = sshll.u32 %s463_s16, 4  ;;  %s53_s19 = sshll.u32 %s464_s18, 4  ;;  %s44_s17 = int_to_ptr.vmem [resolvable:$true] %s43_s17  ;;  %s54_s19 = int_to_ptr.vmem [resolvable:$true] %s53_s19 }
  0x27   :  { %s383_s22 = scalar_lea.hbm %s594_s2, 16 }
  0x28   :  { %p384_p2 = scmp.ne.s32.totalorder %s594_s2, %s383_s22  ;;  %p387_p3 = scmp.lt.u32.totalorder %s383_s22, %s594_s2 }
  0x2a   :  { %p389_p4 = pnand %p387_p3, %p384_p2 }
  0x2c   :  { %392 = shalt.err (!%p389_p4)
}
  0x2d   :  { %s393_s0 = scalar_lea.vmem %s44_s17, 16  ;;  %s397_s29 = scalar_lea.vmem %s44_s17, 32 }
  0x2e   :  { %p394_p5 = scmp.ne.s32.totalorder %s44_s17, %s393_s0  ;;  %p398_p6 = scmp.lt.s32.totalorder %s44_s17, %s44_s17 }
  0x2f   :  { %p399_p7 = scmp.lt.s32.totalorder %s397_s29, %s393_s0 }
  0x31   :  { %p400_p8 = por %p399_p7, %p398_p6 }
  0x33   :  { %p401_p9 = pnand %p400_p8, %p394_p5 }
  0x35   :  { %404 = shalt.err (!%p401_p9)
}
  0x36   :  { %46 = dma.hbm_to_vmem [thread:$0]  %s594_s2, 16, %s44_s17, [#allocation6]  }
  0x37   :  { %s405_s8 = scalar_lea.hbm %s595_s3, 16 }
  0x38   :  { %p406_p10 = scmp.ne.s32.totalorder %s595_s3, %s405_s8  ;;  %p409_p11 = scmp.lt.u32.totalorder %s405_s8, %s595_s3 }
  0x3a   :  { %p411_p12 = pnand %p409_p11, %p406_p10 }
  0x3c   :  { %414 = shalt.err (!%p411_p12)
}
  0x3d   :  { %s415_s1 = scalar_lea.vmem %s54_s19, 16  ;;  %s419_s13 = scalar_lea.vmem %s54_s19, 32 }
  0x3e   :  { %p416_p13 = scmp.ne.s32.totalorder %s54_s19, %s415_s1  ;;  %p420_p0 = scmp.lt.s32.totalorder %s54_s19, %s54_s19 }
  0x3f   :  { %p421_p1 = scmp.lt.s32.totalorder %s419_s13, %s415_s1 }
  0x41   :  { %p422_p2 = por %p421_p1, %p420_p0 }
  0x43   :  { %p423_p3 = pnand %p422_p2, %p416_p13 }
  0x45   :  { %426 = shalt.err (!%p423_p3)
}
  0x46   :  { %56 = dma.hbm_to_vmem [thread:$0]  %s595_s3, 16, %s54_s19, [#allocation9]  }
  0x47   :  { %449 = dma.done.wait [#allocation3], 256  }
  0x48   :  { %450 = vsyncadd [#allocation3], 4294967040 }
  0x49   :  { %451 = dma.done.wait [#allocation6], 528  }
  0x4a   :  { %452 = vsyncadd [#allocation6], 4294966768 }
  0x4b   :  { %453 = dma.done.wait [#allocation9], 16  }
  0x4c   :  { %454 = vsyncadd [#allocation9], 4294967280  ;;  %v465_v0 = vmov 0.0   ;;  %vm466_vm0 = vmmov 0   ;;  %v327_v1 = vld [vmem:[#allocation5] sm:$0xff]   ;;  %v328_v2 = vld [vmem:[#allocation5 + $0x8] sm:$0xff]  }
  0x4d   :  { %302 = vmatprep.subr.bf16.mxu0 %v465_v0  ;;  %310 = vmatprep.mubr.msk.bf16.mxu0 %vm466_vm0, %v465_v0  ;;  %v329_v3 = vld [vmem:[#allocation5 + $0x10] sm:$0xff]   ;;  %v330_v4 = vld [vmem:[#allocation5 + $0x18] sm:$0xff]   ;;  %vm112_vm1 = vcmask 523264   ;;  %v281_v8 = vld [vmem:[#allocation7] ss:$0 sm:$0xff]  ;;  %s467_s3 = smov 96  }
  0x4e   :  { %303 = vmatpush3.bf16.msra.mxu0 %v327_v1  ;;  %v70_v5 = vld [vmem:[#allocation2] sm:$0xff]  ;;  %v71_v6 = vld [vmem:[#allocation2 + $0x8] sm:$0xff]  ;;  %s468_s15 = smov 32   ;;  %v287_v41 = vld [vmem:[#allocation8] ss:$0 sm:$0xff]  ;;  %vm244_vm6 = vcmask 261120  }
  0x4f   :  { %304 = vmatprep.subr.bf16.mxu0 %v465_v0  ;;  %v72_v7 = vpack.c.bf16 %v71_v6, %v70_v5  ;;  %vm249_vm7 = vcmask 785408   ;;  %s469_s16 = smov [#allocation10]  }
  0x50   :  { %s267_s17 = sshll.u32 %s469_s16, 4  ;;  %s268_s17 = int_to_ptr.vmem [resolvable:$true] %s267_s17 }
  0x51   :  { %s427_s18 = scalar_lea.vmem %s268_s17, 128  ;;  %p432_p5 = scmp.lt.s32.totalorder %s268_s17, %s268_s17 }
  0x52   :  { %305 = vmatpush3.bf16.msra.mxu0 %v328_v2  ;;  %p428_p4 = scmp.ne.s32.totalorder %s268_s17, %s427_s18  ;;  %p433_p6 = scmp.lt.s32.totalorder %s427_s18, %s427_s18 }
  0x53   :  { %306 = vmatprep.subr.bf16.mxu0 %v465_v0 }
  0x54   :  { %p434_p7 = por %p433_p6, %p432_p5 }
  0x56   :  { %307 = vmatpush3.bf16.msra.mxu0 %v329_v3  ;;  %p435_p8 = pnand %p434_p7, %p428_p4 }
  0x57   :  { %308 = vmatprep.subr.bf16.mxu0 %v465_v0 }
  0x5a   :  { %309 = vmatpush3.bf16.msra.mxu0 %v330_v4 }
  0x5d   :  { %311 = vmatmul.mubr.msk.bf16.vlgmr.msra.gmra.mrb[0].mxu0 %vm112_vm1, %v72_v7 }
 0x130   :  { %v150_v9 = vpop.f32.mrb[0].mxu0 }
 0x131   :  { %v547_v10 = vadd.f32 %v281_v8, %v150_v9  ;;  %v312_v11 = vpop.f32.mrb[1].mxu0 }
 0x132   :  { %v153_v12 = vpop.f32.mrb[2].mxu0 }
 0x133   :  { %v549_v13 = vadd.f32 %v281_v8, %v153_v12  ;;  %v313_v14 = vpop.f32.mrb[3].mxu0  ;;  %v158_v15 = vmul.f32 %v547_v10, %v547_v10 }
 0x135   :  { %170 = vrot.lane.b32.xlu1 %v158_v15, %s458_s25  ;;  %162 = vrot.lane.b32.xlu0 %v158_v15, %s467_s3  ;;  %v159_v16 = vmul.f32 %v549_v13, %v549_v13 }
 0x139   :  { %172 = vrot.lane.b32.xlu1 %v159_v16, %s458_s25  ;;  %164 = vrot.lane.b32.xlu0 %v159_v16, %s467_s3 }
 0x13d   :  { %180 = vrot.lane.b32.xlu1 %v159_v16, %s468_s15  ;;  %178 = vrot.lane.b32.xlu0 %v158_v15, %s468_s15 }
 0x1a7   :  { %v171_v17 = vpop.permute.xlu1 %170  ;;  %v163_v18 = vpop.permute.xlu0 %162 }
 0x1a8   :  { %v168_v19 = vadd.f32 %v163_v18, %v158_v15 }
 0x1aa   :  { %v176_v24 = vadd.f32 %v171_v17, %v168_v19 }
 0x1ab   :  { %v173_v20 = vpop.permute.xlu1 %172  ;;  %v165_v21 = vpop.permute.xlu0 %164 }
 0x1ac   :  { %v169_v22 = vadd.f32 %v165_v21, %v159_v16 }
 0x1ae   :  { %v177_v23 = vadd.f32 %v173_v20, %v169_v22 }
 0x1af   :  { %v181_v25 = vpop.permute.xlu1 %180  ;;  %v179_v26 = vpop.permute.xlu0 %178 }
 0x1b0   :  { %v185_v27 = vadd.f32 %v181_v25, %v177_v23  ;;  %v184_v28 = vadd.f32 %v179_v26, %v176_v24 }
 0x1b2   :  { %331 = vrsqrt.f32 %v185_v27  ;;  %vm195_vm2 = vcmp.eq.f32.partialorder %v185_v27, inf  ;;  %v198_v32 = vand.u32 2147483648, %v185_v27  ;;  %vm197_vm3 = vcmp.eq.f32.partialorder %v185_v27, 0.0 }
 0x1b3   :  { %333 = vrsqrt.f32 %v184_v28  ;;  %vm188_vm4 = vcmp.eq.f32.partialorder %v184_v28, inf  ;;  %v191_v35 = vand.u32 2147483648, %v184_v28  ;;  %vm190_vm5 = vcmp.eq.f32.partialorder %v184_v28, 0.0 }
 0x1bc   :  { %v332_v29 = vpop.eup %331 }
 0x1bd   :  { %v334_v30 = vpop.eup %333  ;;  %v194_v31 = vmul.f32 %v332_v29, %v185_v27 }
 0x1be   :  { %v187_v33 = vmul.f32 %v334_v30, %v184_v28 }
 0x1bf   :  { %v196_v34 = vsel %vm195_vm2, %v185_v27, %v194_v31 }
 0x1c0   :  { %v199_v36 = vsel %vm197_vm3, %v198_v32, %v196_v34  ;;  %v189_v37 = vsel %vm188_vm4, %v184_v28, %v187_v33 }
 0x1c1   :  { %v211_v38 = vadd.f32 1e-06, %v199_v36  ;;  %v192_v39 = vsel %vm190_vm5, %v191_v35, %v189_v37  ;;  %v207_v42 = vadd.f32 %v287_v41, %v199_v36 }
 0x1c2   :  { %v210_v40 = vadd.f32 1e-06, %v192_v39  ;;  %v206_v43 = vadd.f32 %v287_v41, %v192_v39 }
 0x1c3   :  { %335 = vrcp.f32 %v211_v38  ;;  %v209_v44 = vmax.f32 %v207_v42, 0.0 }
 0x1c4   :  { %337 = vrcp.f32 %v210_v40  ;;  %v208_v46 = vmax.f32 %v206_v43, 0.0 }
 0x1cd   :  { %v336_v45 = vpop.eup %335 }
 0x1ce   :  { %v338_v47 = vpop.eup %337  ;;  %v215_v48 = vmul.f32 %v336_v45, %v209_v44 }
 0x1cf   :  { %v214_v49 = vmul.f32 %v338_v47, %v208_v46 }
 0x1d0   :  { %222 = vrot.lane.b32.xlu1 %v215_v48, %s468_s15  ;;  %v217_v57 = vmul.f32 %v215_v48, %v549_v13 }
 0x1d1   :  { %220 = vrot.lane.b32.xlu0 %v214_v49, %s468_s15  ;;  %v216_v59 = vmul.f32 %v214_v49, %v547_v10 }
 0x1d4   :  { %230 = vrot.lane.b32.xlu1 %v215_v48, %s458_s25 }
 0x1d5   :  { %228 = vrot.lane.b32.xlu0 %v214_v49, %s458_s25 }
 0x1d8   :  { %238 = vrot.lane.b32.xlu1 %v215_v48, %s467_s3 }
 0x1d9   :  { %236 = vrot.lane.b32.xlu0 %v214_v49, %s467_s3 }
 0x242   :  { %v223_v50 = vpop.permute.xlu1 %222 }
 0x243   :  { %v221_v51 = vpop.permute.xlu0 %220  ;;  %v227_v53 = vmul.f32 %v223_v50, %v549_v13 }
 0x244   :  { %v226_v55 = vmul.f32 %v221_v51, %v547_v10 }
 0x245   :  { %v246_v61 = vsel %vm244_vm6, %v217_v57, %v227_v53 }
 0x246   :  { %v231_v52 = vpop.permute.xlu1 %230  ;;  %v245_v0 = vsel %vm244_vm6, %v216_v59, %v226_v55 }
 0x247   :  { %v229_v54 = vpop.permute.xlu0 %228  ;;  %v235_v56 = vmul.f32 %v231_v52, %v549_v13 }
 0x248   :  { %v234_v58 = vmul.f32 %v229_v54, %v547_v10 }
 0x249   :  { %v248_v1 = vsel %vm112_vm1, %v246_v61, %v235_v56 }
 0x24a   :  { %v239_v60 = vpop.permute.xlu1 %238  ;;  %v247_v3 = vsel %vm112_vm1, %v245_v0, %v234_v58 }
 0x24b   :  { %v243_v62 = vmul.f32 %v239_v60, %v549_v13  ;;  %v237_v63 = vpop.permute.xlu0 %236 }
 0x24c   :  { %v242_v2 = vmul.f32 %v237_v63, %v547_v10 }
 0x24d   :  { %v251_v4 = vsel %vm249_vm7, %v248_v1, %v243_v62 }
 0x24e   :  { %v250_v5 = vsel %vm249_vm7, %v247_v3, %v242_v2 }
 0x24f   :  { %v295_v6 = vpack.c.bf16 %v251_v4, %v250_v5 }
 0x251   :  { %296 = vst [vmem:[#allocation10] sm:$0xff] %v295_v6  }
 0x252   :  { %438 = shalt.err (!%p435_p8)
}
 0x253   :  { %s439_s21 = scalar_lea.hbm %s596_s4, 128 }
 0x254   :  { %p440_p9 = scmp.ne.s32.totalorder %s596_s4, %s439_s21  ;;  %p443_p10 = scmp.lt.u32.totalorder %s439_s21, %s596_s4 }
 0x256   :  { %p445_p11 = pnand %p443_p10, %p440_p9 }
 0x258   :  { %448 = shalt.err (!%p445_p11)
}
 0x259   :  { %273 = dma.vmem_to_hbm [thread:$0]  %s268_s17, 128, %s596_s4, [#allocation4], %s458_s25, %s458_s25, %s459_s26  }
 0x25a   :  { %455 = dma.done.wait [#allocation4], 128  }
 0x25b   :  { %456 = vsyncadd [#allocation4], 4294967168 }
 0x25c   :  { %277 = vsyncpa [#allocation3], 1 }
 0x25d   :  { %278 = vsyncpa [#allocation6], 1 }
 0x25e   :  { %279 = vsyncpa [#allocation9], 1 }
 0x25f   :  { %280 = vsyncpa [#allocation4], 1 }

// kernel: quaternion_transformer_forward.12
= control target key start
LH: loop header
LB: loop body
LE: loop exit
PB: predicated region body
PF: predicated region fallthrough
CT: control target
= control target key end

     0   :  { %11 = vsyncpa [#allocation3], 0  ;;  %s751_s0 = inlined_call_operand.hbm [shape: bf16[16,128], index: 0, kind: input, shape index: {}]   ;;  %s752_s1 = inlined_call_operand.hbm [shape: bf16[128,64], index: 1, kind: input, shape index: {}]   ;;  %s753_s2 = inlined_call_operand.hbm [shape: f32[1,64], index: 2, kind: input, shape index: {}]   ;;  %s754_s3 = inlined_call_operand.hbm [shape: f32[16,64], index: 3, kind: input, shape index: {}]   ;;  %s755_s4 = inlined_call_operand.hbm [shape: f32[1,64], index: 4, kind: input, shape index: {}]   ;;  %s756_s5 = inlined_call_operand.hbm [shape: f32[1,64], index: 5, kind: input, shape index: {}]   ;;  %s757_s6 = inlined_call_operand.hbm [shape: f32[16,64], index: 6, kind: output, shape index: {}]  }
   0x1   :  { %12 = vsyncpa [#allocation6], 0 }
   0x2   :  { %13 = vsyncpa [#allocation9], 0 }
   0x3   :  { %14 = vsyncpa [#allocation12], 0 }
   0x4   :  { %15 = vsyncpa [#allocation4], 0  ;;  %s584_s21 = smov [#allocation5]   ;;  %s585_s23 = smov [#allocation8]  }
   0x5   :  { %s33_s22 = sshll.u32 %s584_s21, 4  ;;  %s55_s24 = sshll.u32 %s585_s23, 4  ;;  %s34_s22 = int_to_ptr.vmem [resolvable:$true] %s33_s22  ;;  %s638_s24 = int_to_ptr.vmem [resolvable:$true] %s55_s24 }
   0x6   :  { %s420_s27 = scalar_lea.hbm %s752_s1, 1024 }
   0x7   :  { %p421_p0 = scmp.ne.s32.totalorder %s752_s1, %s420_s27  ;;  %p424_p1 = scmp.lt.u32.totalorder %s420_s27, %s752_s1 }
   0x9   :  { %p426_p2 = pnand %p424_p1, %p421_p0 }
   0xb   :  { %429 = shalt.err (!%p426_p2)
}
   0xc   :  { %s430_s8 = scalar_lea.vmem %s34_s22, 1024  ;;  %p435_p4 = scmp.lt.s32.totalorder %s34_s22, %s34_s22 }
   0xd   :  { %p431_p3 = scmp.ne.s32.totalorder %s34_s22, %s430_s8  ;;  %p436_p5 = scmp.lt.s32.totalorder %s430_s8, %s430_s8 }
   0xf   :  { %p437_p6 = por %p436_p5, %p435_p4 }
  0x11   :  { %p438_p7 = pnand %p437_p6, %p431_p3 }
  0x13   :  { %441 = shalt.err (!%p438_p7)
}
  0x14   :  { %s586_s9 = smov 64   ;;  %s587_s10 = smov 4  }
  0x15   :  { %39 = dma.hbm_to_vmem [thread:$0]  %s752_s1, 1024, %s34_s22, [#allocation6], %s586_s9, %s586_s9, %s587_s10  }
  0x16   :  { %s442_s15 = scalar_lea.hbm %s754_s3, 256 }
  0x17   :  { %p443_p8 = scmp.ne.s32.totalorder %s754_s3, %s442_s15  ;;  %p446_p9 = scmp.lt.u32.totalorder %s442_s15, %s754_s3 }
  0x19   :  { %p448_p10 = pnand %p446_p9, %p443_p8 }
  0x1b   :  { %451 = shalt.err (!%p448_p10)
}
  0x1c   :  { %s452_s20 = scalar_lea.vmem %s638_s24, 256  ;;  %p457_p12 = scmp.lt.s32.totalorder %s638_s24, %s638_s24 }
  0x1d   :  { %p453_p11 = scmp.ne.s32.totalorder %s638_s24, %s452_s20  ;;  %p458_p13 = scmp.lt.s32.totalorder %s452_s20, %s452_s20 }
  0x1f   :  { %p459_p0 = por %p458_p13, %p457_p12 }
  0x21   :  { %p460_p1 = pnand %p459_p0, %p453_p11 }
  0x23   :  { %463 = shalt.err (!%p460_p1)
}
  0x24   :  { %s588_s1 = smov 128   ;;  %s589_s21 = smov 8  }
  0x25   :  { %61 = dma.hbm_to_vmem [thread:$0]  %s754_s3, 256, %s638_s24, [#allocation9], %s588_s1, %s588_s1, %s589_s21  }
  0x26   :  { %s590_s25 = smov [#allocation2]   ;;  %s591_s27 = smov [#allocation7]  }
  0x27   :  { %s21_s26 = sshll.u32 %s590_s25, 4  ;;  %s46_s28 = sshll.u32 %s591_s27, 4  ;;  %s22_s26 = int_to_ptr.vmem [resolvable:$true] %s21_s26  ;;  %s47_s28 = int_to_ptr.vmem [resolvable:$true] %s46_s28 }
  0x28   :  { %s464_s7 = scalar_lea.hbm %s751_s0, 128 }
  0x29   :  { %p465_p2 = scmp.ne.s32.totalorder %s751_s0, %s464_s7  ;;  %p468_p3 = scmp.lt.u32.totalorder %s464_s7, %s751_s0 }
  0x2b   :  { %p470_p4 = pnand %p468_p3, %p465_p2 }
  0x2d   :  { %473 = shalt.err (!%p470_p4)
}
  0x2e   :  { %s474_s3 = scalar_lea.vmem %s22_s26, 128  ;;  %p479_p6 = scmp.lt.s32.totalorder %s22_s26, %s22_s26 }
  0x2f   :  { %p475_p5 = scmp.ne.s32.totalorder %s22_s26, %s474_s3  ;;  %p480_p7 = scmp.lt.s32.totalorder %s474_s3, %s474_s3 }
  0x31   :  { %p481_p8 = por %p480_p7, %p479_p6 }
  0x33   :  { %p482_p9 = pnand %p481_p8, %p475_p5 }
  0x35   :  { %485 = shalt.err (!%p482_p9)
}
  0x36   :  { %27 = dma.hbm_to_vmem [thread:$0]  %s751_s0, 128, %s22_s26, [#allocation3], %s586_s9, %s586_s9, %s587_s10  }
  0x37   :  { %s486_s17 = scalar_lea.hbm %s753_s2, 16 }
  0x38   :  { %p487_p10 = scmp.ne.s32.totalorder %s753_s2, %s486_s17  ;;  %p490_p11 = scmp.lt.u32.totalorder %s486_s17, %s753_s2 }
  0x3a   :  { %p492_p12 = pnand %p490_p11, %p487_p10 }
  0x3c   :  { %495 = shalt.err (!%p492_p12)
}
  0x3d   :  { %s496_s23 = scalar_lea.vmem %s47_s28, 16  ;;  %s500_s25 = scalar_lea.vmem %s47_s28, 32 }
  0x3e   :  { %p497_p13 = scmp.ne.s32.totalorder %s47_s28, %s496_s23  ;;  %p501_p0 = scmp.lt.s32.totalorder %s47_s28, %s47_s28 }
  0x3f   :  { %p502_p1 = scmp.lt.s32.totalorder %s500_s25, %s496_s23 }
  0x41   :  { %p503_p2 = por %p502_p1, %p501_p0 }
  0x43   :  { %p504_p3 = pnand %p503_p2, %p497_p13 }
  0x45   :  { %507 = shalt.err (!%p504_p3)
}
  0x46   :  { %49 = dma.hbm_to_vmem [thread:$0]  %s753_s2, 16, %s47_s28, [#allocation6]  }
  0x47   :  { %s592_s10 = smov [#allocation10]   ;;  %s593_s27 = smov [#allocation11]  }
  0x48   :  { %s68_s26 = sshll.u32 %s592_s10, 4  ;;  %s78_s29 = sshll.u32 %s593_s27, 4  ;;  %s69_s26 = int_to_ptr.vmem [resolvable:$true] %s68_s26  ;;  %s79_s29 = int_to_ptr.vmem [resolvable:$true] %s78_s29 }
  0x49   :  { %s508_s8 = scalar_lea.hbm %s755_s4, 16 }
  0x4a   :  { %p509_p4 = scmp.ne.s32.totalorder %s755_s4, %s508_s8  ;;  %p512_p5 = scmp.lt.u32.totalorder %s508_s8, %s755_s4 }
  0x4c   :  { %p514_p6 = pnand %p512_p5, %p509_p4 }
  0x4e   :  { %517 = shalt.err (!%p514_p6)
}
  0x4f   :  { %s518_s2 = scalar_lea.vmem %s69_s26, 16  ;;  %s522_s28 = scalar_lea.vmem %s69_s26, 32 }
  0x50   :  { %p519_p7 = scmp.ne.s32.totalorder %s69_s26, %s518_s2  ;;  %p523_p8 = scmp.lt.s32.totalorder %s69_s26, %s69_s26 }
  0x51   :  { %p524_p9 = scmp.lt.s32.totalorder %s522_s28, %s518_s2 }
  0x53   :  { %p525_p10 = por %p524_p9, %p523_p8 }
  0x55   :  { %p526_p11 = pnand %p525_p10, %p519_p7 }
  0x57   :  { %529 = shalt.err (!%p526_p11)
}
  0x58   :  { %71 = dma.hbm_to_vmem [thread:$0]  %s755_s4, 16, %s69_s26, [#allocation9]  }
  0x59   :  { %s530_s17 = scalar_lea.hbm %s756_s5, 16 }
  0x5a   :  { %p531_p12 = scmp.ne.s32.totalorder %s756_s5, %s530_s17  ;;  %p534_p13 = scmp.lt.u32.totalorder %s530_s17, %s756_s5 }
  0x5c   :  { %p536_p0 = pnand %p534_p13, %p531_p12 }
  0x5e   :  { %539 = shalt.err (!%p536_p0)
}
  0x5f   :  { %s540_s23 = scalar_lea.vmem %s79_s29, 16  ;;  %s544_s25 = scalar_lea.vmem %s79_s29, 32 }
  0x60   :  { %p541_p1 = scmp.ne.s32.totalorder %s79_s29, %s540_s23  ;;  %p545_p2 = scmp.lt.s32.totalorder %s79_s29, %s79_s29 }
  0x61   :  { %p546_p3 = scmp.lt.s32.totalorder %s544_s25, %s540_s23 }
  0x63   :  { %p547_p4 = por %p546_p3, %p545_p2 }
  0x65   :  { %p548_p5 = pnand %p547_p4, %p541_p1 }
  0x67   :  { %551 = shalt.err (!%p548_p5)
}
  0x68   :  { %81 = dma.hbm_to_vmem [thread:$0]  %s756_s5, 16, %s79_s29, [#allocation12]  }
  0x69   :  { %574 = dma.done.wait [#allocation3], 128  }
  0x6a   :  { %575 = vsyncadd [#allocation3], 4294967168 }
  0x6b   :  { %576 = dma.done.wait [#allocation6], 1040  }
  0x6c   :  { %577 = vsyncadd [#allocation6], 4294966256 }
  0x6d   :  { %578 = dma.done.wait [#allocation9], 272  }
  0x6e   :  { %579 = vsyncadd [#allocation9], 4294967024 }
  0x6f   :  { %580 = dma.done.wait [#allocation12], 16  }
  0x70   :  { %581 = vsyncadd [#allocation12], 4294967280  ;;  %v594_v0 = vmov 0.0   ;;  %vm595_vm0 = vmmov 0   ;;  %v407_v1 = vld [vmem:[#allocation5] sm:$0xff]   ;;  %v408_v2 = vld [vmem:[#allocation5 + $0x8] sm:$0xff]  }
  0x71   :  { %368 = vmatprep.subr.bf16.mxu0 %v594_v0  ;;  %384 = vmatprep.mubr.msk.bf16.mxu0 %vm595_vm0, %v594_v0  ;;  %v409_v3 = vld [vmem:[#allocation5 + $0x10] sm:$0xff]   ;;  %v410_v4 = vld [vmem:[#allocation5 + $0x18] sm:$0xff]   ;;  %v411_v5 = vld [vmem:[#allocation5 + $0x20] sm:$0xff]   ;;  %s596_s5 = smov 96   ;;  %s597_s9 = smov 112   ;;  %vm315_vm1 = vcmask 130048  }
  0x72   :  { %369 = vmatpush3.bf16.msra.mxu0 %v407_v1  ;;  %v412_v6 = vld [vmem:[#allocation5 + $0x28] sm:$0xff]   ;;  %v413_v7 = vld [vmem:[#allocation5 + $0x30] sm:$0xff]   ;;  %v414_v8 = vld [vmem:[#allocation5 + $0x38] sm:$0xff]   ;;  %s598_s10 = smov 80   ;;  %s599_s26 = smov 16   ;;  %vm318_vm2 = vcmask 261120  }
  0x73   :  { %370 = vmatprep.subr.bf16.mxu0 %v594_v0  ;;  %v415_v9 = vld [vmem:[#allocation2] sm:$0xff]   ;;  %v347_v10 = vld [vmem:[#allocation7] ss:$0 sm:$0xff]  ;;  %v221_v12 = vld [vmem:[#allocation8] sm:$0xff]  ;;  %s600_s27 = smov 32   ;;  %s601_s29 = smov 48  }
  0x74   :  { %v222_v16 = vld [vmem:[#allocation8 + $0x8] sm:$0xff]  ;;  %v357_v44 = vld [vmem:[#allocation10] ss:$0 sm:$0xff]  ;;  %v358_v54 = vld [vmem:[#allocation11] ss:$0 sm:$0xff]  ;;  %vm321_vm3 = vcmask 392192  }
  0x75   :  { %s602_s30 = smov [#allocation13]   ;;  %vm324_vm4 = vcmask 523264  }
  0x76   :  { %371 = vmatpush3.bf16.msra.mxu0 %v408_v2  ;;  %s332_s7 = sshll.u32 %s602_s30, 4  ;;  %s333_s7 = int_to_ptr.vmem [resolvable:$true] %s332_s7 }
  0x77   :  { %372 = vmatprep.subr.bf16.mxu0 %v594_v0  ;;  %s552_s8 = scalar_lea.vmem %s333_s7, 256  ;;  %p557_p7 = scmp.lt.s32.totalorder %s333_s7, %s333_s7 }
  0x78   :  { %p553_p6 = scmp.ne.s32.totalorder %s333_s7, %s552_s8  ;;  %p558_p8 = scmp.lt.s32.totalorder %s552_s8, %s552_s8 }
  0x7a   :  { %373 = vmatpush3.bf16.msra.mxu0 %v409_v3  ;;  %p559_p9 = por %p558_p8, %p557_p7 }
  0x7b   :  { %374 = vmatprep.subr.bf16.mxu0 %v594_v0 }
  0x7c   :  { %p560_p10 = pnand %p559_p9, %p553_p6 }
  0x7e   :  { %375 = vmatpush3.bf16.msra.mxu0 %v410_v4 }
  0x7f   :  { %376 = vmatprep.subr.bf16.mxu0 %v594_v0 }
  0x82   :  { %377 = vmatpush3.bf16.msra.mxu0 %v411_v5 }
  0x83   :  { %378 = vmatprep.subr.bf16.mxu0 %v594_v0 }
  0x86   :  { %379 = vmatpush3.bf16.msra.mxu0 %v412_v6 }
  0x87   :  { %380 = vmatprep.subr.bf16.mxu0 %v594_v0 }
  0x8a   :  { %381 = vmatpush3.bf16.msra.mxu0 %v413_v7 }
  0x8b   :  { %382 = vmatprep.subr.bf16.mxu0 %v594_v0 }
  0x8e   :  { %383 = vmatpush3.bf16.msra.mxu0 %v414_v8 }
  0x91   :  { %385 = vmatmul.mubr.bf16.vlgmr.msra.gmra.mrb[0].mxu0 %v415_v9 }
 0x164   :  { %v214_v11 = vpop.f32.mrb[0].mxu0 }
 0x165   :  { %v215_v13 = vadd.f32 %v347_v10, %v214_v11  ;;  %v386_v14 = vpop.f32.mrb[1].mxu0 }
 0x166   :  { %v217_v15 = vpop.f32.mrb[2].mxu0 }
 0x167   :  { %v726_v17 = vadd.f32 %v221_v12, %v215_v13  ;;  %v218_v18 = vadd.f32 %v347_v10, %v217_v15  ;;  %v387_v19 = vpop.f32.mrb[3].mxu0 }
 0x169   :  { %v224_v20 = vadd.f32 %v222_v16, %v218_v18  ;;  %v227_v21 = vmul.f32 %v726_v17, %v726_v17 }
 0x16b   :  { %239 = vrot.lane.b32.xlu1 %v227_v21, %s596_s5  ;;  %231 = vrot.lane.b32.xlu0 %v227_v21, %s597_s9  ;;  %v228_v22 = vmul.f32 %v224_v20, %v224_v20 }
 0x16f   :  { %241 = vrot.lane.b32.xlu1 %v228_v22, %s596_s5  ;;  %233 = vrot.lane.b32.xlu0 %v228_v22, %s597_s9 }
 0x173   :  { %249 = vrot.lane.b32.xlu1 %v228_v22, %s598_s10  ;;  %247 = vrot.lane.b32.xlu0 %v227_v21, %s598_s10 }
 0x1dd   :  { %v240_v23 = vpop.permute.xlu1 %239  ;;  %v232_v24 = vpop.permute.xlu0 %231 }
 0x1de   :  { %v237_v25 = vadd.f32 %v232_v24, %v227_v21 }
 0x1e0   :  { %v245_v30 = vadd.f32 %v240_v23, %v237_v25 }
 0x1e1   :  { %v242_v26 = vpop.permute.xlu1 %241  ;;  %v234_v27 = vpop.permute.xlu0 %233 }
 0x1e2   :  { %v238_v28 = vadd.f32 %v234_v27, %v228_v22 }
 0x1e4   :  { %v246_v29 = vadd.f32 %v242_v26, %v238_v28 }
 0x1e5   :  { %v250_v31 = vpop.permute.xlu1 %249  ;;  %v248_v32 = vpop.permute.xlu0 %247 }
 0x1e6   :  { %v254_v33 = vadd.f32 %v250_v31, %v246_v29  ;;  %v253_v34 = vadd.f32 %v248_v32, %v245_v30 }
 0x1e8   :  { %v256_v35 = vadd.f32 1e-06, %v254_v33  ;;  %v255_v36 = vadd.f32 1e-06, %v253_v34 }
 0x1ea   :  { %416 = vrsqrt.f32 %v256_v35 }
 0x1eb   :  { %418 = vrsqrt.f32 %v255_v36 }
 0x1f4   :  { %v417_v37 = vpop.eup %416 }
 0x1f5   :  { %v419_v38 = vpop.eup %418  ;;  %281 = vrot.lane.b32.xlu1 %v417_v37, %s599_s26  ;;  %v260_v43 = vmul.f32 %v417_v37, %v224_v20 }
 0x1f6   :  { %279 = vrot.lane.b32.xlu0 %v419_v38, %s599_s26  ;;  %v259_v45 = vmul.f32 %v419_v38, %v726_v17 }
 0x1f7   :  { %v268_v52 = vmul.f32 %v357_v44, %v260_v43 }
 0x1f8   :  { %v267_v55 = vmul.f32 %v357_v44, %v259_v45 }
 0x1f9   :  { %293 = vrot.lane.b32.xlu1 %v417_v37, %s600_s27  ;;  %v276_v0 = vadd.f32 %v358_v54, %v268_v52 }
 0x1fa   :  { %291 = vrot.lane.b32.xlu0 %v419_v38, %s600_s27  ;;  %v275_v3 = vadd.f32 %v358_v54, %v267_v55 }
 0x1fd   :  { %305 = vrot.lane.b32.xlu1 %v417_v37, %s601_s29 }
 0x1fe   :  { %303 = vrot.lane.b32.xlu0 %v419_v38, %s601_s29 }
 0x267   :  { %v282_v39 = vpop.permute.xlu1 %281 }
 0x268   :  { %v286_v40 = vmul.f32 %v282_v39, %v224_v20  ;;  %v280_v41 = vpop.permute.xlu0 %279 }
 0x269   :  { %v285_v42 = vmul.f32 %v280_v41, %v726_v17 }
 0x26a   :  { %v288_v47 = vmul.f32 %v357_v44, %v286_v40 }
 0x26b   :  { %v294_v46 = vpop.permute.xlu1 %293  ;;  %v287_v50 = vmul.f32 %v357_v44, %v285_v42 }
 0x26c   :  { %v298_v48 = vmul.f32 %v294_v46, %v224_v20  ;;  %v292_v49 = vpop.permute.xlu0 %291  ;;  %v290_v58 = vadd.f32 %v358_v54, %v288_v47 }
 0x26d   :  { %v297_v51 = vmul.f32 %v292_v49, %v726_v17  ;;  %v289_v61 = vadd.f32 %v358_v54, %v287_v50 }
 0x26e   :  { %v300_v53 = vmul.f32 %v357_v44, %v298_v48  ;;  %v317_v5 = vsel %vm315_vm1, %v276_v0, %v290_v58 }
 0x26f   :  { %v299_v56 = vmul.f32 %v357_v44, %v297_v51  ;;  %v306_v57 = vpop.permute.xlu1 %305  ;;  %v316_v7 = vsel %vm315_vm1, %v275_v3, %v289_v61 }
 0x270   :  { %v310_v59 = vmul.f32 %v306_v57, %v224_v20  ;;  %v304_v60 = vpop.permute.xlu0 %303  ;;  %v302_v62 = vadd.f32 %v358_v54, %v300_v53 }
 0x271   :  { %v309_v63 = vmul.f32 %v304_v60, %v726_v17  ;;  %v301_v1 = vadd.f32 %v358_v54, %v299_v56 }
 0x272   :  { %v312_v2 = vmul.f32 %v357_v44, %v310_v59  ;;  %v320_v9 = vsel %vm318_vm2, %v317_v5, %v302_v62 }
 0x273   :  { %v311_v4 = vmul.f32 %v357_v44, %v309_v63  ;;  %v319_v10 = vsel %vm318_vm2, %v316_v7, %v301_v1 }
 0x274   :  { %v314_v6 = vadd.f32 %v358_v54, %v312_v2 }
 0x275   :  { %v313_v8 = vadd.f32 %v358_v54, %v311_v4 }
 0x276   :  { %v323_v11 = vsel %vm321_vm3, %v320_v9, %v314_v6 }
 0x277   :  { %v322_v12 = vsel %vm321_vm3, %v319_v10, %v313_v8  ;;  %326 = vst.msk [vmem:[#allocation13 + $0x8] sm:$0xff] %vm324_vm4, %v323_v11 }
 0x278   :  { %325 = vst.msk [vmem:[#allocation13] sm:$0xff] %vm324_vm4, %v322_v12 }
 0x279   :  { %563 = shalt.err (!%p560_p10)
}
 0x27a   :  { %s564_s13 = scalar_lea.hbm %s757_s6, 256 }
 0x27b   :  { %p565_p11 = scmp.ne.s32.totalorder %s757_s6, %s564_s13  ;;  %p568_p12 = scmp.lt.u32.totalorder %s564_s13, %s757_s6 }
 0x27d   :  { %p570_p13 = pnand %p568_p12, %p565_p11 }
 0x27f   :  { %573 = shalt.err (!%p570_p13)
}
 0x280   :  { %338 = dma.vmem_to_hbm [thread:$0]  %s333_s7, 256, %s757_s6, [#allocation4], %s588_s1, %s588_s1, %s589_s21  }
 0x281   :  { %582 = dma.done.wait [#allocation4], 256  }
 0x282   :  { %583 = vsyncadd [#allocation4], 4294967040 }
 0x283   :  { %342 = vsyncpa [#allocation3], 1 }
 0x284   :  { %343 = vsyncpa [#allocation6], 1 }
 0x285   :  { %344 = vsyncpa [#allocation9], 1 }
 0x286   :  { %345 = vsyncpa [#allocation12], 1 }
 0x287   :  { %346 = vsyncpa [#allocation4], 1 }

// kernel: quaternion_transformer_forward.9
= control target key start
LH: loop header
LB: loop body
LE: loop exit
PB: predicated region body
PF: predicated region fallthrough
CT: control target
= control target key end

     0   :  { %s1900_s0 = inlined_call_operand.hbm [shape: f32[2,8,64], index: 0, kind: input, shape index: {}]   ;;  %s1901_s1 = inlined_call_operand.hbm [shape: f32[8,16], index: 1, kind: input, shape index: {}]   ;;  %s1902_s2 = inlined_call_operand.hbm [shape: f32[8,16], index: 2, kind: input, shape index: {}]   ;;  %s1903_s3 = inlined_call_operand.hbm [shape: bf16[64,192], index: 3, kind: input, shape index: {}]   ;;  %s1904_s4 = inlined_call_operand.hbm [shape: f32[1,192], index: 4, kind: input, shape index: {}]   ;;  %s1905_s5 = inlined_call_operand.hbm [shape: f32[2,8,64], index: 5, kind: output, shape index: {0}]   ;;  %s1906_s6 = inlined_call_operand.hbm [shape: bf16[2,8,64], index: 6, kind: output, shape index: {1}]   ;;  %s1907_s7 = inlined_call_operand.hbm [shape: bf16[2,8,64], index: 7, kind: output, shape index: {2}]   ;;  %s1908_s8 = inlined_call_operand.hbm [shape: bf16[2,8,64], index: 8, kind: output, shape index: {3}]  }
   0x1   :  { %1914 = sst [smem:[#allocation23_spill]] %s1900_s0 }
   0x2   :  { %1915 = sst [smem:[#allocation24_spill]] %s1901_s1 }
   0x3   :  { %1916 = sst [smem:[#allocation25_spill]] %s1902_s2 }
   0x4   :  { %1917 = sst [smem:[#allocation26_spill]] %s1903_s3 }
   0x5   :  { %14 = vsyncpa [#allocation3], 0 }
   0x6   :  { %16 = vsyncpa [#allocation3 + $0x1], 0 }
   0x7   :  { %17 = vsyncpa [#allocation6], 0 }
   0x8   :  { %18 = vsyncpa [#allocation9], 0 }
   0x9   :  { %19 = vsyncpa [#allocation4], 0 }
   0xa   :  { %21 = vsyncpa [#allocation4 + $0x1], 0 }
   0xb   :  { %22 = vsyncpa [#allocation13], 0 }
   0xc   :  { %24 = vsyncpa [#allocation13 + $0x1], 0 }
   0xd   :  { %25 = vsyncpa [#allocation16], 0 }
   0xe   :  { %27 = vsyncpa [#allocation16 + $0x1], 0  ;;  %s1499_s27 = smov 0   ;;  %s1501_s28 = smov 0  }
   0xf   :  { %s1503_s29 = smov 0   ;;  %s1505_s30 = smov 0  }
  0x10   :  { %s1507_s9 = smov 0   ;;  %s1509_s10 = smov 0  }
  0x11 LB: > { %s1530_s11 = sadd.s32 4294967295, %s1433_s10   ;;  %p930_p0 = scmp.ge.s32.totalorder %s1433_s10, 1  ;;  %s1433_s10 = sphi %s1509_s10, %s33_s10   ;;  %s1429_s9 = sphi %s1507_s9, %s1945_s9   ;;  %s1425_s30 = sphi %s1505_s30, %s1944_s30   ;;  %s1421_s29 = sphi %s1503_s29, %s1943_s29   ;;  %s1417_s28 = sphi %s1501_s28, %s1942_s28   ;;  %s1413_s27 = sphi %s1499_s27, %s1941_s27  }
  0x12   : > { %p1909_p1 = scmp.eq.s32.totalorder %s1530_s11, 0  ;;  %p284_p2 = scmp.lt.s32.totalorder %s1433_s10, 3 }
  0x13   : > { %s1435_s13 = smov [#allocation5]   ;;  %s1436_s15 = smov [#allocation8]  }
  0x14   : > { %p1535_p3 = pnand %p930_p0, %p284_p2  ;;  %s299_s14 = sshll.u32 %s1435_s13, 4  ;;  %s300_s14 = int_to_ptr.vmem [resolvable:$true] %s299_s14 }
  0x15   : > { %s322_s16 = sshll.u32 %s1436_s15, 4  ;;  %s1437_s18 = smov [#allocation7]   ;;  %s1548_s16 = int_to_ptr.vmem [resolvable:$true] %s322_s16 }
  0x16   : > { %s1918_s12 = scalar_select %p1535_p3, 1, 0 }
  0x17   : > { %p995_p5 = pneg %p1535_p3  ;;  %s1550_s19 = sshll.u32 %s1437_s18, 4  ;;  %s313_s19 = int_to_ptr.vmem [resolvable:$true] %s1550_s19 }
  0x18   : > { %s1920_s1 = sld [smem:[#allocation24_spill]] }
  0x19   : > { %p1544_p6 = pnand %p995_p5, %p1909_p1 }
  0x1b   : > { %p1560_p8 = pneg %p1544_p6 }
  0x1e   : > { %s1109_s22 = scalar_lea.hbm %s1920_s1, 128 }
  0x1f   : > { %p1110_p7 = scmp.ne.s32.totalorder %s1920_s1, %s1109_s22  ;;  %p1116_p11 = scmp.lt.u32.totalorder %s1109_s22, %s1920_s1 }
  0x21   : > { %p1112_p9 = pnand %p1560_p8, %p1110_p7 }
  0x23   : > { %p1113_p10 = pneg %p1112_p9 }
  0x25   : > { %p1118_p12 = pnand %p1116_p11, %p1113_p10 }
  0x27   : > { %1121 = shalt.err (!%p1118_p12)
}
  0x28   : > { %s1122_s15 = scalar_lea.vmem %s300_s14, 128  ;;  %p1130_p5 = scmp.lt.s32.totalorder %s300_s14, %s300_s14 }
  0x29   : > { %p1123_p13 = scmp.ne.s32.totalorder %s300_s14, %s1122_s15  ;;  %p1131_p4 = scmp.lt.s32.totalorder %s1122_s15, %s1122_s15 }
  0x2b   : > { %p1125_p0 = pnand %p1123_p13, %p1560_p8  ;;  %p1132_p1 = por %p1131_p4, %p1130_p5 }
  0x2d   : > { %p1126_p2 = pneg %p1125_p0 }
  0x2f   : > { %p1133_p3 = pnand %p1132_p1, %p1126_p2 }
  0x31   : > { %1136 = shalt.err (!%p1133_p3)
}
  0x32   : > { %998 = dma.hbm_to_vmem [thread:$0]  (!%p1544_p6), %s1920_s1, 128, %s300_s14, [#allocation6]  }
  0x33   : > { %s1922_s3 = sld [smem:[#allocation26_spill]] }
  0x39   : > { %s1137_s23 = scalar_lea.hbm %s1922_s3, 1024 }
  0x3a   : > { %p1138_p7 = scmp.ne.s32.totalorder %s1922_s3, %s1137_s23  ;;  %p1144_p1 = scmp.lt.u32.totalorder %s1137_s23, %s1922_s3 }
  0x3c   : > { %p1140_p9 = pnand %p1138_p7, %p1560_p8 }
  0x3e   : > { %p1141_p4 = pneg %p1140_p9 }
  0x40   : > { %p1146_p3 = pnand %p1144_p1, %p1141_p4 }
  0x42   : > { %1149 = shalt.err (!%p1146_p3)
}
  0x43   : > { %s1150_s14 = scalar_lea.vmem %s1548_s16, 1024  ;;  %p1158_p13 = scmp.lt.s32.totalorder %s1548_s16, %s1548_s16 }
  0x44   : > { %p1151_p10 = scmp.ne.s32.totalorder %s1548_s16, %s1150_s14  ;;  %p1159_p0 = scmp.lt.s32.totalorder %s1150_s14, %s1150_s14 }
  0x46   : > { %p1153_p11 = pnand %p1151_p10, %p1560_p8  ;;  %p1160_p2 = por %p1159_p0, %p1158_p13 }
  0x48   : > { %p1154_p12 = pneg %p1153_p11 }
  0x4a   : > { %p1161_p5 = pnand %p1160_p2, %p1154_p12 }
  0x4c   : > { %1164 = shalt.err (!%p1161_p5)
}
  0x4d   : > { %s1438_s18 = smov 128   ;;  %s1439_s20 = smov 8  }
  0x4e   : > { %1004 = dma.hbm_to_vmem [thread:$0]  (!%p1544_p6), %s1922_s3, 1024, %s1548_s16, [#allocation9], %s1438_s18, %s1438_s18, %s1439_s20  }
  0x4f   : > { %s1923_s2 = sld [smem:[#allocation25_spill]] }
  0x55   : > { %s1165_s26 = scalar_lea.hbm %s1923_s2, 128 }
  0x56   : > { %p1166_p7 = scmp.ne.s32.totalorder %s1923_s2, %s1165_s26  ;;  %p1172_p1 = scmp.lt.u32.totalorder %s1165_s26, %s1923_s2 }
  0x58   : > { %p1168_p9 = pnand %p1166_p7, %p1560_p8 }
  0x5a   : > { %p1169_p4 = pneg %p1168_p9 }
  0x5c   : > { %p1174_p3 = pnand %p1172_p1, %p1169_p4 }
  0x5e   : > { %1177 = shalt.err (!%p1174_p3)
}
  0x5f   : > { %s1178_s21 = scalar_lea.vmem %s313_s19, 128  ;;  %p1186_p13 = scmp.lt.s32.totalorder %s313_s19, %s313_s19 }
  0x60   : > { %p1179_p10 = scmp.ne.s32.totalorder %s313_s19, %s1178_s21  ;;  %p1187_p0 = scmp.lt.s32.totalorder %s1178_s21, %s1178_s21 }
  0x62   : > { %p1181_p11 = pnand %p1179_p10, %p1560_p8  ;;  %p1188_p2 = por %p1187_p0, %p1186_p13 }
  0x64   : > { %p1182_p12 = pneg %p1181_p11 }
  0x66   : > { %p1189_p5 = pnand %p1188_p2, %p1182_p12 }
  0x68   : > { %1192 = shalt.err (!%p1189_p5)
}
  0x69   : > { %1001 = dma.hbm_to_vmem [thread:$0]  (!%p1544_p6), %s1923_s2, 128, %s313_s19, [#allocation6]  }
  0x6a   : > { %s1440_s1 = smov [#allocation10]   ;;  %s1193_s24 = scalar_lea.hbm %s1904_s4, 32 }
  0x6b   : > { %s336_s20 = sshll.u32 %s1440_s1, 4  ;;  %p1194_p7 = scmp.ne.s32.totalorder %s1904_s4, %s1193_s24  ;;  %s337_s20 = int_to_ptr.vmem [resolvable:$true] %s336_s20 }
  0x6c   : > { %p1200_p1 = scmp.lt.u32.totalorder %s1193_s24, %s1904_s4 }
  0x6d   : > { %p1196_p9 = pnand %p1194_p7, %p1560_p8 }
  0x6f   : > { %p1197_p4 = pneg %p1196_p9 }
  0x71   : > { %p1202_p3 = pnand %p1200_p1, %p1197_p4 }
  0x73   : > { %1205 = shalt.err (!%p1202_p3)
}
  0x74   : > { %s1206_s19 = scalar_lea.vmem %s337_s20, 32  ;;  %p1214_p13 = scmp.lt.s32.totalorder %s337_s20, %s337_s20 }
  0x75   : > { %p1207_p10 = scmp.ne.s32.totalorder %s337_s20, %s1206_s19  ;;  %p1215_p0 = scmp.lt.s32.totalorder %s1206_s19, %s1206_s19 }
  0x77   : > { %p1209_p11 = pnand %p1207_p10, %p1560_p8  ;;  %p1216_p2 = por %p1215_p0, %p1214_p13 }
  0x79   : > { %p1210_p12 = pneg %p1209_p11 }
  0x7b   : > { %p1217_p5 = pnand %p1216_p2, %p1210_p12 }
  0x7d   : > { %1220 = shalt.err (!%p1217_p5)
}
  0x7e   : > { %1007 = dma.hbm_to_vmem [thread:$0]  (!%p1544_p6), %s1904_s4, 32, %s337_s20, [#allocation9]  }
  0x7f   : > { %s1911_s25 = sadd.s32 4294967294, %s1433_s10   ;;  %s45_s18 = sadd.s32 1, %s1429_s9 }
  0x80   : > { %p47_p8 = scmp.ge.s32.totalorder %s45_s18, 2  ;;  %s54_s17 = sadd.s32 1, %s1421_s29 }
  0x81   : > { %p61_p7 = scmp.ne.s32.totalorder %s1421_s29, %s1417_s28  ;;  %p62_p9 = scmp.eq.s32.totalorder %s1433_s10, 0 }
  0x82   : > { %s1947_s18 = smov (%p47_p8, %s45_s18), 0  ;;  %p67_p1 = scmp.ne.s32.totalorder %s1417_s28, %s1413_s27 }
  0x83   : > { %p1644_p4 = por %p62_p9, %p61_p7  ;;  %s49_s20 = ssub.s32 %s1429_s9, %s1947_s18 }
  0x84   : > { %p187_p6 = scmp.eq.s32.totalorder %s1530_s11, 1  ;;  %p52_p3 = scmp.eq.s32.totalorder %s49_s20, 0 }
  0x85   : > { %p1925_p10 = scmp.eq.s32.totalorder %s1530_s11, 0  ;;  %p193_p13 = scmp.eq.s32.totalorder %s1911_s25, 1 }
  0x86   : > { %p1659_p12 = por %p187_p6, %p61_p7  ;;  %p1029_p2 = scmp.lt.s32.totalorder %s1433_s10, 2 }
  0x87   : > { %p1655_p11 = por %p1925_p10, %p67_p1  ;;  %p1668_p0 = por %p193_p13, %p67_p1 }
  0x88   : > { %s1927_s23 = scalar_select %p1659_p12, 1, 0 }
  0x89   : > { %s1666_s24 = scalar_select %p52_p3, %s1421_s29, %s54_s17  }
  0x8a   : > { %s1928_s26 = scalar_select %p1668_p0, 1, 0 }
  0x8b   : > { %s347_s13 = sand.u32 1, %s1421_s29   ;;  %s937_s15 = sshll.u32 %s1429_s9, 7 }
  0x8c   : > { %s936_s14 = sshll.u32 %s347_s13, 3  ;;  %s1929_s0 = sld [smem:[#allocation23_spill]] }
  0x8d   : > { %s351_s20 = scalar_lea.vmem [#allocation2], %s936_s14  ;;  %p1682_p5 = pnand %p1029_p2, %p1644_p4 }
  0x8e   : > { %s359_s17 = sshll.u32 %s351_s20, 4  ;;  %s348_s2 = scalar_lea.sflag [#allocation3], %s347_s13  ;;  %s1686_s17 = int_to_ptr.vmem [resolvable:$true] %s359_s17 }
  0x8f   : > { %p1223_p7 = pneg %p1682_p5 }
  0x92   : > { %s1678_s16 = scalar_lea.hbm %s1929_s0, %s937_s15  ;;  %s1226_s1 = scalar_lea.hbm %s1929_s0, 256 }
  0x93   : > { %s1221_s3 = scalar_lea.hbm %s1678_s16, 128  ;;  %p1227_p4 = scmp.lt.u32.totalorder %s1678_s16, %s1929_s0 }
  0x94   : > { %p1222_p8 = scmp.ne.s32.totalorder %s1678_s16, %s1221_s3  ;;  %p1228_p6 = scmp.lt.u32.totalorder %s1226_s1, %s1221_s3 }
  0x95   : > { %p1230_p10 = scmp.lt.u32.totalorder %s1221_s3, %s1678_s16 }
  0x96   : > { %p1224_p9 = pnand %p1223_p7, %p1222_p8  ;;  %p1229_p3 = por %p1228_p6, %p1227_p4 }
  0x98   : > { %p1225_p1 = pneg %p1224_p9  ;;  %p1231_p13 = por %p1230_p10, %p1229_p3 }
  0x9a   : > { %p1232_p2 = pnand %p1231_p13, %p1225_p1 }
  0x9c   : > { %1235 = shalt.err (!%p1232_p2)
}
  0x9d   : > { %s1236_s13 = scalar_lea.vmem %s1686_s17, 128  ;;  %s1441_s20 = smov [#allocation2]  }
  0x9e   : > { %p1237_p8 = scmp.ne.s32.totalorder %s1686_s17, %s1236_s13  ;;  %s1241_s15 = sshll.u32 %s1441_s20, 4  ;;  %s1242_s15 = int_to_ptr.vmem [resolvable:$false] %s1241_s15 }
  0x9f   : > { %s1243_s14 = scalar_lea.vmem %s1242_s15, 256  ;;  %p1244_p12 = scmp.lt.s32.totalorder %s1686_s17, %s1242_s15 }
  0xa0   : > { %p1239_p9 = pnand %p1237_p8, %p1223_p7  ;;  %p1245_p4 = scmp.lt.s32.totalorder %s1243_s14, %s1236_s13 }
  0xa2   : > { %p1240_p0 = pneg %p1239_p9  ;;  %p1246_p6 = por %p1245_p4, %p1244_p12 }
  0xa4   : > { %p1247_p3 = pnand %p1246_p6, %p1240_p0 }
  0xa6   : > { %1250 = shalt.err (!%p1247_p3)
}
  0xa7   : > { %1011 = dma.hbm_to_vmem [thread:$0]  (!%p1682_p5), %s1678_s16, 128, %s1686_s17, %s348_s2  }
  0xa8   : > { %p1931_p1 = scmp.ne.s32.totalorder %s1918_s12, 0 }
  0xa9   : > { %s1716_s3 = sand.u32 (!%p1931_p1), 1, %s1417_s28  }
  0xaa   : > { %368 = sbr.rel (%p1931_p1) target bundleno = 786 (0x312), region = 40  ;;  %s939_s1 = sshll.u32 (!%p1931_p1), %s1716_s3, 3 }
  0xab   : > { %s371_s19 = scalar_lea.sflag (!%p1931_p1), [#allocation3], %s1716_s3  ;;  %s374_s21 = scalar_lea.vmem (!%p1931_p1), [#allocation2], %s939_s1 }
  0xb1   : > { %1388 = dma.done.wait (%p1655_p11), %s371_s19, 128  }
  0xb2   : > { %1390 = vsyncadd (%p1655_p11), %s371_s19, 4294967168  ;;  %p1932_p12 = scmp.eq.s32.totalorder %s1530_s11, 0 }
  0xb4   : > { %1392 = dma.done.wait (%p1932_p12), [#allocation6], 256   ;;  %p1933_p0 = pmov %p1932_p12 }
  0xb6   : > { %1394 = vsyncadd (%p1933_p0), [#allocation6], 4294967040  ;;  %p1934_p5 = pmov %p1933_p0 }
  0xb7   : > { %p1935_p7 = pmov %p1933_p0 }
  0xb8   : > { %1396 = dma.done.wait (%p1934_p5), [#allocation9], 1056  }
  0xb9   : > { %1398 = vsyncadd (%p1935_p7), [#allocation9], 4294966240  ;;  %v439_v0 = vld [vmem:[%s374_s21] sm:$0xff]  ;;  %s1442_s2 = smov 112   ;;  %s1443_s12 = smov 80   ;;  %v441_v6 = vld [vmem:[#allocation7] sm:$0xff] }
  0xba   : > { %445 = vrot.lane.b32.xlu0 %v439_v0, %s1442_s2  ;;  %455 = vrot.lane.b32.xlu1 %v439_v0, %s1443_s12  ;;  %s1444_s25 = smov 96   ;;  %v1097_v1 = vld [vmem:[#allocation8 + $0x4] ss:$8 sps:$4 sm:$0xff]   ;;  %v1099_v2 = vld [vmem:[#allocation8] ss:$8 sps:$4 sm:$0xff]   ;;  %v442_v7 = vsub.f32 0.0, %v441_v6  ;;  %v469_v21 = vmul.f32 %v441_v6, %v439_v0 }
  0xbb   : > { %v1100_v3 = vld [vmem:[#allocation8 + $0x14] ss:$8 sps:$4 sm:$0xff]   ;;  %585 = vmatprep.subr.bf16.mxu0 %v1097_v1  ;;  %v1102_v4 = vld [vmem:[#allocation8 + $0x10] ss:$8 sps:$4 sm:$0xff]   ;;  %v1103_v5 = vld [vmem:[#allocation8 + $0x24] ss:$8 sps:$4 sm:$0xff]  }
  0xbc   : > { %586 = vmatpush1.bf16.msra.mxu0 %v1099_v2  ;;  %v440_v8 = vld [vmem:[#allocation5] sm:$0xff]  ;;  %v461_v9 = vmul.f32 %v442_v7, %v439_v0  ;;  %v1105_v26 = vld [vmem:[#allocation8 + $0x20] ss:$8 sps:$4 sm:$0xff]   ;;  %v1445_v47 = vmov 0   ;;  %s1446_s22 = smov 16   ;;  %s1447_s16 = smov 32  }
  0xbd   : > { %587 = vmatprep.subr.bf16.mxu0 %v1100_v3  ;;  %v443_v11 = vmul.f32 %v440_v8, %v439_v0  ;;  %v1106_v32 = vld [vmem:[#allocation8 + $0x34] ss:$8 sps:$4 sm:$0xff]   ;;  %v1108_v36 = vld [vmem:[#allocation8 + $0x30] ss:$8 sps:$4 sm:$0xff]   ;;  %617 = vmatprep.mubr.bf16.mxu0 %v1445_v47  ;;  %s1448_s17 = smov 48   ;;  %vm513_vm0 = vcmask 130048  }
  0xbe   : > { %450 = vrot.lane.b32.xlu0 %v439_v0, %s1444_s25  ;;  %vm515_vm1 = vcmask 261120   ;;  %vm517_vm2 = vcmask 392192   ;;  %vm519_vm3 = vcmask 523264   ;;  %s416_s13 = scalar_lea.vmem [#allocation11], %s939_s1  ;;  %s1737_s20 = sshll.u32 %s1716_s3, 2 }
  0xbf   : > { %s962_s15 = sshll.u32 %s1425_s30, 7  ;;  %s668_s2 = sshll.u32 %s416_s13, 4  ;;  %s1745_s2 = int_to_ptr.vmem [resolvable:$true] %s668_s2 }
  0xc0   : > { %588 = vmatpush1.bf16.msra.mxu0 %v1102_v4  ;;  %s1743_s21 = scalar_lea.hbm %s1905_s5, %s962_s15  ;;  %s639_s1 = scalar_lea.sflag [#allocation4], %s1716_s3 }
  0xc1   : > { %589 = vmatprep.subr.bf16.mxu0 %v1103_v5  ;;  %s1251_s12 = scalar_lea.vmem %s1745_s2, 128  ;;  %p1936_p10 = scmp.ne.s32.totalorder %s1927_s23, 0 }
  0xc2   : > { %p1252_p11 = scmp.ne.s32.totalorder %s1745_s2, %s1251_s12  ;;  %s1449_s25 = smov [#allocation11]  }
  0xc4   : > { %590 = vmatpush1.bf16.msra.mxu0 %v1105_v26  ;;  %p1253_p13 = pnand %p1252_p11, %p1936_p10 }
  0xc5   : > { %591 = vmatprep.subr.bf16.mxu0 %v1106_v32 }
  0xc6   : > { %p1254_p2 = pneg %p1253_p13 }
  0xc8   : > { %592 = vmatpush1.bf16.msra.mxu0 %v1108_v36 }
 0x12c   : > { %v446_v10 = vpop.permute.xlu0 %445  ;;  %v456_v12 = vpop.permute.xlu1 %455 }
 0x12d   : > { %v448_v13 = vmul.f32 %v446_v10, %v442_v7  ;;  %v460_v14 = vmul.f32 %v446_v10, %v440_v8  ;;  %v463_v15 = vmul.f32 %v456_v12, %v441_v6  ;;  %v458_v17 = vmul.f32 %v456_v12, %v440_v8 }
 0x12e   : > { %v467_v18 = vmul.f32 %v456_v12, %v442_v7  ;;  %v474_v27 = vmul.f32 %v446_v10, %v441_v6  ;;  %v530_v10 = vld [vmem:[#allocation10] sm:$0x3] }
 0x12f   : > { %v462_v16 = vadd.f32 %v461_v9, %v460_v14  ;;  %v449_v19 = vsub.f32 %v443_v11, %v448_v13 }
 0x130   : > { %v451_v20 = vpop.permute.xlu0 %450 }
 0x131   : > { %v464_v22 = vadd.f32 %v463_v15, %v462_v16  ;;  %v453_v23 = vmul.f32 %v451_v20, %v441_v6  ;;  %v465_v24 = vmul.f32 %v451_v20, %v440_v8  ;;  %v472_v25 = vmul.f32 %v451_v20, %v442_v7 }
 0x133   : > { %v454_v28 = vsub.f32 %v449_v19, %v453_v23  ;;  %v466_v29 = vsub.f32 %v464_v22, %v465_v24  ;;  %v468_v30 = vsub.f32 %v465_v24, %v467_v18  ;;  %v473_v31 = vadd.f32 %v472_v25, %v458_v17 }
 0x135   : > { %v459_v33 = vsub.f32 %v454_v28, %v458_v17  ;;  %v470_v34 = vadd.f32 %v469_v21, %v468_v30  ;;  %v475_v35 = vsub.f32 %v473_v31, %v474_v27  ;;  %v484_v39 = vmul.f32 %v466_v29, %v440_v8 }
 0x136   : > { %v478_v42 = vmul.f32 %v466_v29, %v441_v6  ;;  %v498_v56 = vmul.f32 %v466_v29, %v442_v7 }
 0x137   : > { %v471_v37 = vadd.f32 %v470_v34, %v460_v14  ;;  %v476_v38 = vadd.f32 %v475_v35, %v443_v11  ;;  %v485_v40 = vmul.f32 %v459_v33, %v441_v6  ;;  %v477_v41 = vmul.f32 %v459_v33, %v440_v8 }
 0x138   : > { %v493_v54 = vmul.f32 %v459_v33, %v442_v7 }
 0x139   : > { %v486_v43 = vadd.f32 %v485_v40, %v484_v39  ;;  %v487_v44 = vmul.f32 %v476_v38, %v442_v7  ;;  %v489_v45 = vmul.f32 %v471_v37, %v440_v8  ;;  %v491_v46 = vmul.f32 %v476_v38, %v441_v6 }
 0x13a   : > { %v482_v48 = vmul.f32 %v476_v38, %v440_v8  ;;  %v496_v49 = vmul.f32 %v471_v37, %v441_v6  ;;  %v479_v50 = vsub.f32 %v477_v41, %v478_v42  ;;  %v480_v51 = vmul.f32 %v471_v37, %v442_v7 }
 0x13b   : > { %v488_v52 = vadd.f32 %v487_v44, %v486_v43  ;;  %v492_v53 = vsub.f32 %v489_v45, %v491_v46  ;;  %v532_v7 = vlaneseq }
 0x13c   : > { %v497_v55 = vadd.f32 %v496_v49, %v482_v48  ;;  %v481_v57 = vsub.f32 %v479_v50, %v480_v51 }
 0x13d   : > { %v490_v58 = vsub.f32 %v488_v52, %v489_v45  ;;  %v494_v59 = vadd.f32 %v493_v54, %v492_v53  ;;  %v533_v8 = vshrl.u32 %v532_v7, 7 }
 0x13e   : > { %v499_v60 = vsub.f32 %v497_v55, %v498_v56  ;;  %v483_v61 = vsub.f32 %v481_v57, %v482_v48 }
 0x13f   : > { %502 = vrot.lane.b32.xlu1 %v490_v58, %s1446_s22  ;;  %v495_v62 = vadd.f32 %v494_v59, %v484_v39  ;;  %v534_v9 = vsub.s32 0, %v533_v8  ;;  %v538_v11 = vsub.s32 1, %v533_v8  ;;  %s1255_s22 = sshll.u32 %s1449_s25, 4  ;;  %s1256_s22 = int_to_ptr.vmem [resolvable:$false] %s1255_s22 }
 0x140   : > { %v500_v63 = vadd.f32 %v499_v60, %v477_v41  ;;  %p1258_p8 = scmp.lt.s32.totalorder %s1745_s2, %s1256_s22 }
 0x141   : > { %506 = vrot.lane.b32.xlu0 %v495_v62, %s1447_s16  ;;  %v535_v12 = vrot.slane %v530_v10, %v534_v9  ;;  %s1257_s16 = scalar_lea.vmem %s1256_s22, 256 }
 0x142   : > { %p1259_p9 = scmp.lt.s32.totalorder %s1257_s16, %s1251_s12 }
 0x143   : > { %510 = vrot.lane.b32.xlu1 %v500_v63, %s1448_s17 }
 0x144   : > { %p1260_p4 = por %p1259_p9, %p1258_p8 }
 0x146   : > { %p1261_p6 = pnand %p1260_p4, %p1254_p2 }
 0x1b1   : > { %v503_v0 = vpop.permute.xlu1 %502 }
 0x1b2   : > { %v514_v1 = vsel %vm513_vm0, %v483_v61, %v503_v0 }
 0x1b3   : > { %v507_v2 = vpop.permute.xlu0 %506 }
 0x1b4   : > { %v516_v3 = vsel %vm515_vm1, %v514_v1, %v507_v2 }
 0x1b5   : > { %v511_v4 = vpop.permute.xlu1 %510 }
 0x1b6   : > { %v518_v5 = vsel %vm517_vm2, %v516_v3, %v511_v4 }
 0x1b7   : > { %v521_v6 = vpack.c.bf16 %v518_v5, %v518_v5  ;;  %520 = vst.msk [vmem:[%s416_s13] sm:$0xff] %vm519_vm3, %v518_v5 }
 0x1b9   : > { %956 = vmatmul.mubr.msk.bf16.vlgmr.msra.gmra.mrb[0].mxu0 %vm519_vm3, %v521_v6 }
 0x1ba   : > { %1264 = shalt.err (!%p1261_p6)
}
 0x1bb   : > { %s1265_s17 = scalar_lea.hbm %s1743_s21, 128  ;;  %s1269_s14 = scalar_lea.hbm %s1905_s5, 256 }
 0x1bc   : > { %p1266_p3 = scmp.ne.s32.totalorder %s1743_s21, %s1265_s17  ;;  %p1270_p0 = scmp.lt.u32.totalorder %s1743_s21, %s1905_s5 }
 0x1bd   : > { %p1271_p5 = scmp.lt.u32.totalorder %s1269_s14, %s1265_s17  ;;  %p1273_p11 = scmp.lt.u32.totalorder %s1265_s17, %s1743_s21 }
 0x1be   : > { %p1267_p1 = pnand %p1266_p3, %p1936_p10 }
 0x1bf   : > { %p1272_p7 = por %p1271_p5, %p1270_p0 }
 0x1c0   : > { %p1268_p12 = pneg %p1267_p1 }
 0x1c1   : > { %p1274_p13 = por %p1273_p11, %p1272_p7 }
 0x1c3   : > { %p1275_p2 = pnand %p1274_p13, %p1268_p12 }
 0x1c5   : > { %1278 = shalt.err (!%p1275_p2)
}
 0x1c6   : > { %987 = dma.vmem_to_hbm [thread:$0]  (%p1936_p10), %s1745_s2, 128, %s1743_s21, %s639_s1   ;;  %v539_v13 = vrot.slane %v530_v10, %v538_v11  ;;  %vm627_vm4 = vcmask 519168  }
 0x1c7   : > { %s643_s12 = sand.u32 1, %s1530_s11   ;;  %s1771_s22 = sshll.u32 %s1425_s30, 6 }
 0x1c8   : > { %s423_s16 = scalar_lea.vmem [#allocation12], %s1737_s20  ;;  %s1913_s13 = scalar_lea.vmem [#allocation15], %s1737_s20 }
 0x1c9   : > { %s682_s17 = sshll.u32 %s423_s16, 4  ;;  %s710_s15 = sshll.u32 %s1913_s13, 4  ;;  %s1783_s17 = int_to_ptr.vmem [resolvable:$true] %s682_s17  ;;  %s1791_s15 = int_to_ptr.vmem [resolvable:$true] %s710_s15 }
 0x1ca   : > { %s1781_s11 = scalar_lea.hbm %s1906_s6, %s1771_s22  ;;  %s1789_s1 = scalar_lea.hbm %s1908_s8, %s1771_s22 }
 0x1cb   : > { %s1450_s19 = smov 64   ;;  %s1794_s25 = scalar_lea.sflag [#allocation13], %s643_s12 }
 0x1cc   : > { %s1279_s14 = scalar_lea.vmem %s1783_s17, 64  ;;  %s1451_s21 = smov [#allocation12]  }
 0x1cd   : > { %p1280_p8 = scmp.ne.s32.totalorder %s1783_s17, %s1279_s14  ;;  %s1283_s13 = sshll.u32 %s1451_s21, 4  ;;  %s1284_s13 = int_to_ptr.vmem [resolvable:$false] %s1283_s13 }
 0x1ce   : > { %s1285_s0 = scalar_lea.vmem %s1284_s13, 128  ;;  %p1286_p6 = scmp.lt.s32.totalorder %s1783_s17, %s1284_s13 }
 0x1cf   : > { %p1281_p9 = pnand %p1280_p8, %p1936_p10  ;;  %p1287_p3 = scmp.lt.s32.totalorder %s1285_s0, %s1279_s14 }
 0x1d1   : > { %p1282_p4 = pneg %p1281_p9  ;;  %p1288_p1 = por %p1287_p3, %p1286_p6 }
 0x1d3   : > { %p1289_p12 = pnand %p1288_p1, %p1282_p4 }
 0x28c   : > { %v619_v14 = vpop.f32.mrb[0].mxu0 }
 0x28d   : > { %v620_v15 = vadd.f32 %v619_v14, %v535_v12  ;;  %v621_v16 = vpop.f32.mrb[1].mxu0 }
 0x28e   : > { %v622_v17 = vadd.f32 %v621_v16, %v539_v13  ;;  %v623_v18 = vpop.f32.mrb[2].mxu0 }
 0x28f   : > { %v626_v19 = vpack.c.bf16 %v620_v15, %v620_v15  ;;  %v624_v20 = vpop.f32.mrb[3].mxu0 }
 0x290   : > { %v636_v21 = vpack.c.bf16 %v622_v17, %v622_v17 }
 0x291   : > { %632 = vrot.lane.b32.xlu0 %v626_v19, %s1450_s19  ;;  %628 = vst.msk [vmem:[%s423_s16] sm:$0xf] %vm627_vm4, %v626_v19 }
 0x292   : > { %1292 = shalt.err (!%p1289_p12)
}
 0x293   : > { %s1293_s12 = scalar_lea.hbm %s1781_s11, 64  ;;  %s1297_s2 = scalar_lea.hbm %s1906_s6, 128 }
 0x294   : > { %p1294_p0 = scmp.ne.s32.totalorder %s1781_s11, %s1293_s12  ;;  %p1298_p11 = scmp.lt.u32.totalorder %s1781_s11, %s1906_s6 }
 0x295   : > { %p1299_p13 = scmp.lt.u32.totalorder %s1297_s2, %s1293_s12  ;;  %p1301_p8 = scmp.lt.u32.totalorder %s1293_s12, %s1781_s11 }
 0x296   : > { %p1295_p5 = pnand %p1294_p0, %p1936_p10 }
 0x297   : > { %p1300_p2 = por %p1299_p13, %p1298_p11 }
 0x298   : > { %p1296_p7 = pneg %p1295_p5 }
 0x299   : > { %p1302_p9 = por %p1301_p8, %p1300_p2 }
 0x29b   : > { %p1303_p4 = pnand %p1302_p9, %p1296_p7 }
 0x29d   : > { %1306 = shalt.err (!%p1303_p4)
}
 0x29e   : > { %988 = dma.vmem_to_hbm [thread:$0]  (%p1936_p10), %s1783_s17, 64, %s1781_s11, %s1794_s25  }
 0x29f   : > { %s1937_s0 = scalar_lea.vmem [#allocation15], %s1737_s20  ;;  %s654_s14 = scalar_lea.sflag [#allocation16], %s1716_s3 }
 0x2a0   : > { %637 = vst.msk [vmem:[%s1937_s0] sm:$0xf] %vm627_vm4, %v636_v21  ;;  %s1307_s21 = scalar_lea.vmem %s1791_s15, 64  ;;  %s1452_s12 = smov [#allocation15]  }
 0x2a1   : > { %p1308_p6 = scmp.ne.s32.totalorder %s1791_s15, %s1307_s21  ;;  %s1311_s16 = sshll.u32 %s1452_s12, 4  ;;  %s1312_s16 = int_to_ptr.vmem [resolvable:$false] %s1311_s16 }
 0x2a2   : > { %s1313_s30 = scalar_lea.vmem %s1312_s16, 128  ;;  %p1314_p12 = scmp.lt.s32.totalorder %s1791_s15, %s1312_s16 }
 0x2a3   : > { %p1309_p3 = pnand %p1308_p6, %p1936_p10  ;;  %p1315_p0 = scmp.lt.s32.totalorder %s1313_s30, %s1307_s21 }
 0x2a5   : > { %p1310_p1 = pneg %p1309_p3  ;;  %p1316_p5 = por %p1315_p0, %p1314_p12 }
 0x2a7   : > { %p1317_p7 = pnand %p1316_p5, %p1310_p1 }
 0x2a9   : > { %1320 = shalt.err (!%p1317_p7)
}
 0x2aa   : > { %s1321_s3 = scalar_lea.hbm %s1789_s1, 64  ;;  %s1325_s2 = scalar_lea.hbm %s1908_s8, 128 }
 0x2ab   : > { %p1322_p11 = scmp.ne.s32.totalorder %s1789_s1, %s1321_s3  ;;  %p1326_p8 = scmp.lt.u32.totalorder %s1789_s1, %s1908_s8 }
 0x2ac   : > { %p1327_p9 = scmp.lt.u32.totalorder %s1325_s2, %s1321_s3  ;;  %p1329_p6 = scmp.lt.u32.totalorder %s1321_s3, %s1789_s1 }
 0x2ad   : > { %p1323_p13 = pnand %p1322_p11, %p1936_p10 }
 0x2ae   : > { %p1328_p4 = por %p1327_p9, %p1326_p8 }
 0x2af   : > { %p1324_p2 = pneg %p1323_p13 }
 0x2b0   : > { %p1330_p3 = por %p1329_p6, %p1328_p4 }
 0x2b2   : > { %p1331_p1 = pnand %p1330_p3, %p1324_p2 }
 0x2b4   : > { %1334 = shalt.err (!%p1331_p1)
}
 0x2b5   : > { %990 = dma.vmem_to_hbm [thread:$0]  (%p1936_p10), %s1791_s15, 64, %s1789_s1, %s654_s14  }
 0x2b6   : > { %s430_s0 = scalar_lea.vmem [#allocation14], %s1737_s20  ;;  %s1848_s30 = scalar_lea.hbm %s1907_s7, %s1771_s22 }
 0x2b7   : > { %s696_s21 = sshll.u32 %s430_s0, 4  ;;  %s1453_s20 = smov [#allocation14]   ;;  %s1850_s21 = int_to_ptr.vmem [resolvable:$true] %s696_s21 }
 0x2b8   : > { %s1335_s3 = scalar_lea.vmem %s1850_s21, 64  ;;  %s1339_s15 = sshll.u32 %s1453_s20, 4  ;;  %s1340_s15 = int_to_ptr.vmem [resolvable:$false] %s1339_s15 }
 0x2b9   : > { %p1336_p12 = scmp.ne.s32.totalorder %s1850_s21, %s1335_s3  ;;  %s1341_s1 = scalar_lea.vmem %s1340_s15, 128 }
 0x2ba   : > { %p1342_p7 = scmp.lt.s32.totalorder %s1850_s21, %s1340_s15  ;;  %p1343_p11 = scmp.lt.s32.totalorder %s1341_s1, %s1335_s3 }
 0x2bb   : > { %p1337_p0 = pnand %p1336_p12, %p1936_p10 }
 0x2bc   : > { %p1344_p13 = por %p1343_p11, %p1342_p7 }
 0x2bd   : > { %p1338_p5 = pneg %p1337_p0 }
 0x2bf   : > { %p1345_p2 = pnand %p1344_p13, %p1338_p5 }
 0x303   : > { %v633_v22 = vpop.permute.xlu0 %632 }
 0x304   : > { %635 = vst.msk [vmem:[%s430_s0] sm:$0xf] %vm627_vm4, %v633_v22 }
 0x305   : > { %1348 = shalt.err (!%p1345_p2)
}
 0x306   : > { %s1349_s22 = scalar_lea.hbm %s1848_s30, 64  ;;  %s1353_s11 = scalar_lea.hbm %s1907_s7, 128 }
 0x307   : > { %p1350_p8 = scmp.ne.s32.totalorder %s1848_s30, %s1349_s22  ;;  %p1354_p6 = scmp.lt.u32.totalorder %s1848_s30, %s1907_s7 }
 0x308   : > { %p1355_p3 = scmp.lt.u32.totalorder %s1353_s11, %s1349_s22  ;;  %p1357_p12 = scmp.lt.u32.totalorder %s1349_s22, %s1848_s30 }
 0x309   : > { %p1351_p9 = pnand %p1350_p8, %p1936_p10 }
 0x30a   : > { %p1356_p1 = por %p1355_p3, %p1354_p6 }
 0x30b   : > { %p1352_p4 = pneg %p1351_p9 }
 0x30c   : > { %p1358_p0 = por %p1357_p12, %p1356_p1 }
 0x30e   : > { %p1359_p5 = pnand %p1358_p0, %p1352_p4 }
 0x310   : > { %1362 = shalt.err (!%p1359_p5)
}
 0x311   : > { %989 = dma.vmem_to_hbm [thread:$0]  (%p1936_p10), %s1850_s21, 64, %s1848_s30, %s1794_s25  }
 0x312 PF: > { %s722_s13 = sand.u32 1, %s1413_s27   ;;  %p1938_p7 = scmp.ne.s32.totalorder %s1928_s26, 0 }
 0x313   : > { %p1939_p11 = scmp.ge.s32.totalorder %s1433_s10, 2  ;;  %s723_s0 = scalar_lea.sflag [#allocation4], %s722_s13 }
 0x315   : > { %p1013_p13 = pnand %p1939_p11, %p1938_p7 }
 0x317   : > { %1400 = dma.done.wait (!%p1013_p13), %s723_s0, 128  }
 0x318   : > { %1402 = vsyncadd (!%p1013_p13), %s723_s0, 4294967168  ;;  %s1940_s12 = sadd.s32 4294967294, %s1433_s10  }
 0x319   : > { %s731_s16 = sand.u32 1, %s1940_s12  }
 0x31a   : > { %s732_s3 = scalar_lea.sflag [#allocation13], %s731_s16 }
 0x31b   : > { %1404 = dma.done.wait (!%p1013_p13), %s732_s3, 128  }
 0x31c   : > { %1406 = vsyncadd (!%p1013_p13), %s732_s3, 4294967168  ;;  %s750_s23 = scalar_lea.sflag [#allocation16], %s722_s13 }
 0x31d   : > { %1408 = dma.done.wait (!%p1013_p13), %s750_s23, 64  }
 0x31e   : > { %1410 = vsyncadd (!%p1013_p13), %s750_s23, 4294967232  ;;  %s33_s10 = sadd.s32 1, %s1433_s10   ;;  %s1941_s27 = smov %s1417_s28 }
 0x31f   : > { %p30_p10 = scmp.ge.s32.totalorder %s33_s10, 4   ;;  %s1942_s28 = smov %s1421_s29 }
 0x320   : > { %s1943_s29 = smov %s1666_s24  ;;  %s1944_s30 = smov %s1429_s9 }
 0x321   : > { %s1945_s9 = smov %s1947_s18  ;;  %32 = sbr.rel (!%p30_p10) target bundleno = 17 (0x11), region = 152 }
 0x328   :  { %755 = vsyncpa [#allocation3], 1 }
 0x329   :  { %757 = vsyncpa [#allocation3 + $0x1], 1 }
 0x32a   :  { %758 = vsyncpa [#allocation6], 1 }
 0x32b   :  { %759 = vsyncpa [#allocation9], 1 }
 0x32c   :  { %760 = vsyncpa [#allocation4], 1 }
 0x32d   :  { %762 = vsyncpa [#allocation4 + $0x1], 1 }
 0x32e   :  { %763 = vsyncpa [#allocation13], 1 }
 0x32f   :  { %765 = vsyncpa [#allocation13 + $0x1], 1 }
 0x330   :  { %766 = vsyncpa [#allocation16], 1 }
 0x331   :  { %768 = vsyncpa [#allocation16 + $0x1], 1 }

// kernel: quaternion_transformer_forward.10
= control target key start
LH: loop header
LB: loop body
LE: loop exit
PB: predicated region body
PF: predicated region fallthrough
CT: control target
= control target key end

     0   :  { %s1815_s0 = inlined_call_operand.hbm [shape: bf16[2,8,64], index: 0, kind: input, shape index: {}]   ;;  %s1816_s1 = inlined_call_operand.hbm [shape: bf16[2,8,64], index: 1, kind: input, shape index: {}]   ;;  %s1817_s2 = inlined_call_operand.hbm [shape: bf16[2,8,64], index: 2, kind: input, shape index: {}]   ;;  %s1818_s3 = inlined_call_operand.hbm [shape: f32[2,8,64], index: 3, kind: input, shape index: {}]   ;;  %s1819_s4 = inlined_call_operand.hbm [shape: f32[1,64], index: 4, kind: input, shape index: {}]   ;;  %s1820_s5 = inlined_call_operand.hbm [shape: f32[1,64], index: 5, kind: input, shape index: {}]   ;;  %s1821_s6 = inlined_call_operand.hbm [shape: f32[2,8,64], index: 6, kind: output, shape index: {0}]   ;;  %s1822_s7 = inlined_call_operand.hbm [shape: f32[2,8,8], index: 7, kind: output, shape index: {1}]  }
   0x1   :  { %1840 = sst [smem:[#allocation28_spill]] %s1816_s1 }
   0x2   :  { %1841 = sst [smem:[#allocation29_spill]] %s1819_s4 }
   0x3   :  { %1842 = sst [smem:[#allocation30_spill]] %s1821_s6 }
   0x4   :  { %13 = vsyncpa [#allocation3], 0 }
   0x5   :  { %15 = vsyncpa [#allocation3 + $0x1], 0 }
   0x6   :  { %16 = vsyncpa [#allocation6], 0 }
   0x7   :  { %18 = vsyncpa [#allocation6 + $0x1], 0 }
   0x8   :  { %19 = vsyncpa [#allocation9], 0 }
   0x9   :  { %21 = vsyncpa [#allocation9 + $0x1], 0 }
   0xa   :  { %22 = vsyncpa [#allocation12], 0 }
   0xb   :  { %23 = vsyncpa [#allocation4], 0 }
   0xc   :  { %25 = vsyncpa [#allocation4 + $0x1], 0 }
   0xd   :  { %26 = vsyncpa [#allocation15], 0 }
   0xe   :  { %28 = vsyncpa [#allocation15 + $0x1], 0  ;;  %s1396_s24 = smov 0   ;;  %s1398_s25 = smov 0  }
   0xf   :  { %s1400_s26 = smov 0   ;;  %s1402_s27 = smov 0  }
  0x10   :  { %s1404_s28 = smov 0   ;;  %s1406_s29 = smov 0  }
  0x11 LB: > { %1843 = sst [smem:[#allocation23_spill]] %s1318_s24  ;;  %s1427_s30 = sadd.s32 4294967295, %s1338_s29   ;;  %s1338_s29 = sphi %s1406_s29, %s34_s29   ;;  %s1334_s28 = sphi %s1404_s28, %s1889_s28   ;;  %s1330_s27 = sphi %s1402_s27, %s1888_s27   ;;  %s1326_s26 = sphi %s1400_s26, %s1884_s26   ;;  %s1322_s25 = sphi %s1398_s25, %s1887_s25   ;;  %s1318_s24 = sphi %s1396_s24, %s1886_s24  }
  0x12   : > { %1844 = sst [smem:[#allocation24_spill]] %s1326_s26  ;;  %s867_s8 = sadd.s32 4294967294, %s1338_s29  }
  0x13   : > { %p62_p0 = scmp.ne.s32.totalorder %s1326_s26, %s1322_s25  ;;  %p68_p1 = scmp.ne.s32.totalorder %s1322_s25, %s1318_s24 }
  0x14   : > { %p1824_p2 = scmp.eq.s32.totalorder %s1427_s30, 0  ;;  %p216_p3 = scmp.eq.s32.totalorder %s1427_s30, 1 }
  0x15   : > { %p222_p4 = scmp.eq.s32.totalorder %s867_s8, 1  ;;  %p868_p6 = scmp.ge.s32.totalorder %s1338_s29, 1 }
  0x16   : > { %p1439_p5 = por %p1824_p2, %p68_p1  ;;  %p1447_p7 = por %p216_p3, %p62_p0 }
  0x17   : > { %p1451_p8 = por %p222_p4, %p68_p1  ;;  %p257_p9 = scmp.lt.s32.totalorder %s1338_s29, 3 }
  0x18   : > { %s1845_s10 = scalar_select %p1439_p5, 1, 0 }
  0x19   : > { %s1846_s11 = scalar_select %p1447_p7, 1, 0 }
  0x1a   : > { %s1847_s12 = scalar_select %p1451_p8, 1, 0 }
  0x1b   : > { %p1457_p11 = pnand %p868_p6, %p257_p9  ;;  %s1340_s14 = smov [#allocation10]  }
  0x1c   : > { %1848 = sst [smem:[#allocation25_spill]] %s1847_s12  ;;  %s270_s15 = sshll.u32 %s1340_s14, 4  ;;  %s271_s15 = int_to_ptr.vmem [resolvable:$true] %s270_s15 }
  0x1d   : > { %s1849_s13 = scalar_select %p1457_p11, 1, 0 }
  0x1e   : > { %p935_p12 = pneg %p1457_p11  ;;  %s46_s16 = sadd.s32 1, %s1334_s28 }
  0x1f   : > { %p63_p13 = scmp.eq.s32.totalorder %s1338_s29, 0  ;;  %p1471_p1 = scmp.ge.s32.totalorder %s46_s16, 2 }
  0x20   : > { %p1467_p3 = pnand %p935_p12, %p1824_p2  ;;  %s1484_s20 = sand.u32 1, %s1326_s26  }
  0x21   : > { %s1851_s18 = scalar_select %p1471_p1, 1, 0 }
  0x22   : > { %s1850_s17 = scalar_select %p1467_p3, 1, 0 }
  0x23   : > { %p1478_p4 = por %p63_p13, %p62_p0  ;;  %s1853_s4 = sld [smem:[#allocation29_spill]] }
  0x24   : > { %p1832_p12 = pneg %p1467_p3 }
  0x25   : > { %s1852_s19 = scalar_select %p1478_p4, 1, 0 }
  0x29   : > { %s1032_s23 = scalar_lea.hbm %s1853_s4, 16 }
  0x2a   : > { %p1033_p9 = scmp.ne.s32.totalorder %s1853_s4, %s1032_s23  ;;  %p1039_p13 = scmp.lt.u32.totalorder %s1032_s23, %s1853_s4 }
  0x2c   : > { %p1035_p10 = pnand %p1832_p12, %p1033_p9 }
  0x2e   : > { %p1036_p0 = pneg %p1035_p10 }
  0x30   : > { %p1041_p2 = pnand %p1039_p13, %p1036_p0 }
  0x32   : > { %1044 = shalt.err (!%p1041_p2)
}
  0x33   : > { %s1045_s24 = scalar_lea.vmem %s271_s15, 16  ;;  %s1052_s21 = scalar_lea.vmem %s271_s15, 32 }
  0x34   : > { %p1046_p6 = scmp.ne.s32.totalorder %s271_s15, %s1045_s24  ;;  %p1053_p5 = scmp.lt.s32.totalorder %s271_s15, %s271_s15 }
  0x35   : > { %p1054_p11 = scmp.lt.s32.totalorder %s1052_s21, %s1045_s24 }
  0x36   : > { %p1048_p8 = pnand %p1046_p6, %p1832_p12 }
  0x37   : > { %p1055_p4 = por %p1054_p11, %p1053_p5 }
  0x38   : > { %p1049_p7 = pneg %p1048_p8 }
  0x3a   : > { %p1056_p1 = pnand %p1055_p4, %p1049_p7 }
  0x3c   : > { %1059 = shalt.err (!%p1056_p1)
}
  0x3d   : > { %938 = dma.hbm_to_vmem [thread:$0]  (!%p1467_p3), %s1853_s4, 16, %s271_s15, [#allocation9]  }
  0x3e   : > { %p1854_p2 = scmp.ne.s32.totalorder %s1851_s18, 0  ;;  %s1513_s24 = sshll.u32 %s1484_s20, 2 }
  0x3f   : > { %s1516_s12 = sshll.u32 %s1334_s28, 6  ;;  %p1856_p5 = scmp.ne.s32.totalorder %s1852_s19, 0 }
  0x40   : > { %s1891_s16 = smov (%p1854_p2, %s46_s16), 0  ;;  %p1857_p7 = scmp.lt.s32.totalorder %s1338_s29, 2 }
  0x41   : > { %1855 = sst [smem:[#allocation26_spill]] %s1891_s16  ;;  %s50_s23 = ssub.s32 %s1334_s28, %s1891_s16 }
  0x42   : > { %p1524_p8 = pnand %p1857_p7, %p1856_p5  ;;  %p53_p10 = scmp.eq.s32.totalorder %s50_s23, 0 }
  0x43   : > { %s1831_s15 = sand.u32 1, %s1338_s29   ;;  %s1859_s18 = sadd.s32 1, %s1326_s26 }
  0x44   : > { %s1858_s8 = scalar_select %p1524_p8, 1, 0 }
  0x45   : > { %s1532_s14 = scalar_select %p53_p10, %s1326_s26, %s1859_s18  }
  0x46   : > { %s1861_s1 = sld [smem:[#allocation28_spill]]  ;;  %s315_s19 = scalar_lea.vmem [#allocation5], %s1513_s24 }
  0x47   : > { %1860 = sst [smem:[#allocation27_spill]] %s1532_s14  ;;  %s322_s4 = sshll.u32 %s315_s19, 4  ;;  %s1541_s4 = int_to_ptr.vmem [resolvable:$true] %s322_s4 }
  0x48   : > { %s1545_s16 = scalar_lea.sflag [#allocation6], %s1831_s15  ;;  %p1551_p1 = pneg %p1524_p8 }
  0x4a   : > { %s1862_s18 = scalar_select %p1551_p1, 1, 0 }
  0x4c   : > { %s1538_s9 = scalar_lea.hbm %s1861_s1, %s1516_s12  ;;  %s1065_s19 = scalar_lea.hbm %s1861_s1, 128 }
  0x4d   : > { %s1060_s23 = scalar_lea.hbm %s1538_s9, 64  ;;  %p1066_p9 = scmp.lt.u32.totalorder %s1538_s9, %s1861_s1 }
  0x4e   : > { %p1061_p11 = scmp.ne.s32.totalorder %s1538_s9, %s1060_s23  ;;  %p1067_p0 = scmp.lt.u32.totalorder %s1065_s19, %s1060_s23 }
  0x4f   : > { %p1069_p2 = scmp.lt.u32.totalorder %s1060_s23, %s1538_s9 }
  0x50   : > { %p1063_p4 = pnand %p1551_p1, %p1061_p11  ;;  %p1068_p13 = por %p1067_p0, %p1066_p9 }
  0x52   : > { %p1064_p6 = pneg %p1063_p4  ;;  %p1070_p5 = por %p1069_p2, %p1068_p13 }
  0x54   : > { %p1071_p7 = pnand %p1070_p5, %p1064_p6 }
  0x56   : > { %1074 = shalt.err (!%p1071_p7)
}
  0x57   : > { %s1075_s15 = scalar_lea.vmem %s1541_s4, 64  ;;  %s1341_s21 = smov [#allocation5]  }
  0x58   : > { %p1076_p10 = scmp.ne.s32.totalorder %s1541_s4, %s1075_s15  ;;  %s1080_s22 = sshll.u32 %s1341_s21, 4  ;;  %s1081_s22 = int_to_ptr.vmem [resolvable:$false] %s1080_s22 }
  0x59   : > { %s1082_s26 = scalar_lea.vmem %s1081_s22, 128  ;;  %p1083_p12 = scmp.lt.s32.totalorder %s1541_s4, %s1081_s22 }
  0x5a   : > { %p1078_p11 = pnand %p1076_p10, %p1551_p1  ;;  %p1084_p3 = scmp.lt.s32.totalorder %s1082_s26, %s1075_s15 }
  0x5c   : > { %p1079_p4 = pneg %p1078_p11  ;;  %p1085_p9 = por %p1084_p3, %p1083_p12 }
  0x5e   : > { %p1086_p0 = pnand %p1085_p9, %p1079_p4 }
  0x60   : > { %1089 = shalt.err (!%p1086_p0)
}
  0x61   : > { %948 = dma.hbm_to_vmem [thread:$0]  (!%p1524_p8), %s1538_s9, 64, %s1541_s4, %s1545_s16  }
  0x62   : > { %s1342_s14 = smov [#allocation11]   ;;  %s1090_s21 = scalar_lea.hbm %s1820_s5, 16 }
  0x63   : > { %s281_s23 = sshll.u32 %s1342_s14, 4  ;;  %p1091_p3 = scmp.ne.s32.totalorder %s1820_s5, %s1090_s21  ;;  %s282_s23 = int_to_ptr.vmem [resolvable:$true] %s281_s23 }
  0x64   : > { %p1863_p12 = scmp.ne.s32.totalorder %s1850_s17, 0  ;;  %p1097_p5 = scmp.lt.u32.totalorder %s1090_s21, %s1820_s5 }
  0x66   : > { %p1864_p6 = pneg %p1863_p12 }
  0x68   : > { %p1093_p13 = pnand %p1091_p3, %p1864_p6 }
  0x6a   : > { %p1094_p2 = pneg %p1093_p13 }
  0x6c   : > { %p1099_p7 = pnand %p1097_p5, %p1094_p2 }
  0x6e   : > { %1102 = shalt.err (!%p1099_p7)
}
  0x6f   : > { %s1103_s4 = scalar_lea.vmem %s282_s23, 16  ;;  %p1865_p11 = pmov %p1864_p6 }
  0x70   : > { %p1104_p10 = scmp.ne.s32.totalorder %s282_s23, %s1103_s4  ;;  %s1110_s1 = scalar_lea.vmem %s282_s23, 32 }
  0x71   : > { %p1111_p0 = scmp.lt.s32.totalorder %s282_s23, %s282_s23  ;;  %p1112_p8 = scmp.lt.s32.totalorder %s1110_s1, %s1103_s4 }
  0x72   : > { %p1106_p4 = pnand %p1104_p10, %p1865_p11 }
  0x73   : > { %p1113_p1 = por %p1112_p8, %p1111_p0 }
  0x74   : > { %p1107_p9 = pneg %p1106_p4 }
  0x76   : > { %p1114_p3 = pnand %p1113_p1, %p1107_p9 }
  0x78   : > { %1117 = shalt.err (!%p1114_p3)
}
  0x79   : > { %941 = dma.hbm_to_vmem [thread:$0]  (!%p1863_p12), %s1820_s5, 16, %s282_s23, [#allocation12]  }
  0x7a   : > { %s1599_s21 = scalar_lea.hbm %s1815_s0, %s1516_s12  ;;  %s296_s22 = scalar_lea.vmem [#allocation2], %s1513_s24 }
  0x7b   : > { %s304_s15 = sshll.u32 %s296_s22, 4  ;;  %s293_s17 = scalar_lea.sflag [#allocation3], %s1484_s20  ;;  %s305_s15 = int_to_ptr.vmem [resolvable:$true] %s304_s15 }
  0x7c   : > { %s1118_s26 = scalar_lea.hbm %s1599_s21, 64  ;;  %p1866_p1 = scmp.ne.s32.totalorder %s1862_s18, 0 }
  0x7d   : > { %p1119_p8 = scmp.ne.s32.totalorder %s1599_s21, %s1118_s26  ;;  %s1123_s1 = scalar_lea.hbm %s1815_s0, 128 }
  0x7e   : > { %p1124_p12 = scmp.lt.u32.totalorder %s1599_s21, %s1815_s0  ;;  %p1125_p2 = scmp.lt.u32.totalorder %s1123_s1, %s1118_s26 }
  0x7f   : > { %p1121_p6 = pnand %p1119_p8, %p1866_p1  ;;  %p1127_p7 = scmp.lt.u32.totalorder %s1118_s26, %s1599_s21 }
  0x80   : > { %p1126_p5 = por %p1125_p2, %p1124_p12 }
  0x81   : > { %p1122_p13 = pneg %p1121_p6 }
  0x82   : > { %p1128_p10 = por %p1127_p7, %p1126_p5 }
  0x84   : > { %p1129_p11 = pnand %p1128_p10, %p1122_p13 }
  0x86   : > { %1132 = shalt.err (!%p1129_p11)
}
  0x87   : > { %s1133_s14 = scalar_lea.vmem %s305_s15, 64  ;;  %s1343_s19 = smov [#allocation2]  }
  0x88   : > { %p1134_p4 = scmp.ne.s32.totalorder %s305_s15, %s1133_s14  ;;  %s1138_s22 = sshll.u32 %s1343_s19, 4  ;;  %s1139_s22 = int_to_ptr.vmem [resolvable:$false] %s1138_s22 }
  0x89   : > { %s1140_s4 = scalar_lea.vmem %s1139_s22, 128  ;;  %p1141_p3 = scmp.lt.s32.totalorder %s305_s15, %s1139_s22 }
  0x8a   : > { %p1136_p9 = pnand %p1134_p4, %p1866_p1  ;;  %p1142_p8 = scmp.lt.s32.totalorder %s1140_s4, %s1133_s14 }
  0x8c   : > { %p1137_p0 = pneg %p1136_p9  ;;  %p1143_p6 = por %p1142_p8, %p1141_p3 }
  0x8e   : > { %p1144_p2 = pnand %p1143_p6, %p1137_p0 }
  0x90   : > { %1147 = shalt.err (!%p1144_p2)
}
  0x91   : > { %p1867_p12 = scmp.ne.s32.totalorder %s1858_s8, 0  ;;  %s1624_s1 = scalar_lea.hbm %s1817_s2, %s1516_s12 }
  0x92   : > { %s333_s6 = scalar_lea.vmem [#allocation7], %s1513_s24  ;;  %s878_s14 = sshll.u32 %s1484_s20, 3 }
  0x93   : > { %945 = dma.hbm_to_vmem [thread:$0]  (!%p1867_p12), %s1599_s21, 64, %s305_s15, %s293_s17  }
  0x94   : > { %s340_s9 = sshll.u32 %s333_s6, 4  ;;  %s1148_s19 = scalar_lea.hbm %s1624_s1, 64  ;;  %s341_s9 = int_to_ptr.vmem [resolvable:$true] %s340_s9 }
  0x95   : > { %p1149_p13 = scmp.ne.s32.totalorder %s1624_s1, %s1148_s19  ;;  %s1153_s15 = scalar_lea.hbm %s1817_s2, 128 }
  0x96   : > { %p1154_p10 = scmp.lt.u32.totalorder %s1624_s1, %s1817_s2  ;;  %p1155_p11 = scmp.lt.u32.totalorder %s1153_s15, %s1148_s19 }
  0x97   : > { %p1151_p5 = pnand %p1149_p13, %p1866_p1  ;;  %p1157_p9 = scmp.lt.u32.totalorder %s1148_s19, %s1624_s1 }
  0x98   : > { %p1156_p4 = por %p1155_p11, %p1154_p10 }
  0x99   : > { %p1152_p7 = pneg %p1151_p5 }
  0x9a   : > { %p1158_p0 = por %p1157_p9, %p1156_p4 }
  0x9c   : > { %p1159_p3 = pnand %p1158_p0, %p1152_p7 }
  0x9e   : > { %1162 = shalt.err (!%p1159_p3)
}
  0x9f   : > { %s1163_s24 = scalar_lea.vmem %s341_s9, 64  ;;  %s1344_s4 = smov [#allocation7]  }
  0xa0   : > { %p1164_p8 = scmp.ne.s32.totalorder %s341_s9, %s1163_s24  ;;  %s1168_s26 = sshll.u32 %s1344_s4, 4  ;;  %s1169_s26 = int_to_ptr.vmem [resolvable:$false] %s1168_s26 }
  0xa1   : > { %s1170_s23 = scalar_lea.vmem %s1169_s26, 128  ;;  %p1171_p13 = scmp.lt.s32.totalorder %s341_s9, %s1169_s26 }
  0xa2   : > { %p1166_p6 = pnand %p1164_p8, %p1866_p1  ;;  %p1172_p5 = scmp.lt.s32.totalorder %s1170_s23, %s1163_s24 }
  0xa4   : > { %p1167_p2 = pneg %p1166_p6  ;;  %p1173_p12 = por %p1172_p5, %p1171_p13 }
  0xa6   : > { %p1174_p10 = pnand %p1173_p12, %p1167_p2 }
  0xa8   : > { %1177 = shalt.err (!%p1174_p10)
}
  0xa9   : > { %p1868_p11 = scmp.ne.s32.totalorder %s1858_s8, 0  ;;  %s879_s6 = sshll.u32 %s1334_s28, 7 }
  0xaa   : > { %s1650_s21 = scalar_lea.hbm %s1818_s3, %s879_s6  ;;  %s351_s15 = scalar_lea.vmem [#allocation8], %s878_s14 }
  0xab   : > { %951 = dma.hbm_to_vmem [thread:$0]  (!%p1868_p11), %s1624_s1, 64, %s341_s9, %s1545_s16  }
  0xac   : > { %s359_s17 = sshll.u32 %s351_s15, 4  ;;  %s1869_s12 = sand.u32 1, %s1338_s29   ;;  %s360_s17 = int_to_ptr.vmem [resolvable:$true] %s359_s17 }
  0xad   : > { %s348_s24 = scalar_lea.sflag [#allocation9], %s1869_s12  ;;  %s1178_s4 = scalar_lea.hbm %s1650_s21, 128 }
  0xae   : > { %p1179_p12 = scmp.ne.s32.totalorder %s1650_s21, %s1178_s4  ;;  %s1183_s9 = scalar_lea.hbm %s1818_s3, 256 }
  0xaf   : > { %p1184_p9 = scmp.lt.u32.totalorder %s1650_s21, %s1818_s3  ;;  %p1185_p0 = scmp.lt.u32.totalorder %s1183_s9, %s1178_s4 }
  0xb0   : > { %p1181_p7 = pnand %p1179_p12, %p1866_p1  ;;  %p1187_p8 = scmp.lt.u32.totalorder %s1178_s4, %s1650_s21 }
  0xb1   : > { %p1186_p3 = por %p1185_p0, %p1184_p9 }
  0xb2   : > { %p1182_p4 = pneg %p1181_p7 }
  0xb3   : > { %p1188_p6 = por %p1187_p8, %p1186_p3 }
  0xb5   : > { %p1189_p2 = pnand %p1188_p6, %p1182_p4 }
  0xb7   : > { %1192 = shalt.err (!%p1189_p2)
}
  0xb8   : > { %s1193_s14 = scalar_lea.vmem %s360_s17, 128  ;;  %s1345_s23 = smov [#allocation8]  }
  0xb9   : > { %p1194_p13 = scmp.ne.s32.totalorder %s360_s17, %s1193_s14  ;;  %s1198_s6 = sshll.u32 %s1345_s23, 4  ;;  %s1199_s6 = int_to_ptr.vmem [resolvable:$false] %s1198_s6 }
  0xba   : > { %s1200_s19 = scalar_lea.vmem %s1199_s6, 256  ;;  %p1201_p12 = scmp.lt.s32.totalorder %s360_s17, %s1199_s6 }
  0xbb   : > { %p1196_p5 = pnand %p1194_p13, %p1866_p1  ;;  %p1202_p7 = scmp.lt.s32.totalorder %s1200_s19, %s1193_s14 }
  0xbd   : > { %p1197_p10 = pneg %p1196_p5  ;;  %p1203_p11 = por %p1202_p7, %p1201_p12 }
  0xbf   : > { %p1204_p0 = pnand %p1203_p11, %p1197_p10 }
  0xc1   : > { %1207 = shalt.err (!%p1204_p0)
}
  0xc2   : > { %p1870_p9 = scmp.ne.s32.totalorder %s1858_s8, 0  ;;  %p1871_p4 = scmp.ne.s32.totalorder %s1849_s13, 0 }
  0xc3   : > { %s1676_s18 = sand.u32 (!%p1871_p4), 1, %s1322_s25   ;;  %p1872_p1 = scmp.ne.s32.totalorder (!%p1871_p4), %s1845_s10, 0 }
  0xc4   : > { %954 = dma.hbm_to_vmem [thread:$0]  (!%p1870_p9), %s1650_s21, 128, %s360_s17, %s348_s24  }
  0xc5   : > { %368 = sbr.rel (%p1871_p4) target bundleno = 1263 (0x4ef), region = 44  ;;  %s1679_s22 = sshll.u32 (!%p1871_p4), %s1676_s18, 2 }
  0xc6   : > { %s371_s15 = scalar_lea.sflag (!%p1871_p4), [#allocation3], %s1676_s18  ;;  %s374_s12 = scalar_lea.vmem (!%p1871_p4), [#allocation2], %s1679_s22 }
  0xcc   : > { %1289 = dma.done.wait (%p1872_p1), %s371_s15, 64  }
  0xcd   : > { %1291 = vsyncadd (%p1872_p1), %s371_s15, 4294967232  ;;  %s379_s13 = sand.u32 1, %s1427_s30   ;;  %s383_s21 = scalar_lea.vmem [#allocation5], %s1679_s22 }
  0xce   : > { %s380_s8 = scalar_lea.sflag [#allocation6], %s379_s13 }
  0xcf   : > { %1293 = dma.done.wait (%p1872_p1), %s380_s8, 128  }
  0xd0   : > { %1295 = vsyncadd (%p1872_p1), %s380_s8, 4294967168  ;;  %s1694_s17 = sshll.u32 %s1676_s18, 3  ;;  %s392_s24 = scalar_lea.vmem [#allocation7], %s1679_s22 }
  0xd1   : > { %s398_s4 = scalar_lea.sflag [#allocation9], %s379_s13  ;;  %s401_s16 = scalar_lea.vmem [#allocation8], %s1694_s17 }
  0xd2   : > { %1297 = dma.done.wait (%p1872_p1), %s398_s4, 128  }
  0xd3   : > { %1299 = vsyncadd (%p1872_p1), %s398_s4, 4294967168  ;;  %p1873_p11 = scmp.eq.s32.totalorder %s1427_s30, 0 }
  0xd5   : > { %1301 = dma.done.wait (%p1873_p11), [#allocation9], 16   ;;  %p1874_p3 = pmov %p1873_p11 }
  0xd7   : > { %1303 = vsyncadd (%p1874_p3), [#allocation9], 4294967280  ;;  %p1875_p8 = pmov %p1874_p3 }
  0xd8   : > { %p1876_p6 = pmov %p1874_p3 }
  0xd9   : > { %1305 = dma.done.wait (%p1875_p8), [#allocation12], 16  }
  0xda   : > { %1307 = vsyncadd (%p1876_p6), [#allocation12], 4294967280  ;;  %v1346_v0 = vmov 0.0   ;;  %vm1347_vm0 = vmmov 0   ;;  %vm464_vm1 = vcmask 523264   ;;  %vm511_vm2 = vcmask 64512  }
  0xdb   : > { %903 = vmatprep.subr.bf16.mxu0 %v1346_v0  ;;  %905 = vmatprep.mubr.msk.bf16.mxu0 %vm1347_vm0, %v1346_v0  ;;  %v462_v1 = vld [vmem:[%s383_s21] sm:$0xf]  ;;  %v461_v3 = vld [vmem:[%s374_s12] sm:$0xf]  ;;  %v463_v14 = vld [vmem:[%s392_s24] sm:$0xf] }
  0xdc   : > { %909 = vmatprep.subr.bf16.mxu1 %v1346_v0  ;;  %911 = vmatprep.mubr.msk.bf16.mxu1 %vm1347_vm0, %v1346_v0  ;;  %v469_v2 = vsel %vm464_vm1, %v462_v1, 0  ;;  %vm528_vm3 = vcmask 1043456   ;;  %s459_s30 = scalar_lea.vmem [#allocation14], %s1694_s17  ;;  %v572_v20 = vld [vmem:[%s401_s16] sm:$0xff]  ;;  %s1348_s10 = smov 80  }
  0xdd   : > { %904 = vmatpush3.bf16.xpose.msra.mxu0 %v469_v2  ;;  %v530_v15 = vsel %vm528_vm3, %v463_v14, 0  ;;  %s1349_s1 = smov 112   ;;  %s1350_s9 = smov 96  }
  0xde   : > { %910 = vmatpush3.bf16.msra.mxu1 %v530_v15  ;;  %s1351_s26 = smov 16   ;;  %s895_s20 = sshll.u32 %s1330_s27, 7 }
  0xdf   : > { %s1352_s14 = smov 32   ;;  %s1733_s19 = scalar_lea.hbm %s1822_s7, %s895_s20 }
  0xe0   : > { %s667_s22 = sshll.u32 %s459_s30, 4  ;;  %s639_s15 = scalar_lea.sflag [#allocation15], %s1676_s18  ;;  %s668_s22 = int_to_ptr.vmem [resolvable:$true] %s667_s22 }
  0xe1   : > { %s1208_s12 = scalar_lea.vmem %s668_s22, 128  ;;  %p1877_p13 = scmp.ne.s32.totalorder %s1846_s11, 0 }
  0xe2   : > { %p1209_p2 = scmp.ne.s32.totalorder %s668_s22, %s1208_s12  ;;  %s1353_s13 = smov [#allocation14]  }
  0xe3   : > { %s1212_s8 = sshll.u32 %s1353_s13, 4  ;;  %s1213_s8 = int_to_ptr.vmem [resolvable:$false] %s1212_s8 }
  0xe4   : > { %906 = vmatmul.mubr.msk.bf16.vlgmr.msra.gmra.mrb[0].mxu0 %vm464_vm1, %v461_v3  ;;  %p1210_p5 = pnand %p1209_p2, %p1877_p13  ;;  %s1214_s21 = scalar_lea.vmem %s1213_s8, 256 }
  0xe5   : > { %p1215_p12 = scmp.lt.s32.totalorder %s668_s22, %s1213_s8  ;;  %p1216_p7 = scmp.lt.s32.totalorder %s1214_s21, %s1208_s12 }
  0xe6   : > { %p1211_p10 = pneg %p1210_p5 }
  0xe7   : > { %p1217_p0 = por %p1216_p7, %p1215_p12 }
  0xe9   : > { %p1218_p9 = pnand %p1217_p0, %p1211_p10 }
 0x1b7   : > { %v505_v4 = vpop.f32.mrb[0].mxu0 }
 0x1b8   : > { %v907_v5 = vpop.f32.mrb[1].mxu0  ;;  %v512_v6 = vsel %vm511_vm2, %v505_v4, -inf }
 0x1b9   : > { %513 = vmax.xlane.f32.xlu0 %v512_v6  ;;  %v508_v7 = vpop.f32.mrb[2].mxu0 }
 0x1ba   : > { %v908_v8 = vpop.f32.mrb[3].mxu0 }
 0x246   : > { %v514_v9 = vpop.xlane.xlu0 %513 }
 0x247   : > { %v515_v10 = vsub.f32 %v505_v4, %v514_v9 }
 0x249   : > { %v516_v11 = vmul.f32 1.442695, %v515_v10 }
 0x24b   : > { %1026 = vpow2.f32 %v516_v11 }
 0x255   : > { %v1027_v12 = vpop.eup %1026 }
 0x256   : > { %v518_v13 = vsel %vm511_vm2, %v1027_v12, 0.0 }
 0x257   : > { %519 = vadd.xlane.f32.xlu0 %v518_v13 }
 0x2e4   : > { %v520_v16 = vpop.xlane.xlu0 %519 }
 0x2e5   : > { %1028 = vrcp.f32 %v520_v16 }
 0x2ef   : > { %v1029_v17 = vpop.eup %1028 }
 0x2f0   : > { %v522_v18 = vmul.f32 %v1029_v17, %v1027_v12 }
 0x2f2   : > { %v524_v19 = vpack.c.bf16 %v522_v18, %v522_v18  ;;  %523 = vst.msk [vmem:[%s459_s30] sm:$0xff] %vm511_vm2, %v522_v18 }
 0x2f4   : > { %912 = vmatmul.mubr.msk.bf16.vlgmr.msra.gmra.mrb[0].mxu1 %vm511_vm2, %v524_v19 }
 0x3c7   : > { %v566_v21 = vpop.f32.mrb[0].mxu1 }
 0x3c8   : > { %v1723_v22 = vadd.f32 %v572_v20, %v566_v21  ;;  %v913_v23 = vpop.f32.mrb[1].mxu1 }
 0x3c9   : > { %v569_v24 = vpop.f32.mrb[2].mxu1 }
 0x3ca   : > { %v914_v25 = vpop.f32.mrb[3].mxu1  ;;  %v576_v26 = vmul.f32 %v1723_v22, %v1723_v22 }
 0x3cc   : > { %586 = vrot.lane.b32.xlu0 %v576_v26, %s1348_s10  ;;  %578 = vrot.lane.b32.xlu1 %v576_v26, %s1349_s1 }
 0x3d0   : > { %582 = vrot.lane.b32.xlu1 %v576_v26, %s1350_s9 }
 0x43e   : > { %v579_v27 = vpop.permute.xlu1 %578  ;;  %v587_v31 = vpop.permute.xlu0 %586 }
 0x43f   : > { %v581_v28 = vadd.f32 %v579_v27, %v576_v26 }
 0x442   : > { %v583_v29 = vpop.permute.xlu1 %582 }
 0x443   : > { %v585_v30 = vadd.f32 %v583_v29, %v581_v28 }
 0x445   : > { %v589_v32 = vadd.f32 %v587_v31, %v585_v30 }
 0x447   : > { %v590_v33 = vadd.f32 1e-06, %v589_v32 }
 0x449   : > { %1030 = vrsqrt.f32 %v590_v33 }
 0x453   : > { %v1031_v34 = vpop.eup %1030 }
 0x454   : > { %608 = vrot.lane.b32.xlu1 %v1031_v34, %s1351_s26 }
 0x458   : > { %614 = vrot.lane.b32.xlu1 %v1031_v34, %s1352_s14 }
 0x459   : > { %1221 = shalt.err (!%p1218_p9)
}
 0x45a   : > { %s1222_s24 = scalar_lea.hbm %s1733_s19, 128  ;;  %s1226_s30 = scalar_lea.hbm %s1822_s7, 256 }
 0x45b   : > { %p1223_p4 = scmp.ne.s32.totalorder %s1733_s19, %s1222_s24  ;;  %p1227_p3 = scmp.lt.u32.totalorder %s1733_s19, %s1822_s7 }
 0x45c   : > { %p1228_p8 = scmp.lt.u32.totalorder %s1226_s30, %s1222_s24  ;;  %p1230_p2 = scmp.lt.u32.totalorder %s1222_s24, %s1733_s19 }
 0x45d   : > { %p1224_p1 = pnand %p1223_p4, %p1877_p13 }
 0x45e   : > { %p1229_p6 = por %p1228_p8, %p1227_p3 }
 0x45f   : > { %p1225_p11 = pneg %p1224_p1 }
 0x460   : > { %p1231_p5 = por %p1230_p2, %p1229_p6 }
 0x462   : > { %p1232_p10 = pnand %p1231_p5, %p1225_p11 }
 0x464   : > { %1235 = shalt.err (!%p1232_p10)
}
 0x465   : > { %932 = dma.vmem_to_hbm [thread:$0]  (%p1877_p13), %s668_s22, 128, %s1733_s19, %s639_s15   ;;  %v592_v37 = vmul.f32 %v1031_v34, %v1723_v22  ;;  %v891_v38 = vld [vmem:[#allocation10] ss:$0 sm:$0xff]  ;;  %v892_v44 = vld [vmem:[#allocation11] ss:$0 sm:$0xff]  ;;  %vm626_vm4 = vcmask 130048  }
 0x466   : > { %s1354_s9 = smov 48   ;;  %vm628_vm5 = vcmask 261120   ;;  %s452_s26 = scalar_lea.vmem [#allocation13], %s1694_s17  ;;  %vm630_vm6 = vcmask 392192  }
 0x467   : > { %620 = vrot.lane.b32.xlu1 %v1031_v34, %s1354_s9  ;;  %v599_v42 = vmul.f32 %v891_v38, %v592_v37  ;;  %s653_s14 = sshll.u32 %s452_s26, 4  ;;  %s1878_s19 = sld [smem:[#allocation30_spill]]  ;;  %s1767_s14 = int_to_ptr.vmem [resolvable:$true] %s653_s14 }
 0x468   : > { %s634_s17 = scalar_lea.sflag [#allocation4], %s1676_s18  ;;  %s1236_s15 = scalar_lea.vmem %s1767_s14, 128 }
 0x469   : > { %v606_v49 = vadd.f32 %v892_v44, %v599_v42  ;;  %p1237_p12 = scmp.ne.s32.totalorder %s1767_s14, %s1236_s15  ;;  %s1355_s27 = smov [#allocation13]  }
 0x46a   : > { %s1240_s12 = sshll.u32 %s1355_s27, 4  ;;  %s1241_s12 = int_to_ptr.vmem [resolvable:$false] %s1240_s12 }
 0x46b   : > { %p1238_p7 = pnand %p1237_p12, %p1877_p13  ;;  %s1242_s13 = scalar_lea.vmem %s1241_s12, 256 }
 0x46c   : > { %p1243_p9 = scmp.lt.s32.totalorder %s1767_s14, %s1241_s12  ;;  %p1244_p4 = scmp.lt.s32.totalorder %s1242_s13, %s1236_s15 }
 0x46d   : > { %s1765_s22 = scalar_lea.hbm %s1878_s19, %s895_s20  ;;  %p1239_p0 = pneg %p1238_p7 }
 0x46e   : > { %p1245_p1 = por %p1244_p4, %p1243_p9 }
 0x470   : > { %p1246_p11 = pnand %p1245_p1, %p1239_p0 }
 0x4c6   : > { %v609_v35 = vpop.permute.xlu1 %608 }
 0x4c7   : > { %v611_v36 = vmul.f32 %v609_v35, %v1723_v22 }
 0x4c9   : > { %v612_v40 = vmul.f32 %v891_v38, %v611_v36 }
 0x4ca   : > { %v615_v39 = vpop.permute.xlu1 %614 }
 0x4cb   : > { %v617_v41 = vmul.f32 %v615_v39, %v1723_v22  ;;  %v613_v46 = vadd.f32 %v892_v44, %v612_v40 }
 0x4cd   : > { %v618_v43 = vmul.f32 %v891_v38, %v617_v41  ;;  %v627_v51 = vsel %vm626_vm4, %v606_v49, %v613_v46 }
 0x4cf   : > { %v619_v48 = vadd.f32 %v892_v44, %v618_v43 }
 0x4d1   : > { %v629_v53 = vsel %vm628_vm5, %v627_v51, %v619_v48 }
 0x4d9   : > { %v621_v45 = vpop.permute.xlu1 %620 }
 0x4da   : > { %v623_v47 = vmul.f32 %v621_v45, %v1723_v22 }
 0x4dc   : > { %v624_v50 = vmul.f32 %v891_v38, %v623_v47 }
 0x4de   : > { %v625_v52 = vadd.f32 %v892_v44, %v624_v50 }
 0x4e0   : > { %v631_v54 = vsel %vm630_vm6, %v629_v53, %v625_v52 }
 0x4e1   : > { %632 = vst.msk [vmem:[%s452_s26] sm:$0xff] %vm464_vm1, %v631_v54 }
 0x4e2   : > { %1249 = shalt.err (!%p1246_p11)
}
 0x4e3   : > { %s1250_s18 = scalar_lea.hbm %s1765_s22, 128  ;;  %s1254_s21 = scalar_lea.hbm %s1878_s19, 256 }
 0x4e4   : > { %p1251_p3 = scmp.ne.s32.totalorder %s1765_s22, %s1250_s18  ;;  %p1255_p2 = scmp.lt.u32.totalorder %s1765_s22, %s1878_s19 }
 0x4e5   : > { %p1256_p5 = scmp.lt.u32.totalorder %s1254_s21, %s1250_s18  ;;  %p1258_p12 = scmp.lt.u32.totalorder %s1250_s18, %s1765_s22 }
 0x4e6   : > { %p1252_p8 = pnand %p1251_p3, %p1877_p13 }
 0x4e7   : > { %p1257_p10 = por %p1256_p5, %p1255_p2 }
 0x4e8   : > { %p1253_p6 = pneg %p1252_p8 }
 0x4e9   : > { %p1259_p7 = por %p1258_p12, %p1257_p10 }
 0x4eb   : > { %p1260_p0 = pnand %p1259_p7, %p1253_p6 }
 0x4ed   : > { %1263 = shalt.err (!%p1260_p0)
}
 0x4ee   : > { %931 = dma.vmem_to_hbm [thread:$0]  (%p1877_p13), %s1767_s14, 128, %s1765_s22, %s634_s17  }
 0x4ef PF: > { %s1879_s16 = sld [smem:[#allocation23_spill]]  ;;  %s1880_s30 = sld [smem:[#allocation25_spill]] }
 0x4f0   : > { %p1882_p4 = scmp.ge.s32.totalorder %s1338_s29, 2 }
 0x4f5   : > { %s679_s10 = sand.u32 1, %s1879_s16   ;;  %p1881_p9 = scmp.ne.s32.totalorder %s1880_s30, 0 }
 0x4f6   : > { %s680_s1 = scalar_lea.sflag [#allocation4], %s679_s10 }
 0x4f7   : > { %p956_p1 = pnand %p1882_p4, %p1881_p9 }
 0x4f9   : > { %1309 = dma.done.wait (!%p956_p1), %s680_s1, 128  }
 0x4fa   : > { %1311 = vsyncadd (!%p956_p1), %s680_s1, 4294967168  ;;  %s689_s9 = scalar_lea.sflag [#allocation15], %s679_s10 }
 0x4fb   : > { %1313 = dma.done.wait (!%p956_p1), %s689_s9, 128  }
 0x4fc   : > { %1315 = vsyncadd (!%p956_p1), %s689_s9, 4294967168  ;;  %s34_s29 = sadd.s32 1, %s1338_s29   ;;  %s1883_s11 = sld [smem:[#allocation24_spill]] }
 0x4fd   : > { %p31_p11 = scmp.ge.s32.totalorder %s34_s29, 4   ;;  %s1884_s26 = sld [smem:[#allocation27_spill]] }
 0x4fe   : > { %s1885_s14 = sld [smem:[#allocation26_spill]]  ;;  %s1886_s24 = smov %s1322_s25 }
 0x4ff   : > { %s1888_s27 = smov %s1334_s28  ;;  %33 = sbr.rel (!%p31_p11) target bundleno = 17 (0x11), region = 151 }
 0x502   : > { %s1887_s25 = smov %s1883_s11 }
 0x504   : > { %s1889_s28 = smov %s1885_s14 }
 0x506   :  { %694 = vsyncpa [#allocation3], 1 }
 0x507   :  { %696 = vsyncpa [#allocation3 + $0x1], 1 }
 0x508   :  { %697 = vsyncpa [#allocation6], 1 }
 0x509   :  { %699 = vsyncpa [#allocation6 + $0x1], 1 }
 0x50a   :  { %700 = vsyncpa [#allocation9], 1 }
 0x50b   :  { %702 = vsyncpa [#allocation9 + $0x1], 1 }
 0x50c   :  { %703 = vsyncpa [#allocation12], 1 }
 0x50d   :  { %704 = vsyncpa [#allocation4], 1 }
 0x50e   :  { %706 = vsyncpa [#allocation4 + $0x1], 1 }
 0x50f   :  { %707 = vsyncpa [#allocation15], 1 }
 0x510   :  { %709 = vsyncpa [#allocation15 + $0x1], 1 }

// kernel: quaternion_transformer_forward.17
= control target key start
LH: loop header
LB: loop body
LE: loop exit
PB: predicated region body
PF: predicated region fallthrough
CT: control target
= control target key end

     0   :  { %8 = vsyncpa [#allocation3], 0  ;;  %s391_s0 = inlined_call_operand.hbm [shape: f32[16,64], index: 0, kind: input, shape index: {}]   ;;  %s392_s1 = inlined_call_operand.hbm [shape: bf16[16,32], index: 1, kind: input, shape index: {}]   ;;  %s393_s2 = inlined_call_operand.hbm [shape: f32[1,32], index: 2, kind: input, shape index: {}]   ;;  %s394_s3 = inlined_call_operand.hbm [shape: f32[16,32], index: 3, kind: output, shape index: {}]  }
   0x1   :  { %9 = vsyncpa [#allocation6], 0 }
   0x2   :  { %10 = vsyncpa [#allocation4], 0  ;;  %s304_s12 = smov [#allocation5]   ;;  %s210_s16 = scalar_lea.hbm %s392_s1, 128 }
   0x3   :  { %s28_s13 = sshll.u32 %s304_s12, 4  ;;  %p211_p0 = scmp.ne.s32.totalorder %s392_s1, %s210_s16  ;;  %s29_s13 = int_to_ptr.vmem [resolvable:$true] %s28_s13 }
   0x4   :  { %p214_p1 = scmp.lt.u32.totalorder %s210_s16, %s392_s1 }
   0x6   :  { %p216_p2 = pnand %p214_p1, %p211_p0 }
   0x8   :  { %219 = shalt.err (!%p216_p2)
}
   0x9   :  { %s220_s21 = scalar_lea.vmem %s29_s13, 128  ;;  %p225_p4 = scmp.lt.s32.totalorder %s29_s13, %s29_s13 }
   0xa   :  { %p221_p3 = scmp.ne.s32.totalorder %s29_s13, %s220_s21  ;;  %p226_p5 = scmp.lt.s32.totalorder %s220_s21, %s220_s21 }
   0xc   :  { %p227_p6 = por %p226_p5, %p225_p4 }
   0xe   :  { %p228_p7 = pnand %p227_p6, %p221_p3 }
  0x10   :  { %231 = shalt.err (!%p228_p7)
}
  0x11   :  { %s305_s22 = smov 64   ;;  %s306_s23 = smov 4  }
  0x12   :  { %34 = dma.hbm_to_vmem [thread:$0]  %s392_s1, 128, %s29_s13, [#allocation6], %s305_s22, %s305_s22, %s306_s23  }
  0x13   :  { %s307_s26 = smov [#allocation2]   ;;  %s232_s30 = scalar_lea.hbm %s391_s0, 256 }
  0x14   :  { %s16_s27 = sshll.u32 %s307_s26, 4  ;;  %p233_p8 = scmp.ne.s32.totalorder %s391_s0, %s232_s30  ;;  %s17_s27 = int_to_ptr.vmem [resolvable:$true] %s16_s27 }
  0x15   :  { %p236_p9 = scmp.lt.u32.totalorder %s232_s30, %s391_s0 }
  0x17   :  { %p238_p10 = pnand %p236_p9, %p233_p8 }
  0x19   :  { %241 = shalt.err (!%p238_p10)
}
  0x1a   :  { %s242_s8 = scalar_lea.vmem %s17_s27, 256  ;;  %p247_p12 = scmp.lt.s32.totalorder %s17_s27, %s17_s27 }
  0x1b   :  { %p243_p11 = scmp.ne.s32.totalorder %s17_s27, %s242_s8  ;;  %p248_p13 = scmp.lt.s32.totalorder %s242_s8, %s242_s8 }
  0x1d   :  { %p249_p0 = por %p248_p13, %p247_p12 }
  0x1f   :  { %p250_p1 = pnand %p249_p0, %p243_p11 }
  0x21   :  { %253 = shalt.err (!%p250_p1)
}
  0x22   :  { %s308_s1 = smov 128   ;;  %s309_s9 = smov 8  }
  0x23   :  { %22 = dma.hbm_to_vmem [thread:$0]  %s391_s0, 256, %s17_s27, [#allocation3], %s308_s1, %s308_s1, %s309_s9  }
  0x24   :  { %s310_s12 = smov [#allocation7]   ;;  %s254_s16 = scalar_lea.hbm %s393_s2, 16 }
  0x25   :  { %s41_s13 = sshll.u32 %s310_s12, 4  ;;  %p255_p2 = scmp.ne.s32.totalorder %s393_s2, %s254_s16  ;;  %s42_s13 = int_to_ptr.vmem [resolvable:$true] %s41_s13 }
  0x26   :  { %p258_p3 = scmp.lt.u32.totalorder %s254_s16, %s393_s2 }
  0x28   :  { %p260_p4 = pnand %p258_p3, %p255_p2 }
  0x2a   :  { %263 = shalt.err (!%p260_p4)
}
  0x2b   :  { %s264_s21 = scalar_lea.vmem %s42_s13, 16  ;;  %s268_s0 = scalar_lea.vmem %s42_s13, 32 }
  0x2c   :  { %p265_p5 = scmp.ne.s32.totalorder %s42_s13, %s264_s21  ;;  %p269_p6 = scmp.lt.s32.totalorder %s42_s13, %s42_s13 }
  0x2d   :  { %p270_p7 = scmp.lt.s32.totalorder %s268_s0, %s264_s21 }
  0x2f   :  { %p271_p8 = por %p270_p7, %p269_p6 }
  0x31   :  { %p272_p9 = pnand %p271_p8, %p265_p5 }
  0x33   :  { %275 = shalt.err (!%p272_p9)
}
  0x34   :  { %44 = dma.hbm_to_vmem [thread:$0]  %s393_s2, 16, %s42_s13, [#allocation6]  }
  0x35   :  { %298 = dma.done.wait [#allocation3], 256  }
  0x36   :  { %299 = vsyncadd [#allocation3], 4294967040 }
  0x37   :  { %300 = dma.done.wait [#allocation6], 144  }
  0x38   :  { %301 = vsyncadd [#allocation6], 4294967152  ;;  %v55_v0 = vld [vmem:[#allocation2] sm:$0xff]  ;;  %v56_v1 = vld [vmem:[#allocation2 + $0x8] sm:$0xff]  ;;  %v311_v4 = vmov 0.0   ;;  %vm312_vm0 = vmmov 0  }
  0x39   :  { %v57_v2 = vmul.f32 %v55_v0, %v55_v0  ;;  %v205_v3 = vld [vmem:[#allocation5] sm:$0xff]   ;;  %186 = vmatprep.subr.bf16.mxu0 %v311_v4  ;;  %188 = vmatprep.mubr.msk.bf16.mxu0 %vm312_vm0, %v311_v4  ;;  %s313_s24 = smov 96   ;;  %s314_s25 = smov 112   ;;  %v58_v5 = vmul.f32 %v56_v1, %v56_v1  ;;  %vm115_vm5 = vcmask 130048   ;;  %v181_v29 = vld [vmem:[#allocation7] ss:$0 sm:$0xff] }
  0x3a   :  { %187 = vmatpush3.bf16.msra.mxu0 %v205_v3  ;;  %s315_s2 = smov 80   ;;  %vm160_vm6 = vcmask 261120   ;;  %s316_s26 = smov [#allocation8]  }
  0x3b   :  { %69 = vrot.lane.b32.xlu1 %v57_v2, %s313_s24  ;;  %61 = vrot.lane.b32.xlu0 %v57_v2, %s314_s25  ;;  %s168_s27 = sshll.u32 %s316_s26, 4  ;;  %s169_s27 = int_to_ptr.vmem [resolvable:$true] %s168_s27 }
  0x3c   :  { %s276_s28 = scalar_lea.vmem %s169_s27, 256  ;;  %p281_p11 = scmp.lt.s32.totalorder %s169_s27, %s169_s27 }
  0x3d   :  { %p277_p10 = scmp.ne.s32.totalorder %s169_s27, %s276_s28  ;;  %p282_p12 = scmp.lt.s32.totalorder %s276_s28, %s276_s28 }
  0x3f   :  { %71 = vrot.lane.b32.xlu1 %v58_v5, %s313_s24  ;;  %63 = vrot.lane.b32.xlu0 %v58_v5, %s314_s25  ;;  %p283_p13 = por %p282_p12, %p281_p11 }
  0x41   :  { %p284_p0 = pnand %p283_p13, %p277_p10 }
  0x43   :  { %79 = vrot.lane.b32.xlu1 %v58_v5, %s315_s2  ;;  %77 = vrot.lane.b32.xlu0 %v57_v2, %s315_s2 }
  0xad   :  { %v70_v6 = vpop.permute.xlu1 %69  ;;  %v62_v7 = vpop.permute.xlu0 %61 }
  0xae   :  { %v67_v8 = vadd.f32 %v62_v7, %v57_v2 }
  0xb0   :  { %v75_v13 = vadd.f32 %v70_v6, %v67_v8 }
  0xb1   :  { %v72_v9 = vpop.permute.xlu1 %71  ;;  %v64_v10 = vpop.permute.xlu0 %63 }
  0xb2   :  { %v68_v11 = vadd.f32 %v64_v10, %v58_v5 }
  0xb4   :  { %v76_v12 = vadd.f32 %v72_v9, %v68_v11 }
  0xb5   :  { %v80_v14 = vpop.permute.xlu1 %79  ;;  %v78_v15 = vpop.permute.xlu0 %77 }
  0xb6   :  { %v84_v16 = vadd.f32 %v80_v14, %v76_v12  ;;  %v83_v17 = vadd.f32 %v78_v15, %v75_v13 }
  0xb8   :  { %206 = vrsqrt.f32 %v84_v16  ;;  %vm94_vm1 = vcmp.eq.f32.partialorder %v84_v16, inf  ;;  %v97_v22 = vand.u32 2147483648, %v84_v16  ;;  %vm87_vm2 = vcmp.eq.f32.partialorder %v83_v17, inf }
  0xb9   :  { %208 = vrsqrt.f32 %v83_v17  ;;  %v90_v23 = vand.u32 2147483648, %v83_v17  ;;  %vm96_vm3 = vcmp.eq.f32.partialorder %v84_v16, 0.0  ;;  %vm89_vm4 = vcmp.eq.f32.partialorder %v83_v17, 0.0 }
  0xc2   :  { %v207_v18 = vpop.eup %206 }
  0xc3   :  { %v209_v19 = vpop.eup %208  ;;  %v93_v20 = vmul.f32 %v207_v18, %v84_v16 }
  0xc4   :  { %v86_v21 = vmul.f32 %v209_v19, %v83_v17 }
  0xc5   :  { %v95_v24 = vsel %vm94_vm1, %v84_v16, %v93_v20 }
  0xc6   :  { %v88_v25 = vsel %vm87_vm2, %v83_v17, %v86_v21  ;;  %v98_v26 = vsel %vm96_vm3, %v97_v22, %v95_v24 }
  0xc7   :  { %v91_v27 = vsel %vm89_vm4, %v90_v23, %v88_v25 }
  0xc8   :  { %v99_v28 = vpack.c.bf16 %v98_v26, %v91_v27 }
  0xca   :  { %189 = vmatmul.mubr.msk.bf16.vlgmr.msra.gmra.mrb[0].mxu0 %vm115_vm5, %v99_v28 }
 0x19d   :  { %v153_v30 = vpop.f32.mrb[0].mxu0 }
 0x19e   :  { %v154_v31 = vadd.f32 %v181_v29, %v153_v30  ;;  %v190_v32 = vpop.f32.mrb[1].mxu0 }
 0x19f   :  { %v156_v33 = vpop.f32.mrb[2].mxu0 }
 0x1a0   :  { %v157_v34 = vadd.f32 %v181_v29, %v156_v33  ;;  %v191_v35 = vpop.f32.mrb[3].mxu0  ;;  %161 = vst.msk [vmem:[#allocation8] sm:$0xff] %vm160_vm6, %v154_v31 }
 0x1a2   :  { %162 = vst.msk [vmem:[#allocation8 + $0x8] sm:$0xff] %vm160_vm6, %v157_v34 }
 0x1a3   :  { %287 = shalt.err (!%p284_p0)
}
 0x1a4   :  { %s288_s4 = scalar_lea.hbm %s394_s3, 256 }
 0x1a5   :  { %p289_p1 = scmp.ne.s32.totalorder %s394_s3, %s288_s4  ;;  %p292_p2 = scmp.lt.u32.totalorder %s288_s4, %s394_s3 }
 0x1a7   :  { %p294_p3 = pnand %p292_p2, %p289_p1 }
 0x1a9   :  { %297 = shalt.err (!%p294_p3)
}
 0x1aa   :  { %174 = dma.vmem_to_hbm [thread:$0]  %s169_s27, 256, %s394_s3, [#allocation4], %s308_s1, %s308_s1, %s309_s9  }
 0x1ab   :  { %302 = dma.done.wait [#allocation4], 256  }
 0x1ac   :  { %303 = vsyncadd [#allocation4], 4294967040 }
 0x1ad   :  { %178 = vsyncpa [#allocation3], 1 }
 0x1ae   :  { %179 = vsyncpa [#allocation6], 1 }
 0x1af   :  { %180 = vsyncpa [#allocation4], 1 }

</bundles_post_ra>
